<compile_context>
chip_gen: v7x
topology: tpu7x:2x2x1
jax: 0.10.0
libtpu: 0.0.40
codegen_flags: <defaults>
</compile_context>

<pallas_src>
import functools
import math

import jax
import jax.numpy as jnp
from jax.experimental import pallas as pl
from jax.experimental.pallas import tpu as pltpu

BN_EPS = 1e-4  # KAIR uses eps=1e-04 for BatchNorm2d


# ------------------------------- fused kernel -------------------------------

def _fe_kernel(x_ref, w_ref, b_ref, s_ref, t_ref, m_ref, o_ref, *,
               nb, C, HW, out_nc, shifts):
    """One image per grid step; everything channel-major: (C sublanes, H*W lanes).

    x_ref : (1, C, HW)       input image, channels zero-padded to C = nc
    w_ref : (L*9, C, C)      stacked conv weights, tap-major: w_ref[l*9+t][co, ci]
    b_ref : (L, C, 1)        conv biases (broadcast over the lane axis)
    s_ref : (2*nb, C, 1)     folded-BN scales for body convs
    t_ref : (2*nb, C, 1)     folded-BN shifts for body convs
    m_ref : (9, 1, HW)       per-tap boundary masks (implements the conv's zero padding)
    o_ref : (1, out_nc, HW)  output: only the real channels, lane-dense store
    shifts: static tuple of 9 lane-roll amounts (one per 3x3 tap)
    """

    def conv(act, layer):
        # 3x3 SAME conv = 9 accumulated MXU matmuls over lane-shifted windows of `act` (C, HW).
        acc = None
        for t in range(9):
            if shifts[t] == 0:
                tap = act                                        # center tap: no shift, no mask
            else:
                tap = pltpu.roll(act, shifts[t], axis=1) * m_ref[t]
            d = jnp.dot(w_ref[layer * 9 + t], tap, preferred_element_type=jnp.float32)
            acc = d if acc is None else acc + d
        return acc + b_ref[layer]

    # head: plain conv ('C')
    y = conv(x_ref[0], 0)

    # body: nb x ResBlock('BRCBRC') = BN -> ReLU -> Conv -> BN -> ReLU -> Conv, + skip.
    # Residual add fused in VMEM/vregs; dynamic layer indices keep the loop rolled.
    def block(i, y):
        a = jnp.maximum(y * s_ref[2 * i] + t_ref[2 * i], 0.0)
        r = conv(a, 1 + 2 * i)
        a = jnp.maximum(r * s_ref[2 * i + 1] + t_ref[2 * i + 1], 0.0)
        return y + conv(a, 2 + 2 * i)

    y = jax.lax.fori_loop(0, nb, block, y)

    # tail: plain conv ('C'); only the real out_nc channel rows are stored (256 dense lanes).
    o_ref[0] = conv(y, 2 * nb + 1)[:out_nc]


# --------------------------- parameter / mask packing ---------------------------

def _pack_w(w_hwio, C):
    """(3,3,cin,cout) HWIO -> (9, C, C) tap-major, rows = out channels, cols = in channels."""
    kh, kw, cin, cout = w_hwio.shape
    wp = jnp.zeros((3, 3, C, C), jnp.float32).at[:, :, :cin, :cout].set(
        w_hwio.astype(jnp.float32))
    return wp.reshape(9, C, C).transpose(0, 2, 1)


def _pack_vec(v, C):
    return jnp.zeros((C,), jnp.float32).at[:v.shape[0]].set(v.astype(jnp.float32))


def _stack_params(params, nb, C):
    ws = [_pack_w(params["head_w"], C)]
    bs = [_pack_vec(params["head_b"], C)]
    ss, ts = [], []
    for blk in params["blocks"]:
        ss += [_pack_vec(blk["s1"], C), _pack_vec(blk["s2"], C)]
        ts += [_pack_vec(blk["t1"], C), _pack_vec(blk["t2"], C)]
        ws += [_pack_w(blk["w1"], C), _pack_w(blk["w2"], C)]
        bs += [_pack_vec(blk["b1"], C), _pack_vec(blk["b2"], C)]
    ws.append(_pack_w(params["tail_w"], C))
    bs.append(_pack_vec(params["tail_b"], C))

    w_all = jnp.concatenate(ws, axis=0)        # (L*9, C, C)
    b_all = jnp.stack(bs)[:, :, None]          # (L, C, 1)
    s_all = jnp.stack(ss)[:, :, None]          # (2nb, C, 1)
    t_all = jnp.stack(ts)[:, :, None]          # (2nb, C, 1)
    return w_all, b_all, s_all, t_all


def _make_taps(H, W):
    """Per-tap lane-roll amounts + boundary masks for a 3x3 SAME conv on flattened (H*W,) pixels."""
    HW = H * W
    pix = jnp.arange(HW, dtype=jnp.int32)
    r, c = pix // W, pix % W
    masks, shifts = [], []
    for oy in (-1, 0, 1):
        for ox in (-1, 0, 1):
            valid = ((r + oy >= 0) & (r + oy < H) & (c + ox >= 0) & (c + ox < W))
            masks.append(valid.astype(jnp.float32))
            shifts.append((-(oy * W + ox)) % HW)   # roll so tap[p] = x[p + oy*W + ox]
    return jnp.stack(masks)[:, None, :], tuple(shifts)   # (9, 1, HW), static tuple


# ------------------------------- forward passes -------------------------------

def feature_extractor_pallas(x_nchw, params):
    """x_nchw: (B, in_nc, H, W) float32 (PyTorch layout). Returns (B, out_nc, H, W)."""
    nb = len(params["blocks"])
    C = params["head_w"].shape[-1]             # nc
    out_nc = params["tail_w"].shape[-1]
    B, in_nc, H, W = x_nchw.shape
    HW = H * W
    L = 2 * nb + 2

    # channel-major lane-dense activations: NCHW -> (B, C, H*W) is a pure reshape;
    # zero-pad the input channels to nc (matching the zero-padded head weights).
    x_flat = x_nchw.reshape(B, in_nc, HW).astype(jnp.float32)
    x_pad = jnp.zeros((B, C, HW), jnp.float32).at[:, :in_nc, :].set(x_flat)

    w_all, b_all, s_all, t_all = _stack_params(params, nb, C)
    mask_all, shifts = _make_taps(H, W)

    kernel = functools.partial(_fe_kernel, nb=nb, C=C, HW=HW, out_nc=out_nc, shifts=shifts)
    out = pl.pallas_call(
        kernel,
        out_shape=jax.ShapeDtypeStruct((B, out_nc, HW), jnp.float32),
        grid=(B,),
        in_specs=[
            pl.BlockSpec((1, C, HW), lambda b: (b, 0, 0)),
            # constant index maps -> params DMA'd once, VMEM-resident across the batch grid
            pl.BlockSpec((L * 9, C, C), lambda b: (0, 0, 0)),
            pl.BlockSpec((L, C, 1), lambda b: (0, 0, 0)),
            pl.BlockSpec((2 * nb, C, 1), lambda b: (0, 0, 0)),
            pl.BlockSpec((2 * nb, C, 1), lambda b: (0, 0, 0)),
            pl.BlockSpec((9, 1, HW), lambda b: (0, 0, 0)),
        ],
        out_specs=pl.BlockSpec((1, out_nc, HW), lambda b: (b, 0, 0)),
        compiler_params=pltpu.CompilerParams(
            dimension_semantics=("parallel",)),   # v7x: one image per TensorCore
    )(x_pad, w_all, b_all, s_all, t_all, mask_all)

    return out.reshape(B, out_nc, H, W)           # NCHW, PyTorch convention


def _ref_conv(x, w, b):
    y = jax.lax.conv_general_dilated(x, w, (1, 1), "SAME",
                                     dimension_numbers=("NHWC", "HWIO", "NHWC"))
    return y + b


def feature_extractor_ref(x_nhwc, params):
    y = _ref_conv(x_nhwc, params["head_w"], params["head_b"])
    for blk in params["blocks"]:
        r = jnp.maximum(y * blk["s1"] + blk["t1"], 0.0)
        r = _ref_conv(r, blk["w1"], blk["b1"])
        r = jnp.maximum(r * blk["s2"] + blk["t2"], 0.0)
        r = _ref_conv(r, blk["w2"], blk["b2"])
        y = y + r
    return _ref_conv(y, params["tail_w"], params["tail_b"])


# ------------------------- parameter init (deterministic) -------------------------

def init_conv(key, cin, cout):
    k1, k2 = jax.random.split(key)
    fan_in = cin * 9
    w = jax.random.normal(k1, (3, 3, cin, cout), jnp.float32) / math.sqrt(fan_in)
    b = 0.01 * jax.random.normal(k2, (cout,), jnp.float32)
    return w, b


def init_bn_folded(key, c):
    """Inference-mode BN folded into per-channel (scale, shift)."""
    k1, k2, k3 = jax.random.split(key, 3)
    gamma = 1.0 + 0.1 * jax.random.normal(k1, (c,), jnp.float32)
    beta = 0.1 * jax.random.normal(k2, (c,), jnp.float32)
    running_mean = 0.1 * jax.random.normal(k3, (c,), jnp.float32)
    running_var = jnp.ones((c,), jnp.float32)
    scale = gamma / jnp.sqrt(running_var + BN_EPS)
    shift = beta - running_mean * scale
    return scale, shift


def init_feature_extractor(key, nb, in_nc, out_nc, nc):
    keys = jax.random.split(key, 2 + 4 * nb)
    params = {}
    params["head_w"], params["head_b"] = init_conv(keys[0], in_nc, nc)
    blocks = []
    for i in range(nb):
        kb = keys[1 + 4 * i:1 + 4 * (i + 1)]
        s1, t1 = init_bn_folded(kb[0], nc)
        w1, b1 = init_conv(kb[1], nc, nc)
        s2, t2 = init_bn_folded(kb[2], nc)
        w2, b2 = init_conv(kb[3], nc, nc)
        blocks.append(dict(s1=s1, t1=t1, w1=w1, b1=b1, s2=s2, t2=t2, w2=w2, b2=b2))
    params["blocks"] = blocks
    params["tail_w"], params["tail_b"] = init_conv(keys[-1], nc, out_nc)
    return params


if __name__ == "__main__":
    B, in_nc, out_nc, nc, S, nb = 2, 3, 3, 32, 16, 2

    key = jax.random.PRNGKey(0)
    k_x, k_p = jax.random.split(key)

    x_nchw = jax.random.normal(k_x, (B, in_nc, S, S), jnp.float32)   # PyTorch NCHW layout
    params = init_feature_extractor(k_p, nb=nb, in_nc=in_nc, out_nc=out_nc, nc=nc)

    out_nchw = feature_extractor_pallas(x_nchw, params)
    out_nchw = jax.block_until_ready(out_nchw)
    assert out_nchw.shape == (B, out_nc, S, S)

    # correctness check against a pure-JAX reference
    x_nhwc = jnp.transpose(x_nchw, (0, 2, 3, 1))
    ref_nchw = jnp.transpose(feature_extractor_ref(x_nhwc, params), (0, 3, 1, 2))
    assert jnp.allclose(out_nchw, ref_nchw, rtol=1e-3, atol=1e-3)

    print("KERNEL_OK")
</pallas_src>

<mosaic_0001>
module attributes {stable_mosaic.version = 11 : i64} {
  func.func @_fe_kernel(%arg0: i32, %arg1: memref<1x32x256xf32, #tpu.memory_space<vmem>>, %arg2: memref<54x32x32xf32, #tpu.memory_space<vmem>>, %arg3: memref<6x32x1xf32, #tpu.memory_space<vmem>>, %arg4: memref<4x32x1xf32, #tpu.memory_space<vmem>>, %arg5: memref<4x32x1xf32, #tpu.memory_space<vmem>>, %arg6: memref<9x1x256xf32, #tpu.memory_space<vmem>>, %arg7: memref<1x3x256xf32, #tpu.memory_space<vmem>>) attributes {dimension_semantics = [#tpu.dimension_semantics<parallel>], iteration_bounds = array<i64: 2>, scalar_prefetch = 0 : i64, scratch_operands = 0 : i64, tpu.core_type = #tpu.core_type<tc>, window_params = [{transform_indices = @transform_0, window_bounds = array<i64: 1, 32, 256>}, {pipeline_mode = #tpu.pipeline_mode<synchronous>, transform_indices = @transform_1, window_bounds = array<i64: 54, 32, 32>}, {pipeline_mode = #tpu.pipeline_mode<synchronous>, transform_indices = @transform_2, window_bounds = array<i64: 6, 32, 1>}, {pipeline_mode = #tpu.pipeline_mode<synchronous>, transform_indices = @transform_3, window_bounds = array<i64: 4, 32, 1>}, {pipeline_mode = #tpu.pipeline_mode<synchronous>, transform_indices = @transform_4, window_bounds = array<i64: 4, 32, 1>}, {pipeline_mode = #tpu.pipeline_mode<synchronous>, transform_indices = @transform_5, window_bounds = array<i64: 9, 1, 256>}, {transform_indices = @transform_6, window_bounds = array<i64: 1, 3, 256>}]} {
    %c0 = arith.constant 0 : index
    %c0_0 = arith.constant 0 : index
    %c0_1 = arith.constant 0 : index
    %0 = vector.load %arg1[%c0, %c0_0, %c0_1] : memref<1x32x256xf32, #tpu.memory_space<vmem>>, vector<1x32x256xf32>
    %1 = vector.shape_cast %0 : vector<1x32x256xf32> to vector<32x256xf32>
    %c17_i32 = arith.constant 17 : i32
    %2 = tpu.dynamic_rotate %1 by %c17_i32 dim 1 : vector<32x256xf32>, i32 -> vector<32x256xf32>
    %c0_2 = arith.constant 0 : index
    %c0_3 = arith.constant 0 : index
    %c0_4 = arith.constant 0 : index
    %3 = vector.load %arg6[%c0_2, %c0_3, %c0_4] : memref<9x1x256xf32, #tpu.memory_space<vmem>>, vector<1x1x256xf32>
    %4 = vector.shape_cast %3 : vector<1x1x256xf32> to vector<1x256xf32>
    %5 = vector.broadcast %4 : vector<1x256xf32> to vector<32x256xf32>
    %6 = arith.mulf %2, %5 : vector<32x256xf32>
    %c0_5 = arith.constant 0 : index
    %c0_6 = arith.constant 0 : index
    %c0_7 = arith.constant 0 : index
    %7 = vector.load %arg2[%c0_5, %c0_6, %c0_7] : memref<54x32x32xf32, #tpu.memory_space<vmem>>, vector<1x32x32xf32>
    %8 = vector.shape_cast %7 : vector<1x32x32xf32> to vector<32x32xf32>
    %cst = arith.constant dense<0.000000e+00> : vector<32x256xf32>
    %9 = tpu.matmul %8, %6, %cst {dimension_numbers = #tpu.dot_dimension_numbers<[1], [0], [0], [1], [0, 0, 1, 1], [], []>} : vector<32x32xf32>, vector<32x256xf32>, vector<32x256xf32> -> vector<32x256xf32>
    %c16_i32 = arith.constant 16 : i32
    %10 = tpu.dynamic_rotate %1 by %c16_i32 dim 1 : vector<32x256xf32>, i32 -> vector<32x256xf32>
    %c1 = arith.constant 1 : index
    %c0_8 = arith.constant 0 : index
    %c0_9 = arith.constant 0 : index
    %11 = vector.load %arg6[%c1, %c0_8, %c0_9] : memref<9x1x256xf32, #tpu.memory_space<vmem>>, vector<1x1x256xf32>
    %12 = vector.shape_cast %11 : vector<1x1x256xf32> to vector<1x256xf32>
    %13 = vector.broadcast %12 : vector<1x256xf32> to vector<32x256xf32>
    %14 = arith.mulf %10, %13 : vector<32x256xf32>
    %c1_10 = arith.constant 1 : index
    %c0_11 = arith.constant 0 : index
    %c0_12 = arith.constant 0 : index
    %15 = vector.load %arg2[%c1_10, %c0_11, %c0_12] : memref<54x32x32xf32, #tpu.memory_space<vmem>>, vector<1x32x32xf32>
    %16 = vector.shape_cast %15 : vector<1x32x32xf32> to vector<32x32xf32>
    %cst_13 = arith.constant dense<0.000000e+00> : vector<32x256xf32>
    %17 = tpu.matmul %16, %14, %cst_13 {dimension_numbers = #tpu.dot_dimension_numbers<[1], [0], [0], [1], [0, 0, 1, 1], [], []>} : vector<32x32xf32>, vector<32x256xf32>, vector<32x256xf32> -> vector<32x256xf32>
    %18 = arith.addf %9, %17 : vector<32x256xf32>
    %c15_i32 = arith.constant 15 : i32
    %19 = tpu.dynamic_rotate %1 by %c15_i32 dim 1 : vector<32x256xf32>, i32 -> vector<32x256xf32>
    %c2 = arith.constant 2 : index
    %c0_14 = arith.constant 0 : index
    %c0_15 = arith.constant 0 : index
    %20 = vector.load %arg6[%c2, %c0_14, %c0_15] : memref<9x1x256xf32, #tpu.memory_space<vmem>>, vector<1x1x256xf32>
    %21 = vector.shape_cast %20 : vector<1x1x256xf32> to vector<1x256xf32>
    %22 = vector.broadcast %21 : vector<1x256xf32> to vector<32x256xf32>
    %23 = arith.mulf %19, %22 : vector<32x256xf32>
    %c2_16 = arith.constant 2 : index
    %c0_17 = arith.constant 0 : index
    %c0_18 = arith.constant 0 : index
    %24 = vector.load %arg2[%c2_16, %c0_17, %c0_18] : memref<54x32x32xf32, #tpu.memory_space<vmem>>, vector<1x32x32xf32>
    %25 = vector.shape_cast %24 : vector<1x32x32xf32> to vector<32x32xf32>
    %cst_19 = arith.constant dense<0.000000e+00> : vector<32x256xf32>
    %26 = tpu.matmul %25, %23, %cst_19 {dimension_numbers = #tpu.dot_dimension_numbers<[1], [0], [0], [1], [0, 0, 1, 1], [], []>} : vector<32x32xf32>, vector<32x256xf32>, vector<32x256xf32> -> vector<32x256xf32>
    %27 = arith.addf %18, %26 : vector<32x256xf32>
    %c1_i32 = arith.constant 1 : i32
    %28 = tpu.dynamic_rotate %1 by %c1_i32 dim 1 : vector<32x256xf32>, i32 -> vector<32x256xf32>
    %c3 = arith.constant 3 : index
    %c0_20 = arith.constant 0 : index
    %c0_21 = arith.constant 0 : index
    %29 = vector.load %arg6[%c3, %c0_20, %c0_21] : memref<9x1x256xf32, #tpu.memory_space<vmem>>, vector<1x1x256xf32>
    %30 = vector.shape_cast %29 : vector<1x1x256xf32> to vector<1x256xf32>
    %31 = vector.broadcast %30 : vector<1x256xf32> to vector<32x256xf32>
    %32 = arith.mulf %28, %31 : vector<32x256xf32>
    %c3_22 = arith.constant 3 : index
    %c0_23 = arith.constant 0 : index
    %c0_24 = arith.constant 0 : index
    %33 = vector.load %arg2[%c3_22, %c0_23, %c0_24] : memref<54x32x32xf32, #tpu.memory_space<vmem>>, vector<1x32x32xf32>
    %34 = vector.shape_cast %33 : vector<1x32x32xf32> to vector<32x32xf32>
    %cst_25 = arith.constant dense<0.000000e+00> : vector<32x256xf32>
    %35 = tpu.matmul %34, %32, %cst_25 {dimension_numbers = #tpu.dot_dimension_numbers<[1], [0], [0], [1], [0, 0, 1, 1], [], []>} : vector<32x32xf32>, vector<32x256xf32>, vector<32x256xf32> -> vector<32x256xf32>
    %36 = arith.addf %27, %35 : vector<32x256xf32>
    %c4 = arith.constant 4 : index
    %c0_26 = arith.constant 0 : index
    %c0_27 = arith.constant 0 : index
    %37 = vector.load %arg2[%c4, %c0_26, %c0_27] : memref<54x32x32xf32, #tpu.memory_space<vmem>>, vector<1x32x32xf32>
    %38 = vector.shape_cast %37 : vector<1x32x32xf32> to vector<32x32xf32>
    %cst_28 = arith.constant dense<0.000000e+00> : vector<32x256xf32>
    %39 = tpu.matmul %38, %1, %cst_28 {dimension_numbers = #tpu.dot_dimension_numbers<[1], [0], [0], [1], [0, 0, 1, 1], [], []>} : vector<32x32xf32>, vector<32x256xf32>, vector<32x256xf32> -> vector<32x256xf32>
    %40 = arith.addf %36, %39 : vector<32x256xf32>
    %c255_i32 = arith.constant 255 : i32
    %41 = tpu.dynamic_rotate %1 by %c255_i32 dim 1 : vector<32x256xf32>, i32 -> vector<32x256xf32>
    %c5 = arith.constant 5 : index
    %c0_29 = arith.constant 0 : index
    %c0_30 = arith.constant 0 : index
    %42 = vector.load %arg6[%c5, %c0_29, %c0_30] : memref<9x1x256xf32, #tpu.memory_space<vmem>>, vector<1x1x256xf32>
    %43 = vector.shape_cast %42 : vector<1x1x256xf32> to vector<1x256xf32>
    %44 = vector.broadcast %43 : vector<1x256xf32> to vector<32x256xf32>
    %45 = arith.mulf %41, %44 : vector<32x256xf32>
    %c5_31 = arith.constant 5 : index
    %c0_32 = arith.constant 0 : index
    %c0_33 = arith.constant 0 : index
    %46 = vector.load %arg2[%c5_31, %c0_32, %c0_33] : memref<54x32x32xf32, #tpu.memory_space<vmem>>, vector<1x32x32xf32>
    %47 = vector.shape_cast %46 : vector<1x32x32xf32> to vector<32x32xf32>
    %cst_34 = arith.constant dense<0.000000e+00> : vector<32x256xf32>
    %48 = tpu.matmul %47, %45, %cst_34 {dimension_numbers = #tpu.dot_dimension_numbers<[1], [0], [0], [1], [0, 0, 1, 1], [], []>} : vector<32x32xf32>, vector<32x256xf32>, vector<32x256xf32> -> vector<32x256xf32>
    %49 = arith.addf %40, %48 : vector<32x256xf32>
    %c241_i32 = arith.constant 241 : i32
    %50 = tpu.dynamic_rotate %1 by %c241_i32 dim 1 : vector<32x256xf32>, i32 -> vector<32x256xf32>
    %c6 = arith.constant 6 : index
    %c0_35 = arith.constant 0 : index
    %c0_36 = arith.constant 0 : index
    %51 = vector.load %arg6[%c6, %c0_35, %c0_36] : memref<9x1x256xf32, #tpu.memory_space<vmem>>, vector<1x1x256xf32>
    %52 = vector.shape_cast %51 : vector<1x1x256xf32> to vector<1x256xf32>
    %53 = vector.broadcast %52 : vector<1x256xf32> to vector<32x256xf32>
    %54 = arith.mulf %50, %53 : vector<32x256xf32>
    %c6_37 = arith.constant 6 : index
    %c0_38 = arith.constant 0 : index
    %c0_39 = arith.constant 0 : index
    %55 = vector.load %arg2[%c6_37, %c0_38, %c0_39] : memref<54x32x32xf32, #tpu.memory_space<vmem>>, vector<1x32x32xf32>
    %56 = vector.shape_cast %55 : vector<1x32x32xf32> to vector<32x32xf32>
    %cst_40 = arith.constant dense<0.000000e+00> : vector<32x256xf32>
    %57 = tpu.matmul %56, %54, %cst_40 {dimension_numbers = #tpu.dot_dimension_numbers<[1], [0], [0], [1], [0, 0, 1, 1], [], []>} : vector<32x32xf32>, vector<32x256xf32>, vector<32x256xf32> -> vector<32x256xf32>
    %58 = arith.addf %49, %57 : vector<32x256xf32>
    %c240_i32 = arith.constant 240 : i32
    %59 = tpu.dynamic_rotate %1 by %c240_i32 dim 1 : vector<32x256xf32>, i32 -> vector<32x256xf32>
    %c7 = arith.constant 7 : index
    %c0_41 = arith.constant 0 : index
    %c0_42 = arith.constant 0 : index
    %60 = vector.load %arg6[%c7, %c0_41, %c0_42] : memref<9x1x256xf32, #tpu.memory_space<vmem>>, vector<1x1x256xf32>
    %61 = vector.shape_cast %60 : vector<1x1x256xf32> to vector<1x256xf32>
    %62 = vector.broadcast %61 : vector<1x256xf32> to vector<32x256xf32>
    %63 = arith.mulf %59, %62 : vector<32x256xf32>
    %c7_43 = arith.constant 7 : index
    %c0_44 = arith.constant 0 : index
    %c0_45 = arith.constant 0 : index
    %64 = vector.load %arg2[%c7_43, %c0_44, %c0_45] : memref<54x32x32xf32, #tpu.memory_space<vmem>>, vector<1x32x32xf32>
    %65 = vector.shape_cast %64 : vector<1x32x32xf32> to vector<32x32xf32>
    %cst_46 = arith.constant dense<0.000000e+00> : vector<32x256xf32>
    %66 = tpu.matmul %65, %63, %cst_46 {dimension_numbers = #tpu.dot_dimension_numbers<[1], [0], [0], [1], [0, 0, 1, 1], [], []>} : vector<32x32xf32>, vector<32x256xf32>, vector<32x256xf32> -> vector<32x256xf32>
    %67 = arith.addf %58, %66 : vector<32x256xf32>
    %c239_i32 = arith.constant 239 : i32
    %68 = tpu.dynamic_rotate %1 by %c239_i32 dim 1 : vector<32x256xf32>, i32 -> vector<32x256xf32>
    %c8 = arith.constant 8 : index
    %c0_47 = arith.constant 0 : index
    %c0_48 = arith.constant 0 : index
    %69 = vector.load %arg6[%c8, %c0_47, %c0_48] : memref<9x1x256xf32, #tpu.memory_space<vmem>>, vector<1x1x256xf32>
    %70 = vector.shape_cast %69 : vector<1x1x256xf32> to vector<1x256xf32>
    %71 = vector.broadcast %70 : vector<1x256xf32> to vector<32x256xf32>
    %72 = arith.mulf %68, %71 : vector<32x256xf32>
    %c8_49 = arith.constant 8 : index
    %c0_50 = arith.constant 0 : index
    %c0_51 = arith.constant 0 : index
    %73 = vector.load %arg2[%c8_49, %c0_50, %c0_51] : memref<54x32x32xf32, #tpu.memory_space<vmem>>, vector<1x32x32xf32>
    %74 = vector.shape_cast %73 : vector<1x32x32xf32> to vector<32x32xf32>
    %cst_52 = arith.constant dense<0.000000e+00> : vector<32x256xf32>
    %75 = tpu.matmul %74, %72, %cst_52 {dimension_numbers = #tpu.dot_dimension_numbers<[1], [0], [0], [1], [0, 0, 1, 1], [], []>} : vector<32x32xf32>, vector<32x256xf32>, vector<32x256xf32> -> vector<32x256xf32>
    %76 = arith.addf %67, %75 : vector<32x256xf32>
    %c0_53 = arith.constant 0 : index
    %c0_54 = arith.constant 0 : index
    %c0_55 = arith.constant 0 : index
    %77 = vector.load %arg3[%c0_53, %c0_54, %c0_55] : memref<6x32x1xf32, #tpu.memory_space<vmem>>, vector<1x32x1xf32>
    %78 = vector.shape_cast %77 : vector<1x32x1xf32> to vector<32x1xf32>
    %79 = vector.broadcast %78 : vector<32x1xf32> to vector<32x256xf32>
    %80 = arith.addf %76, %79 : vector<32x256xf32>
    %c0_i32 = arith.constant 0 : i32
    %c2_i32 = arith.constant 2 : i32
    %81 = arith.addi %c0_i32, %c2_i32 : i32
    %c1_i32_56 = arith.constant 1 : i32
    %82 = scf.for %arg8 = %c0_i32 to %81 step %c1_i32_56 iter_args(%arg9 = %80) -> (vector<32x256xf32>)  : i32 {
      %c2_i32_123 = arith.constant 2 : i32
      %166 = arith.muli %c2_i32_123, %arg8 : i32
      %167 = arith.index_cast %166 : i32 to index
      %c0_124 = arith.constant 0 : index
      %c0_125 = arith.constant 0 : index
      %168 = vector.load %arg4[%167, %c0_124, %c0_125] : memref<4x32x1xf32, #tpu.memory_space<vmem>>, vector<1x32x1xf32>
      %169 = vector.shape_cast %168 : vector<1x32x1xf32> to vector<32x1xf32>
      %170 = vector.broadcast %169 : vector<32x1xf32> to vector<32x256xf32>
      %171 = arith.mulf %arg9, %170 : vector<32x256xf32>
      %c2_i32_126 = arith.constant 2 : i32
      %172 = arith.muli %c2_i32_126, %arg8 : i32
      %173 = arith.index_cast %172 : i32 to index
      %c0_127 = arith.constant 0 : index
      %c0_128 = arith.constant 0 : index
      %174 = vector.load %arg5[%173, %c0_127, %c0_128] : memref<4x32x1xf32, #tpu.memory_space<vmem>>, vector<1x32x1xf32>
      %175 = vector.shape_cast %174 : vector<1x32x1xf32> to vector<32x1xf32>
      %176 = vector.broadcast %175 : vector<32x1xf32> to vector<32x256xf32>
      %177 = arith.addf %171, %176 : vector<32x256xf32>
      %cst_129 = arith.constant 0.000000e+00 : f32
      %178 = vector.broadcast %cst_129 : f32 to vector<32x256xf32>
      %179 = arith.maximumf %177, %178 : vector<32x256xf32>
      %c2_i32_130 = arith.constant 2 : i32
      %180 = arith.muli %c2_i32_130, %arg8 : i32
      %c1_i32_131 = arith.constant 1 : i32
      %181 = arith.addi %c1_i32_131, %180 : i32
      %c17_i32_132 = arith.constant 17 : i32
      %182 = tpu.dynamic_rotate %179 by %c17_i32_132 dim 1 : vector<32x256xf32>, i32 -> vector<32x256xf32>
      %c0_133 = arith.constant 0 : index
      %c0_134 = arith.constant 0 : index
      %c0_135 = arith.constant 0 : index
      %183 = vector.load %arg6[%c0_133, %c0_134, %c0_135] : memref<9x1x256xf32, #tpu.memory_space<vmem>>, vector<1x1x256xf32>
      %184 = vector.shape_cast %183 : vector<1x1x256xf32> to vector<1x256xf32>
      %185 = vector.broadcast %184 : vector<1x256xf32> to vector<32x256xf32>
      %186 = arith.mulf %182, %185 : vector<32x256xf32>
      %c9_i32 = arith.constant 9 : i32
      %187 = arith.muli %181, %c9_i32 : i32
      %c0_i32_136 = arith.constant 0 : i32
      %188 = arith.addi %187, %c0_i32_136 : i32
      %189 = arith.index_cast %188 : i32 to index
      %c0_137 = arith.constant 0 : index
      %c0_138 = arith.constant 0 : index
      %190 = vector.load %arg2[%189, %c0_137, %c0_138] : memref<54x32x32xf32, #tpu.memory_space<vmem>>, vector<1x32x32xf32>
      %191 = vector.shape_cast %190 : vector<1x32x32xf32> to vector<32x32xf32>
      %cst_139 = arith.constant dense<0.000000e+00> : vector<32x256xf32>
      %192 = tpu.matmul %191, %186, %cst_139 {dimension_numbers = #tpu.dot_dimension_numbers<[1], [0], [0], [1], [0, 0, 1, 1], [], []>} : vector<32x32xf32>, vector<32x256xf32>, vector<32x256xf32> -> vector<32x256xf32>
      %c16_i32_140 = arith.constant 16 : i32
      %193 = tpu.dynamic_rotate %179 by %c16_i32_140 dim 1 : vector<32x256xf32>, i32 -> vector<32x256xf32>
      %c1_141 = arith.constant 1 : index
      %c0_142 = arith.constant 0 : index
      %c0_143 = arith.constant 0 : index
      %194 = vector.load %arg6[%c1_141, %c0_142, %c0_143] : memref<9x1x256xf32, #tpu.memory_space<vmem>>, vector<1x1x256xf32>
      %195 = vector.shape_cast %194 : vector<1x1x256xf32> to vector<1x256xf32>
      %196 = vector.broadcast %195 : vector<1x256xf32> to vector<32x256xf32>
      %197 = arith.mulf %193, %196 : vector<32x256xf32>
      %c9_i32_144 = arith.constant 9 : i32
      %198 = arith.muli %181, %c9_i32_144 : i32
      %c1_i32_145 = arith.constant 1 : i32
      %199 = arith.addi %198, %c1_i32_145 : i32
      %200 = arith.index_cast %199 : i32 to index
      %c0_146 = arith.constant 0 : index
      %c0_147 = arith.constant 0 : index
      %201 = vector.load %arg2[%200, %c0_146, %c0_147] : memref<54x32x32xf32, #tpu.memory_space<vmem>>, vector<1x32x32xf32>
      %202 = vector.shape_cast %201 : vector<1x32x32xf32> to vector<32x32xf32>
      %cst_148 = arith.constant dense<0.000000e+00> : vector<32x256xf32>
      %203 = tpu.matmul %202, %197, %cst_148 {dimension_numbers = #tpu.dot_dimension_numbers<[1], [0], [0], [1], [0, 0, 1, 1], [], []>} : vector<32x32xf32>, vector<32x256xf32>, vector<32x256xf32> -> vector<32x256xf32>
      %204 = arith.addf %192, %203 : vector<32x256xf32>
      %c15_i32_149 = arith.constant 15 : i32
      %205 = tpu.dynamic_rotate %179 by %c15_i32_149 dim 1 : vector<32x256xf32>, i32 -> vector<32x256xf32>
      %c2_150 = arith.constant 2 : index
      %c0_151 = arith.constant 0 : index
      %c0_152 = arith.constant 0 : index
      %206 = vector.load %arg6[%c2_150, %c0_151, %c0_152] : memref<9x1x256xf32, #tpu.memory_space<vmem>>, vector<1x1x256xf32>
      %207 = vector.shape_cast %206 : vector<1x1x256xf32> to vector<1x256xf32>
      %208 = vector.broadcast %207 : vector<1x256xf32> to vector<32x256xf32>
      %209 = arith.mulf %205, %208 : vector<32x256xf32>
      %c9_i32_153 = arith.constant 9 : i32
      %210 = arith.muli %181, %c9_i32_153 : i32
      %c2_i32_154 = arith.constant 2 : i32
      %211 = arith.addi %210, %c2_i32_154 : i32
      %212 = arith.index_cast %211 : i32 to index
      %c0_155 = arith.constant 0 : index
      %c0_156 = arith.constant 0 : index
      %213 = vector.load %arg2[%212, %c0_155, %c0_156] : memref<54x32x32xf32, #tpu.memory_space<vmem>>, vector<1x32x32xf32>
      %214 = vector.shape_cast %213 : vector<1x32x32xf32> to vector<32x32xf32>
      %cst_157 = arith.constant dense<0.000000e+00> : vector<32x256xf32>
      %215 = tpu.matmul %214, %209, %cst_157 {dimension_numbers = #tpu.dot_dimension_numbers<[1], [0], [0], [1], [0, 0, 1, 1], [], []>} : vector<32x32xf32>, vector<32x256xf32>, vector<32x256xf32> -> vector<32x256xf32>
      %216 = arith.addf %204, %215 : vector<32x256xf32>
      %c1_i32_158 = arith.constant 1 : i32
      %217 = tpu.dynamic_rotate %179 by %c1_i32_158 dim 1 : vector<32x256xf32>, i32 -> vector<32x256xf32>
      %c3_159 = arith.constant 3 : index
      %c0_160 = arith.constant 0 : index
      %c0_161 = arith.constant 0 : index
      %218 = vector.load %arg6[%c3_159, %c0_160, %c0_161] : memref<9x1x256xf32, #tpu.memory_space<vmem>>, vector<1x1x256xf32>
      %219 = vector.shape_cast %218 : vector<1x1x256xf32> to vector<1x256xf32>
      %220 = vector.broadcast %219 : vector<1x256xf32> to vector<32x256xf32>
      %221 = arith.mulf %217, %220 : vector<32x256xf32>
      %c9_i32_162 = arith.constant 9 : i32
      %222 = arith.muli %181, %c9_i32_162 : i32
      %c3_i32 = arith.constant 3 : i32
      %223 = arith.addi %222, %c3_i32 : i32
      %224 = arith.index_cast %223 : i32 to index
      %c0_163 = arith.constant 0 : index
      %c0_164 = arith.constant 0 : index
      %225 = vector.load %arg2[%224, %c0_163, %c0_164] : memref<54x32x32xf32, #tpu.memory_space<vmem>>, vector<1x32x32xf32>
      %226 = vector.shape_cast %225 : vector<1x32x32xf32> to vector<32x32xf32>
      %cst_165 = arith.constant dense<0.000000e+00> : vector<32x256xf32>
      %227 = tpu.matmul %226, %221, %cst_165 {dimension_numbers = #tpu.dot_dimension_numbers<[1], [0], [0], [1], [0, 0, 1, 1], [], []>} : vector<32x32xf32>, vector<32x256xf32>, vector<32x256xf32> -> vector<32x256xf32>
      %228 = arith.addf %216, %227 : vector<32x256xf32>
      %c9_i32_166 = arith.constant 9 : i32
      %229 = arith.muli %181, %c9_i32_166 : i32
      %c4_i32 = arith.constant 4 : i32
      %230 = arith.addi %229, %c4_i32 : i32
      %231 = arith.index_cast %230 : i32 to index
      %c0_167 = arith.constant 0 : index
      %c0_168 = arith.constant 0 : index
      %232 = vector.load %arg2[%231, %c0_167, %c0_168] : memref<54x32x32xf32, #tpu.memory_space<vmem>>, vector<1x32x32xf32>
      %233 = vector.shape_cast %232 : vector<1x32x32xf32> to vector<32x32xf32>
      %cst_169 = arith.constant dense<0.000000e+00> : vector<32x256xf32>
      %234 = tpu.matmul %233, %179, %cst_169 {dimension_numbers = #tpu.dot_dimension_numbers<[1], [0], [0], [1], [0, 0, 1, 1], [], []>} : vector<32x32xf32>, vector<32x256xf32>, vector<32x256xf32> -> vector<32x256xf32>
      %235 = arith.addf %228, %234 : vector<32x256xf32>
      %c255_i32_170 = arith.constant 255 : i32
      %236 = tpu.dynamic_rotate %179 by %c255_i32_170 dim 1 : vector<32x256xf32>, i32 -> vector<32x256xf32>
      %c5_171 = arith.constant 5 : index
      %c0_172 = arith.constant 0 : index
      %c0_173 = arith.constant 0 : index
      %237 = vector.load %arg6[%c5_171, %c0_172, %c0_173] : memref<9x1x256xf32, #tpu.memory_space<vmem>>, vector<1x1x256xf32>
      %238 = vector.shape_cast %237 : vector<1x1x256xf32> to vector<1x256xf32>
      %239 = vector.broadcast %238 : vector<1x256xf32> to vector<32x256xf32>
      %240 = arith.mulf %236, %239 : vector<32x256xf32>
      %c9_i32_174 = arith.constant 9 : i32
      %241 = arith.muli %181, %c9_i32_174 : i32
      %c5_i32 = arith.constant 5 : i32
      %242 = arith.addi %241, %c5_i32 : i32
      %243 = arith.index_cast %242 : i32 to index
      %c0_175 = arith.constant 0 : index
      %c0_176 = arith.constant 0 : index
      %244 = vector.load %arg2[%243, %c0_175, %c0_176] : memref<54x32x32xf32, #tpu.memory_space<vmem>>, vector<1x32x32xf32>
      %245 = vector.shape_cast %244 : vector<1x32x32xf32> to vector<32x32xf32>
      %cst_177 = arith.constant dense<0.000000e+00> : vector<32x256xf32>
      %246 = tpu.matmul %245, %240, %cst_177 {dimension_numbers = #tpu.dot_dimension_numbers<[1], [0], [0], [1], [0, 0, 1, 1], [], []>} : vector<32x32xf32>, vector<32x256xf32>, vector<32x256xf32> -> vector<32x256xf32>
      %247 = arith.addf %235, %246 : vector<32x256xf32>
      %c241_i32_178 = arith.constant 241 : i32
      %248 = tpu.dynamic_rotate %179 by %c241_i32_178 dim 1 : vector<32x256xf32>, i32 -> vector<32x256xf32>
      %c6_179 = arith.constant 6 : index
      %c0_180 = arith.constant 0 : index
      %c0_181 = arith.constant 0 : index
      %249 = vector.load %arg6[%c6_179, %c0_180, %c0_181] : memref<9x1x256xf32, #tpu.memory_space<vmem>>, vector<1x1x256xf32>
      %250 = vector.shape_cast %249 : vector<1x1x256xf32> to vector<1x256xf32>
      %251 = vector.broadcast %250 : vector<1x256xf32> to vector<32x256xf32>
      %252 = arith.mulf %248, %251 : vector<32x256xf32>
      %c9_i32_182 = arith.constant 9 : i32
      %253 = arith.muli %181, %c9_i32_182 : i32
      %c6_i32 = arith.constant 6 : i32
      %254 = arith.addi %253, %c6_i32 : i32
      %255 = arith.index_cast %254 : i32 to index
      %c0_183 = arith.constant 0 : index
      %c0_184 = arith.constant 0 : index
      %256 = vector.load %arg2[%255, %c0_183, %c0_184] : memref<54x32x32xf32, #tpu.memory_space<vmem>>, vector<1x32x32xf32>
      %257 = vector.shape_cast %256 : vector<1x32x32xf32> to vector<32x32xf32>
      %cst_185 = arith.constant dense<0.000000e+00> : vector<32x256xf32>
      %258 = tpu.matmul %257, %252, %cst_185 {dimension_numbers = #tpu.dot_dimension_numbers<[1], [0], [0], [1], [0, 0, 1, 1], [], []>} : vector<32x32xf32>, vector<32x256xf32>, vector<32x256xf32> -> vector<32x256xf32>
      %259 = arith.addf %247, %258 : vector<32x256xf32>
      %c240_i32_186 = arith.constant 240 : i32
      %260 = tpu.dynamic_rotate %179 by %c240_i32_186 dim 1 : vector<32x256xf32>, i32 -> vector<32x256xf32>
      %c7_187 = arith.constant 7 : index
      %c0_188 = arith.constant 0 : index
      %c0_189 = arith.constant 0 : index
      %261 = vector.load %arg6[%c7_187, %c0_188, %c0_189] : memref<9x1x256xf32, #tpu.memory_space<vmem>>, vector<1x1x256xf32>
      %262 = vector.shape_cast %261 : vector<1x1x256xf32> to vector<1x256xf32>
      %263 = vector.broadcast %262 : vector<1x256xf32> to vector<32x256xf32>
      %264 = arith.mulf %260, %263 : vector<32x256xf32>
      %c9_i32_190 = arith.constant 9 : i32
      %265 = arith.muli %181, %c9_i32_190 : i32
      %c7_i32 = arith.constant 7 : i32
      %266 = arith.addi %265, %c7_i32 : i32
      %267 = arith.index_cast %266 : i32 to index
      %c0_191 = arith.constant 0 : index
      %c0_192 = arith.constant 0 : index
      %268 = vector.load %arg2[%267, %c0_191, %c0_192] : memref<54x32x32xf32, #tpu.memory_space<vmem>>, vector<1x32x32xf32>
      %269 = vector.shape_cast %268 : vector<1x32x32xf32> to vector<32x32xf32>
      %cst_193 = arith.constant dense<0.000000e+00> : vector<32x256xf32>
      %270 = tpu.matmul %269, %264, %cst_193 {dimension_numbers = #tpu.dot_dimension_numbers<[1], [0], [0], [1], [0, 0, 1, 1], [], []>} : vector<32x32xf32>, vector<32x256xf32>, vector<32x256xf32> -> vector<32x256xf32>
      %271 = arith.addf %259, %270 : vector<32x256xf32>
      %c239_i32_194 = arith.constant 239 : i32
      %272 = tpu.dynamic_rotate %179 by %c239_i32_194 dim 1 : vector<32x256xf32>, i32 -> vector<32x256xf32>
      %c8_195 = arith.constant 8 : index
      %c0_196 = arith.constant 0 : index
      %c0_197 = arith.constant 0 : index
      %273 = vector.load %arg6[%c8_195, %c0_196, %c0_197] : memref<9x1x256xf32, #tpu.memory_space<vmem>>, vector<1x1x256xf32>
      %274 = vector.shape_cast %273 : vector<1x1x256xf32> to vector<1x256xf32>
      %275 = vector.broadcast %274 : vector<1x256xf32> to vector<32x256xf32>
      %276 = arith.mulf %272, %275 : vector<32x256xf32>
      %c9_i32_198 = arith.constant 9 : i32
      %277 = arith.muli %181, %c9_i32_198 : i32
      %c8_i32 = arith.constant 8 : i32
      %278 = arith.addi %277, %c8_i32 : i32
      %279 = arith.index_cast %278 : i32 to index
      %c0_199 = arith.constant 0 : index
      %c0_200 = arith.constant 0 : index
      %280 = vector.load %arg2[%279, %c0_199, %c0_200] : memref<54x32x32xf32, #tpu.memory_space<vmem>>, vector<1x32x32xf32>
      %281 = vector.shape_cast %280 : vector<1x32x32xf32> to vector<32x32xf32>
      %cst_201 = arith.constant dense<0.000000e+00> : vector<32x256xf32>
      %282 = tpu.matmul %281, %276, %cst_201 {dimension_numbers = #tpu.dot_dimension_numbers<[1], [0], [0], [1], [0, 0, 1, 1], [], []>} : vector<32x32xf32>, vector<32x256xf32>, vector<32x256xf32> -> vector<32x256xf32>
      %283 = arith.addf %271, %282 : vector<32x256xf32>
      %284 = arith.index_cast %181 : i32 to index
      %c0_202 = arith.constant 0 : index
      %c0_203 = arith.constant 0 : index
      %285 = vector.load %arg3[%284, %c0_202, %c0_203] : memref<6x32x1xf32, #tpu.memory_space<vmem>>, vector<1x32x1xf32>
      %286 = vector.shape_cast %285 : vector<1x32x1xf32> to vector<32x1xf32>
      %287 = vector.broadcast %286 : vector<32x1xf32> to vector<32x256xf32>
      %288 = arith.addf %283, %287 : vector<32x256xf32>
      %c2_i32_204 = arith.constant 2 : i32
      %289 = arith.muli %c2_i32_204, %arg8 : i32
      %c1_i32_205 = arith.constant 1 : i32
      %290 = arith.addi %289, %c1_i32_205 : i32
      %291 = arith.index_cast %290 : i32 to index
      %c0_206 = arith.constant 0 : index
      %c0_207 = arith.constant 0 : index
      %292 = vector.load %arg4[%291, %c0_206, %c0_207] : memref<4x32x1xf32, #tpu.memory_space<vmem>>, vector<1x32x1xf32>
      %293 = vector.shape_cast %292 : vector<1x32x1xf32> to vector<32x1xf32>
      %294 = vector.broadcast %293 : vector<32x1xf32> to vector<32x256xf32>
      %295 = arith.mulf %288, %294 : vector<32x256xf32>
      %c2_i32_208 = arith.constant 2 : i32
      %296 = arith.muli %c2_i32_208, %arg8 : i32
      %c1_i32_209 = arith.constant 1 : i32
      %297 = arith.addi %296, %c1_i32_209 : i32
      %298 = arith.index_cast %297 : i32 to index
      %c0_210 = arith.constant 0 : index
      %c0_211 = arith.constant 0 : index
      %299 = vector.load %arg5[%298, %c0_210, %c0_211] : memref<4x32x1xf32, #tpu.memory_space<vmem>>, vector<1x32x1xf32>
      %300 = vector.shape_cast %299 : vector<1x32x1xf32> to vector<32x1xf32>
      %301 = vector.broadcast %300 : vector<32x1xf32> to vector<32x256xf32>
      %302 = arith.addf %295, %301 : vector<32x256xf32>
      %cst_212 = arith.constant 0.000000e+00 : f32
      %303 = vector.broadcast %cst_212 : f32 to vector<32x256xf32>
      %304 = arith.maximumf %302, %303 : vector<32x256xf32>
      %c2_i32_213 = arith.constant 2 : i32
      %305 = arith.muli %c2_i32_213, %arg8 : i32
      %c2_i32_214 = arith.constant 2 : i32
      %306 = arith.addi %c2_i32_214, %305 : i32
      %c17_i32_215 = arith.constant 17 : i32
      %307 = tpu.dynamic_rotate %304 by %c17_i32_215 dim 1 : vector<32x256xf32>, i32 -> vector<32x256xf32>
      %c0_216 = arith.constant 0 : index
      %c0_217 = arith.constant 0 : index
      %c0_218 = arith.constant 0 : index
      %308 = vector.load %arg6[%c0_216, %c0_217, %c0_218] : memref<9x1x256xf32, #tpu.memory_space<vmem>>, vector<1x1x256xf32>
      %309 = vector.shape_cast %308 : vector<1x1x256xf32> to vector<1x256xf32>
      %310 = vector.broadcast %309 : vector<1x256xf32> to vector<32x256xf32>
      %311 = arith.mulf %307, %310 : vector<32x256xf32>
      %c9_i32_219 = arith.constant 9 : i32
      %312 = arith.muli %306, %c9_i32_219 : i32
      %c0_i32_220 = arith.constant 0 : i32
      %313 = arith.addi %312, %c0_i32_220 : i32
      %314 = arith.index_cast %313 : i32 to index
      %c0_221 = arith.constant 0 : index
      %c0_222 = arith.constant 0 : index
      %315 = vector.load %arg2[%314, %c0_221, %c0_222] : memref<54x32x32xf32, #tpu.memory_space<vmem>>, vector<1x32x32xf32>
      %316 = vector.shape_cast %315 : vector<1x32x32xf32> to vector<32x32xf32>
      %cst_223 = arith.constant dense<0.000000e+00> : vector<32x256xf32>
      %317 = tpu.matmul %316, %311, %cst_223 {dimension_numbers = #tpu.dot_dimension_numbers<[1], [0], [0], [1], [0, 0, 1, 1], [], []>} : vector<32x32xf32>, vector<32x256xf32>, vector<32x256xf32> -> vector<32x256xf32>
      %c16_i32_224 = arith.constant 16 : i32
      %318 = tpu.dynamic_rotate %304 by %c16_i32_224 dim 1 : vector<32x256xf32>, i32 -> vector<32x256xf32>
      %c1_225 = arith.constant 1 : index
      %c0_226 = arith.constant 0 : index
      %c0_227 = arith.constant 0 : index
      %319 = vector.load %arg6[%c1_225, %c0_226, %c0_227] : memref<9x1x256xf32, #tpu.memory_space<vmem>>, vector<1x1x256xf32>
      %320 = vector.shape_cast %319 : vector<1x1x256xf32> to vector<1x256xf32>
      %321 = vector.broadcast %320 : vector<1x256xf32> to vector<32x256xf32>
      %322 = arith.mulf %318, %321 : vector<32x256xf32>
      %c9_i32_228 = arith.constant 9 : i32
      %323 = arith.muli %306, %c9_i32_228 : i32
      %c1_i32_229 = arith.constant 1 : i32
      %324 = arith.addi %323, %c1_i32_229 : i32
      %325 = arith.index_cast %324 : i32 to index
      %c0_230 = arith.constant 0 : index
      %c0_231 = arith.constant 0 : index
      %326 = vector.load %arg2[%325, %c0_230, %c0_231] : memref<54x32x32xf32, #tpu.memory_space<vmem>>, vector<1x32x32xf32>
      %327 = vector.shape_cast %326 : vector<1x32x32xf32> to vector<32x32xf32>
      %cst_232 = arith.constant dense<0.000000e+00> : vector<32x256xf32>
      %328 = tpu.matmul %327, %322, %cst_232 {dimension_numbers = #tpu.dot_dimension_numbers<[1], [0], [0], [1], [0, 0, 1, 1], [], []>} : vector<32x32xf32>, vector<32x256xf32>, vector<32x256xf32> -> vector<32x256xf32>
      %329 = arith.addf %317, %328 : vector<32x256xf32>
      %c15_i32_233 = arith.constant 15 : i32
      %330 = tpu.dynamic_rotate %304 by %c15_i32_233 dim 1 : vector<32x256xf32>, i32 -> vector<32x256xf32>
      %c2_234 = arith.constant 2 : index
      %c0_235 = arith.constant 0 : index
      %c0_236 = arith.constant 0 : index
      %331 = vector.load %arg6[%c2_234, %c0_235, %c0_236] : memref<9x1x256xf32, #tpu.memory_space<vmem>>, vector<1x1x256xf32>
      %332 = vector.shape_cast %331 : vector<1x1x256xf32> to vector<1x256xf32>
      %333 = vector.broadcast %332 : vector<1x256xf32> to vector<32x256xf32>
      %334 = arith.mulf %330, %333 : vector<32x256xf32>
      %c9_i32_237 = arith.constant 9 : i32
      %335 = arith.muli %306, %c9_i32_237 : i32
      %c2_i32_238 = arith.constant 2 : i32
      %336 = arith.addi %335, %c2_i32_238 : i32
      %337 = arith.index_cast %336 : i32 to index
      %c0_239 = arith.constant 0 : index
      %c0_240 = arith.constant 0 : index
      %338 = vector.load %arg2[%337, %c0_239, %c0_240] : memref<54x32x32xf32, #tpu.memory_space<vmem>>, vector<1x32x32xf32>
      %339 = vector.shape_cast %338 : vector<1x32x32xf32> to vector<32x32xf32>
      %cst_241 = arith.constant dense<0.000000e+00> : vector<32x256xf32>
      %340 = tpu.matmul %339, %334, %cst_241 {dimension_numbers = #tpu.dot_dimension_numbers<[1], [0], [0], [1], [0, 0, 1, 1], [], []>} : vector<32x32xf32>, vector<32x256xf32>, vector<32x256xf32> -> vector<32x256xf32>
      %341 = arith.addf %329, %340 : vector<32x256xf32>
      %c1_i32_242 = arith.constant 1 : i32
      %342 = tpu.dynamic_rotate %304 by %c1_i32_242 dim 1 : vector<32x256xf32>, i32 -> vector<32x256xf32>
      %c3_243 = arith.constant 3 : index
      %c0_244 = arith.constant 0 : index
      %c0_245 = arith.constant 0 : index
      %343 = vector.load %arg6[%c3_243, %c0_244, %c0_245] : memref<9x1x256xf32, #tpu.memory_space<vmem>>, vector<1x1x256xf32>
      %344 = vector.shape_cast %343 : vector<1x1x256xf32> to vector<1x256xf32>
      %345 = vector.broadcast %344 : vector<1x256xf32> to vector<32x256xf32>
      %346 = arith.mulf %342, %345 : vector<32x256xf32>
      %c9_i32_246 = arith.constant 9 : i32
      %347 = arith.muli %306, %c9_i32_246 : i32
      %c3_i32_247 = arith.constant 3 : i32
      %348 = arith.addi %347, %c3_i32_247 : i32
      %349 = arith.index_cast %348 : i32 to index
      %c0_248 = arith.constant 0 : index
      %c0_249 = arith.constant 0 : index
      %350 = vector.load %arg2[%349, %c0_248, %c0_249] : memref<54x32x32xf32, #tpu.memory_space<vmem>>, vector<1x32x32xf32>
      %351 = vector.shape_cast %350 : vector<1x32x32xf32> to vector<32x32xf32>
      %cst_250 = arith.constant dense<0.000000e+00> : vector<32x256xf32>
      %352 = tpu.matmul %351, %346, %cst_250 {dimension_numbers = #tpu.dot_dimension_numbers<[1], [0], [0], [1], [0, 0, 1, 1], [], []>} : vector<32x32xf32>, vector<32x256xf32>, vector<32x256xf32> -> vector<32x256xf32>
      %353 = arith.addf %341, %352 : vector<32x256xf32>
      %c9_i32_251 = arith.constant 9 : i32
      %354 = arith.muli %306, %c9_i32_251 : i32
      %c4_i32_252 = arith.constant 4 : i32
      %355 = arith.addi %354, %c4_i32_252 : i32
      %356 = arith.index_cast %355 : i32 to index
      %c0_253 = arith.constant 0 : index
      %c0_254 = arith.constant 0 : index
      %357 = vector.load %arg2[%356, %c0_253, %c0_254] : memref<54x32x32xf32, #tpu.memory_space<vmem>>, vector<1x32x32xf32>
      %358 = vector.shape_cast %357 : vector<1x32x32xf32> to vector<32x32xf32>
      %cst_255 = arith.constant dense<0.000000e+00> : vector<32x256xf32>
      %359 = tpu.matmul %358, %304, %cst_255 {dimension_numbers = #tpu.dot_dimension_numbers<[1], [0], [0], [1], [0, 0, 1, 1], [], []>} : vector<32x32xf32>, vector<32x256xf32>, vector<32x256xf32> -> vector<32x256xf32>
      %360 = arith.addf %353, %359 : vector<32x256xf32>
      %c255_i32_256 = arith.constant 255 : i32
      %361 = tpu.dynamic_rotate %304 by %c255_i32_256 dim 1 : vector<32x256xf32>, i32 -> vector<32x256xf32>
      %c5_257 = arith.constant 5 : index
      %c0_258 = arith.constant 0 : index
      %c0_259 = arith.constant 0 : index
      %362 = vector.load %arg6[%c5_257, %c0_258, %c0_259] : memref<9x1x256xf32, #tpu.memory_space<vmem>>, vector<1x1x256xf32>
      %363 = vector.shape_cast %362 : vector<1x1x256xf32> to vector<1x256xf32>
      %364 = vector.broadcast %363 : vector<1x256xf32> to vector<32x256xf32>
      %365 = arith.mulf %361, %364 : vector<32x256xf32>
      %c9_i32_260 = arith.constant 9 : i32
      %366 = arith.muli %306, %c9_i32_260 : i32
      %c5_i32_261 = arith.constant 5 : i32
      %367 = arith.addi %366, %c5_i32_261 : i32
      %368 = arith.index_cast %367 : i32 to index
      %c0_262 = arith.constant 0 : index
      %c0_263 = arith.constant 0 : index
      %369 = vector.load %arg2[%368, %c0_262, %c0_263] : memref<54x32x32xf32, #tpu.memory_space<vmem>>, vector<1x32x32xf32>
      %370 = vector.shape_cast %369 : vector<1x32x32xf32> to vector<32x32xf32>
      %cst_264 = arith.constant dense<0.000000e+00> : vector<32x256xf32>
      %371 = tpu.matmul %370, %365, %cst_264 {dimension_numbers = #tpu.dot_dimension_numbers<[1], [0], [0], [1], [0, 0, 1, 1], [], []>} : vector<32x32xf32>, vector<32x256xf32>, vector<32x256xf32> -> vector<32x256xf32>
      %372 = arith.addf %360, %371 : vector<32x256xf32>
      %c241_i32_265 = arith.constant 241 : i32
      %373 = tpu.dynamic_rotate %304 by %c241_i32_265 dim 1 : vector<32x256xf32>, i32 -> vector<32x256xf32>
      %c6_266 = arith.constant 6 : index
      %c0_267 = arith.constant 0 : index
      %c0_268 = arith.constant 0 : index
      %374 = vector.load %arg6[%c6_266, %c0_267, %c0_268] : memref<9x1x256xf32, #tpu.memory_space<vmem>>, vector<1x1x256xf32>
      %375 = vector.shape_cast %374 : vector<1x1x256xf32> to vector<1x256xf32>
      %376 = vector.broadcast %375 : vector<1x256xf32> to vector<32x256xf32>
      %377 = arith.mulf %373, %376 : vector<32x256xf32>
      %c9_i32_269 = arith.constant 9 : i32
      %378 = arith.muli %306, %c9_i32_269 : i32
      %c6_i32_270 = arith.constant 6 : i32
      %379 = arith.addi %378, %c6_i32_270 : i32
      %380 = arith.index_cast %379 : i32 to index
      %c0_271 = arith.constant 0 : index
      %c0_272 = arith.constant 0 : index
      %381 = vector.load %arg2[%380, %c0_271, %c0_272] : memref<54x32x32xf32, #tpu.memory_space<vmem>>, vector<1x32x32xf32>
      %382 = vector.shape_cast %381 : vector<1x32x32xf32> to vector<32x32xf32>
      %cst_273 = arith.constant dense<0.000000e+00> : vector<32x256xf32>
      %383 = tpu.matmul %382, %377, %cst_273 {dimension_numbers = #tpu.dot_dimension_numbers<[1], [0], [0], [1], [0, 0, 1, 1], [], []>} : vector<32x32xf32>, vector<32x256xf32>, vector<32x256xf32> -> vector<32x256xf32>
      %384 = arith.addf %372, %383 : vector<32x256xf32>
      %c240_i32_274 = arith.constant 240 : i32
      %385 = tpu.dynamic_rotate %304 by %c240_i32_274 dim 1 : vector<32x256xf32>, i32 -> vector<32x256xf32>
      %c7_275 = arith.constant 7 : index
      %c0_276 = arith.constant 0 : index
      %c0_277 = arith.constant 0 : index
      %386 = vector.load %arg6[%c7_275, %c0_276, %c0_277] : memref<9x1x256xf32, #tpu.memory_space<vmem>>, vector<1x1x256xf32>
      %387 = vector.shape_cast %386 : vector<1x1x256xf32> to vector<1x256xf32>
      %388 = vector.broadcast %387 : vector<1x256xf32> to vector<32x256xf32>
      %389 = arith.mulf %385, %388 : vector<32x256xf32>
      %c9_i32_278 = arith.constant 9 : i32
      %390 = arith.muli %306, %c9_i32_278 : i32
      %c7_i32_279 = arith.constant 7 : i32
      %391 = arith.addi %390, %c7_i32_279 : i32
      %392 = arith.index_cast %391 : i32 to index
      %c0_280 = arith.constant 0 : index
      %c0_281 = arith.constant 0 : index
      %393 = vector.load %arg2[%392, %c0_280, %c0_281] : memref<54x32x32xf32, #tpu.memory_space<vmem>>, vector<1x32x32xf32>
      %394 = vector.shape_cast %393 : vector<1x32x32xf32> to vector<32x32xf32>
      %cst_282 = arith.constant dense<0.000000e+00> : vector<32x256xf32>
      %395 = tpu.matmul %394, %389, %cst_282 {dimension_numbers = #tpu.dot_dimension_numbers<[1], [0], [0], [1], [0, 0, 1, 1], [], []>} : vector<32x32xf32>, vector<32x256xf32>, vector<32x256xf32> -> vector<32x256xf32>
      %396 = arith.addf %384, %395 : vector<32x256xf32>
      %c239_i32_283 = arith.constant 239 : i32
      %397 = tpu.dynamic_rotate %304 by %c239_i32_283 dim 1 : vector<32x256xf32>, i32 -> vector<32x256xf32>
      %c8_284 = arith.constant 8 : index
      %c0_285 = arith.constant 0 : index
      %c0_286 = arith.constant 0 : index
      %398 = vector.load %arg6[%c8_284, %c0_285, %c0_286] : memref<9x1x256xf32, #tpu.memory_space<vmem>>, vector<1x1x256xf32>
      %399 = vector.shape_cast %398 : vector<1x1x256xf32> to vector<1x256xf32>
      %400 = vector.broadcast %399 : vector<1x256xf32> to vector<32x256xf32>
      %401 = arith.mulf %397, %400 : vector<32x256xf32>
      %c9_i32_287 = arith.constant 9 : i32
      %402 = arith.muli %306, %c9_i32_287 : i32
      %c8_i32_288 = arith.constant 8 : i32
      %403 = arith.addi %402, %c8_i32_288 : i32
      %404 = arith.index_cast %403 : i32 to index
      %c0_289 = arith.constant 0 : index
      %c0_290 = arith.constant 0 : index
      %405 = vector.load %arg2[%404, %c0_289, %c0_290] : memref<54x32x32xf32, #tpu.memory_space<vmem>>, vector<1x32x32xf32>
      %406 = vector.shape_cast %405 : vector<1x32x32xf32> to vector<32x32xf32>
      %cst_291 = arith.constant dense<0.000000e+00> : vector<32x256xf32>
      %407 = tpu.matmul %406, %401, %cst_291 {dimension_numbers = #tpu.dot_dimension_numbers<[1], [0], [0], [1], [0, 0, 1, 1], [], []>} : vector<32x32xf32>, vector<32x256xf32>, vector<32x256xf32> -> vector<32x256xf32>
      %408 = arith.addf %396, %407 : vector<32x256xf32>
      %409 = arith.index_cast %306 : i32 to index
      %c0_292 = arith.constant 0 : index
      %c0_293 = arith.constant 0 : index
      %410 = vector.load %arg3[%409, %c0_292, %c0_293] : memref<6x32x1xf32, #tpu.memory_space<vmem>>, vector<1x32x1xf32>
      %411 = vector.shape_cast %410 : vector<1x32x1xf32> to vector<32x1xf32>
      %412 = vector.broadcast %411 : vector<32x1xf32> to vector<32x256xf32>
      %413 = arith.addf %408, %412 : vector<32x256xf32>
      %414 = arith.addf %arg9, %413 : vector<32x256xf32>
      scf.yield %414 : vector<32x256xf32>
    }
    %c2_i32_57 = arith.constant 2 : i32
    %c17_i32_58 = arith.constant 17 : i32
    %83 = tpu.dynamic_rotate %82 by %c17_i32_58 dim 1 : vector<32x256xf32>, i32 -> vector<32x256xf32>
    %c0_59 = arith.constant 0 : index
    %c0_60 = arith.constant 0 : index
    %c0_61 = arith.constant 0 : index
    %84 = vector.load %arg6[%c0_59, %c0_60, %c0_61] : memref<9x1x256xf32, #tpu.memory_space<vmem>>, vector<1x1x256xf32>
    %85 = vector.shape_cast %84 : vector<1x1x256xf32> to vector<1x256xf32>
    %86 = vector.broadcast %85 : vector<1x256xf32> to vector<32x256xf32>
    %87 = arith.mulf %83, %86 : vector<32x256xf32>
    %c45 = arith.constant 45 : index
    %c0_62 = arith.constant 0 : index
    %c0_63 = arith.constant 0 : index
    %88 = vector.load %arg2[%c45, %c0_62, %c0_63] : memref<54x32x32xf32, #tpu.memory_space<vmem>>, vector<1x32x32xf32>
    %89 = vector.shape_cast %88 : vector<1x32x32xf32> to vector<32x32xf32>
    %cst_64 = arith.constant dense<0.000000e+00> : vector<32x256xf32>
    %90 = tpu.matmul %89, %87, %cst_64 {dimension_numbers = #tpu.dot_dimension_numbers<[1], [0], [0], [1], [0, 0, 1, 1], [], []>} : vector<32x32xf32>, vector<32x256xf32>, vector<32x256xf32> -> vector<32x256xf32>
    %c16_i32_65 = arith.constant 16 : i32
    %91 = tpu.dynamic_rotate %82 by %c16_i32_65 dim 1 : vector<32x256xf32>, i32 -> vector<32x256xf32>
    %c1_66 = arith.constant 1 : index
    %c0_67 = arith.constant 0 : index
    %c0_68 = arith.constant 0 : index
    %92 = vector.load %arg6[%c1_66, %c0_67, %c0_68] : memref<9x1x256xf32, #tpu.memory_space<vmem>>, vector<1x1x256xf32>
    %93 = vector.shape_cast %92 : vector<1x1x256xf32> to vector<1x256xf32>
    %94 = vector.broadcast %93 : vector<1x256xf32> to vector<32x256xf32>
    %95 = arith.mulf %91, %94 : vector<32x256xf32>
    %c46 = arith.constant 46 : index
    %c0_69 = arith.constant 0 : index
    %c0_70 = arith.constant 0 : index
    %96 = vector.load %arg2[%c46, %c0_69, %c0_70] : memref<54x32x32xf32, #tpu.memory_space<vmem>>, vector<1x32x32xf32>
    %97 = vector.shape_cast %96 : vector<1x32x32xf32> to vector<32x32xf32>
    %cst_71 = arith.constant dense<0.000000e+00> : vector<32x256xf32>
    %98 = tpu.matmul %97, %95, %cst_71 {dimension_numbers = #tpu.dot_dimension_numbers<[1], [0], [0], [1], [0, 0, 1, 1], [], []>} : vector<32x32xf32>, vector<32x256xf32>, vector<32x256xf32> -> vector<32x256xf32>
    %99 = arith.addf %90, %98 : vector<32x256xf32>
    %c15_i32_72 = arith.constant 15 : i32
    %100 = tpu.dynamic_rotate %82 by %c15_i32_72 dim 1 : vector<32x256xf32>, i32 -> vector<32x256xf32>
    %c2_73 = arith.constant 2 : index
    %c0_74 = arith.constant 0 : index
    %c0_75 = arith.constant 0 : index
    %101 = vector.load %arg6[%c2_73, %c0_74, %c0_75] : memref<9x1x256xf32, #tpu.memory_space<vmem>>, vector<1x1x256xf32>
    %102 = vector.shape_cast %101 : vector<1x1x256xf32> to vector<1x256xf32>
    %103 = vector.broadcast %102 : vector<1x256xf32> to vector<32x256xf32>
    %104 = arith.mulf %100, %103 : vector<32x256xf32>
    %c47 = arith.constant 47 : index
    %c0_76 = arith.constant 0 : index
    %c0_77 = arith.constant 0 : index
    %105 = vector.load %arg2[%c47, %c0_76, %c0_77] : memref<54x32x32xf32, #tpu.memory_space<vmem>>, vector<1x32x32xf32>
    %106 = vector.shape_cast %105 : vector<1x32x32xf32> to vector<32x32xf32>
    %cst_78 = arith.constant dense<0.000000e+00> : vector<32x256xf32>
    %107 = tpu.matmul %106, %104, %cst_78 {dimension_numbers = #tpu.dot_dimension_numbers<[1], [0], [0], [1], [0, 0, 1, 1], [], []>} : vector<32x32xf32>, vector<32x256xf32>, vector<32x256xf32> -> vector<32x256xf32>
    %108 = arith.addf %99, %107 : vector<32x256xf32>
    %c1_i32_79 = arith.constant 1 : i32
    %109 = tpu.dynamic_rotate %82 by %c1_i32_79 dim 1 : vector<32x256xf32>, i32 -> vector<32x256xf32>
    %c3_80 = arith.constant 3 : index
    %c0_81 = arith.constant 0 : index
    %c0_82 = arith.constant 0 : index
    %110 = vector.load %arg6[%c3_80, %c0_81, %c0_82] : memref<9x1x256xf32, #tpu.memory_space<vmem>>, vector<1x1x256xf32>
    %111 = vector.shape_cast %110 : vector<1x1x256xf32> to vector<1x256xf32>
    %112 = vector.broadcast %111 : vector<1x256xf32> to vector<32x256xf32>
    %113 = arith.mulf %109, %112 : vector<32x256xf32>
    %c48 = arith.constant 48 : index
    %c0_83 = arith.constant 0 : index
    %c0_84 = arith.constant 0 : index
    %114 = vector.load %arg2[%c48, %c0_83, %c0_84] : memref<54x32x32xf32, #tpu.memory_space<vmem>>, vector<1x32x32xf32>
    %115 = vector.shape_cast %114 : vector<1x32x32xf32> to vector<32x32xf32>
    %cst_85 = arith.constant dense<0.000000e+00> : vector<32x256xf32>
    %116 = tpu.matmul %115, %113, %cst_85 {dimension_numbers = #tpu.dot_dimension_numbers<[1], [0], [0], [1], [0, 0, 1, 1], [], []>} : vector<32x32xf32>, vector<32x256xf32>, vector<32x256xf32> -> vector<32x256xf32>
    %117 = arith.addf %108, %116 : vector<32x256xf32>
    %c49 = arith.constant 49 : index
    %c0_86 = arith.constant 0 : index
    %c0_87 = arith.constant 0 : index
    %118 = vector.load %arg2[%c49, %c0_86, %c0_87] : memref<54x32x32xf32, #tpu.memory_space<vmem>>, vector<1x32x32xf32>
    %119 = vector.shape_cast %118 : vector<1x32x32xf32> to vector<32x32xf32>
    %cst_88 = arith.constant dense<0.000000e+00> : vector<32x256xf32>
    %120 = tpu.matmul %119, %82, %cst_88 {dimension_numbers = #tpu.dot_dimension_numbers<[1], [0], [0], [1], [0, 0, 1, 1], [], []>} : vector<32x32xf32>, vector<32x256xf32>, vector<32x256xf32> -> vector<32x256xf32>
    %121 = arith.addf %117, %120 : vector<32x256xf32>
    %c255_i32_89 = arith.constant 255 : i32
    %122 = tpu.dynamic_rotate %82 by %c255_i32_89 dim 1 : vector<32x256xf32>, i32 -> vector<32x256xf32>
    %c5_90 = arith.constant 5 : index
    %c0_91 = arith.constant 0 : index
    %c0_92 = arith.constant 0 : index
    %123 = vector.load %arg6[%c5_90, %c0_91, %c0_92] : memref<9x1x256xf32, #tpu.memory_space<vmem>>, vector<1x1x256xf32>
    %124 = vector.shape_cast %123 : vector<1x1x256xf32> to vector<1x256xf32>
    %125 = vector.broadcast %124 : vector<1x256xf32> to vector<32x256xf32>
    %126 = arith.mulf %122, %125 : vector<32x256xf32>
    %c50 = arith.constant 50 : index
    %c0_93 = arith.constant 0 : index
    %c0_94 = arith.constant 0 : index
    %127 = vector.load %arg2[%c50, %c0_93, %c0_94] : memref<54x32x32xf32, #tpu.memory_space<vmem>>, vector<1x32x32xf32>
    %128 = vector.shape_cast %127 : vector<1x32x32xf32> to vector<32x32xf32>
    %cst_95 = arith.constant dense<0.000000e+00> : vector<32x256xf32>
    %129 = tpu.matmul %128, %126, %cst_95 {dimension_numbers = #tpu.dot_dimension_numbers<[1], [0], [0], [1], [0, 0, 1, 1], [], []>} : vector<32x32xf32>, vector<32x256xf32>, vector<32x256xf32> -> vector<32x256xf32>
    %130 = arith.addf %121, %129 : vector<32x256xf32>
    %c241_i32_96 = arith.constant 241 : i32
    %131 = tpu.dynamic_rotate %82 by %c241_i32_96 dim 1 : vector<32x256xf32>, i32 -> vector<32x256xf32>
    %c6_97 = arith.constant 6 : index
    %c0_98 = arith.constant 0 : index
    %c0_99 = arith.constant 0 : index
    %132 = vector.load %arg6[%c6_97, %c0_98, %c0_99] : memref<9x1x256xf32, #tpu.memory_space<vmem>>, vector<1x1x256xf32>
    %133 = vector.shape_cast %132 : vector<1x1x256xf32> to vector<1x256xf32>
    %134 = vector.broadcast %133 : vector<1x256xf32> to vector<32x256xf32>
    %135 = arith.mulf %131, %134 : vector<32x256xf32>
    %c51 = arith.constant 51 : index
    %c0_100 = arith.constant 0 : index
    %c0_101 = arith.constant 0 : index
    %136 = vector.load %arg2[%c51, %c0_100, %c0_101] : memref<54x32x32xf32, #tpu.memory_space<vmem>>, vector<1x32x32xf32>
    %137 = vector.shape_cast %136 : vector<1x32x32xf32> to vector<32x32xf32>
    %cst_102 = arith.constant dense<0.000000e+00> : vector<32x256xf32>
    %138 = tpu.matmul %137, %135, %cst_102 {dimension_numbers = #tpu.dot_dimension_numbers<[1], [0], [0], [1], [0, 0, 1, 1], [], []>} : vector<32x32xf32>, vector<32x256xf32>, vector<32x256xf32> -> vector<32x256xf32>
    %139 = arith.addf %130, %138 : vector<32x256xf32>
    %c240_i32_103 = arith.constant 240 : i32
    %140 = tpu.dynamic_rotate %82 by %c240_i32_103 dim 1 : vector<32x256xf32>, i32 -> vector<32x256xf32>
    %c7_104 = arith.constant 7 : index
    %c0_105 = arith.constant 0 : index
    %c0_106 = arith.constant 0 : index
    %141 = vector.load %arg6[%c7_104, %c0_105, %c0_106] : memref<9x1x256xf32, #tpu.memory_space<vmem>>, vector<1x1x256xf32>
    %142 = vector.shape_cast %141 : vector<1x1x256xf32> to vector<1x256xf32>
    %143 = vector.broadcast %142 : vector<1x256xf32> to vector<32x256xf32>
    %144 = arith.mulf %140, %143 : vector<32x256xf32>
    %c52 = arith.constant 52 : index
    %c0_107 = arith.constant 0 : index
    %c0_108 = arith.constant 0 : index
    %145 = vector.load %arg2[%c52, %c0_107, %c0_108] : memref<54x32x32xf32, #tpu.memory_space<vmem>>, vector<1x32x32xf32>
    %146 = vector.shape_cast %145 : vector<1x32x32xf32> to vector<32x32xf32>
    %cst_109 = arith.constant dense<0.000000e+00> : vector<32x256xf32>
    %147 = tpu.matmul %146, %144, %cst_109 {dimension_numbers = #tpu.dot_dimension_numbers<[1], [0], [0], [1], [0, 0, 1, 1], [], []>} : vector<32x32xf32>, vector<32x256xf32>, vector<32x256xf32> -> vector<32x256xf32>
    %148 = arith.addf %139, %147 : vector<32x256xf32>
    %c239_i32_110 = arith.constant 239 : i32
    %149 = tpu.dynamic_rotate %82 by %c239_i32_110 dim 1 : vector<32x256xf32>, i32 -> vector<32x256xf32>
    %c8_111 = arith.constant 8 : index
    %c0_112 = arith.constant 0 : index
    %c0_113 = arith.constant 0 : index
    %150 = vector.load %arg6[%c8_111, %c0_112, %c0_113] : memref<9x1x256xf32, #tpu.memory_space<vmem>>, vector<1x1x256xf32>
    %151 = vector.shape_cast %150 : vector<1x1x256xf32> to vector<1x256xf32>
    %152 = vector.broadcast %151 : vector<1x256xf32> to vector<32x256xf32>
    %153 = arith.mulf %149, %152 : vector<32x256xf32>
    %c53 = arith.constant 53 : index
    %c0_114 = arith.constant 0 : index
    %c0_115 = arith.constant 0 : index
    %154 = vector.load %arg2[%c53, %c0_114, %c0_115] : memref<54x32x32xf32, #tpu.memory_space<vmem>>, vector<1x32x32xf32>
    %155 = vector.shape_cast %154 : vector<1x32x32xf32> to vector<32x32xf32>
    %cst_116 = arith.constant dense<0.000000e+00> : vector<32x256xf32>
    %156 = tpu.matmul %155, %153, %cst_116 {dimension_numbers = #tpu.dot_dimension_numbers<[1], [0], [0], [1], [0, 0, 1, 1], [], []>} : vector<32x32xf32>, vector<32x256xf32>, vector<32x256xf32> -> vector<32x256xf32>
    %157 = arith.addf %148, %156 : vector<32x256xf32>
    %c5_117 = arith.constant 5 : index
    %c0_118 = arith.constant 0 : index
    %c0_119 = arith.constant 0 : index
    %158 = vector.load %arg3[%c5_117, %c0_118, %c0_119] : memref<6x32x1xf32, #tpu.memory_space<vmem>>, vector<1x32x1xf32>
    %159 = vector.shape_cast %158 : vector<1x32x1xf32> to vector<32x1xf32>
    %160 = vector.broadcast %159 : vector<32x1xf32> to vector<32x256xf32>
    %161 = arith.addf %157, %160 : vector<32x256xf32>
    %162 = vector.extract_strided_slice %161 {offsets = [0, 0], sizes = [3, 256], strides = [1, 1]} : vector<32x256xf32> to vector<3x256xf32>
    %c0_120 = arith.constant 0 : index
    %c0_121 = arith.constant 0 : index
    %c0_122 = arith.constant 0 : index
    %163 = vector.load %arg7[%c0_120, %c0_121, %c0_122] : memref<1x3x256xf32, #tpu.memory_space<vmem>>, vector<1x3x256xf32>
    %164 = vector.shape_cast %163 : vector<1x3x256xf32> to vector<3x256xf32>
    %165 = vector.shape_cast %162 : vector<3x256xf32> to vector<1x3x256xf32>
    tpu.vector_store %arg7[%c0_120, %c0_121, %c0_122], %165 {strides = array<i32>} : memref<1x3x256xf32, #tpu.memory_space<vmem>>, vector<1x3x256xf32>,
    return
  }
  func.func @transform_0(%arg0: i32) -> (i32, i32, i32) {
    %c0_i32 = arith.constant 0 : i32
    %c0_i32_0 = arith.constant 0 : i32
    %c0_i32_1 = arith.constant 0 : i32
    return %arg0, %c0_i32, %c0_i32_0 : i32, i32, i32
  }
  func.func @transform_1(%arg0: i32) -> (i32, i32, i32) {
    %c0_i32 = arith.constant 0 : i32
    %c0_i32_0 = arith.constant 0 : i32
    %c0_i32_1 = arith.constant 0 : i32
    %c0_i32_2 = arith.constant 0 : i32
    return %c0_i32, %c0_i32_0, %c0_i32_1 : i32, i32, i32
  }
  func.func @transform_2(%arg0: i32) -> (i32, i32, i32) {
    %c0_i32 = arith.constant 0 : i32
    %c0_i32_0 = arith.constant 0 : i32
    %c0_i32_1 = arith.constant 0 : i32
    %c0_i32_2 = arith.constant 0 : i32
    return %c0_i32, %c0_i32_0, %c0_i32_1 : i32, i32, i32
  }
  func.func @transform_3(%arg0: i32) -> (i32, i32, i32) {
    %c0_i32 = arith.constant 0 : i32
    %c0_i32_0 = arith.constant 0 : i32
    %c0_i32_1 = arith.constant 0 : i32
    %c0_i32_2 = arith.constant 0 : i32
    return %c0_i32, %c0_i32_0, %c0_i32_1 : i32, i32, i32
  }
  func.func @transform_4(%arg0: i32) -> (i32, i32, i32) {
    %c0_i32 = arith.constant 0 : i32
    %c0_i32_0 = arith.constant 0 : i32
    %c0_i32_1 = arith.constant 0 : i32
    %c0_i32_2 = arith.constant 0 : i32
    return %c0_i32, %c0_i32_0, %c0_i32_1 : i32, i32, i32
  }
  func.func @transform_5(%arg0: i32) -> (i32, i32, i32) {
    %c0_i32 = arith.constant 0 : i32
    %c0_i32_0 = arith.constant 0 : i32
    %c0_i32_1 = arith.constant 0 : i32
    %c0_i32_2 = arith.constant 0 : i32
    return %c0_i32, %c0_i32_0, %c0_i32_1 : i32, i32, i32
  }
  func.func @transform_6(%arg0: i32) -> (i32, i32, i32) {
    %c0_i32 = arith.constant 0 : i32
    %c0_i32_0 = arith.constant 0 : i32
    %c0_i32_1 = arith.constant 0 : i32
    return %arg0, %c0_i32, %c0_i32_0 : i32, i32, i32
  }
}

</mosaic_0001>

<bundles_post_ra>
// kernel: tpu_custom_call.1
= control target key start
LH: loop header
LB: loop body
LE: loop exit
PB: predicated region body
PF: predicated region fallthrough
CT: control target
= control target key end

     0   :  { %s7092_s21 = smov 0   ;;  %s9411_s0 = inlined_call_operand.vmem [shape: f32[2,32,256], index: 0, kind: input, shape index: {}]   ;;  %s9412_s1 = inlined_call_operand.vmem [shape: f32[54,32,32], index: 1, kind: input, shape index: {}]   ;;  %s9413_s2 = inlined_call_operand.vmem [shape: f32[6,32,1], index: 2, kind: input, shape index: {}]   ;;  %s9414_s3 = inlined_call_operand.vmem [shape: f32[4,32,1], index: 3, kind: input, shape index: {}]   ;;  %s9415_s4 = inlined_call_operand.vmem [shape: f32[4,32,1], index: 4, kind: input, shape index: {}]   ;;  %s9416_s5 = inlined_call_operand.vmem [shape: f32[9,1,256], index: 5, kind: input, shape index: {}]   ;;  %s9417_s6 = inlined_call_operand.vmem [shape: f32[2,3,256], index: 6, kind: output, shape index: {}]  }
   0x1 LB: > { %s5953_s22 = sadd.s32 4294967295, %s6999_s21   ;;  %p5957_p0 = scmp.ge.s32.totalorder %s6999_s21, 1  ;;  %s6999_s21 = sphi %s7092_s21, %s16_s21  }
   0x2   : > { %p212_p1 = scmp.lt.s32.totalorder %s6999_s21, 3 }
   0x4   : > { %p213_p2 = pnand %p5957_p0, %p212_p1 }
   0x6   : > { %216 = sbr.rel (%p213_p2) target bundleno = 2084 (0x824), region = 44 }
   0xd   : > { %p242_p3 = scmp.lt.s32.totalorder %s5953_s22, 1  ;;  %s7037_s7 = smov 16   ;;  %v9427_v12 = vmov 0.0   ;;  %vm362_vm0 = vcmask 261120   ;;  %v5993_v13 = vld [vmem:[%s9412_s1 + $0x80] sm:$0xff]  ;;  %v5994_v14 = vld [vmem:[%s9412_s1 + $0x88] sm:$0xff]  ;;  %v276_v15 = vlaneseq }
   0xe   : > { %966 = vmatprep.mubr.f32.mxu0 %v9427_v12  ;;  %439 = vmatprep.mubr.f32.mxu1 %v9427_v12  ;;  %s7039_s10 = smov 127   ;;  %s7040_s11 = smov 17   ;;  %v5962_v19 = vld [vmem:[%s9416_s5 + $0x2] sm:$0x3]  ;;  %v6001_v49 = vld [vmem:[%s9416_s5 + $0xa] sm:$0x3] }
   0xf   : > { %s9483_s22 = smov (!%p242_p3, %s5953_s22), 1  ;;  %s7041_s14 = smov 113   ;;  %v290_v16 = vshrl.u32 %v276_v15, 7  ;;  %v7268_v17 = vand.u32 127, %v276_v15  ;;  %v1639_v56 = vld [vmem:[%s9413_s2] sm:$0xff]  ;;  %v1640_v57 = vld [vmem:[%s9413_s2 + $0x8] sm:$0xff] }
  0x10   : > { %s6341_s23 = sshll.u32 %s9483_s22, 6  ;;  %s6342_s24 = sshll.u32 %s9483_s22, 3  ;;  %v5963_v58 = vld [vmem:[%s9412_s1 + $0x20] sm:$0xff]  ;;  %v9426_v59 = vmov 0  }
  0x11   : > { %s246_s27 = scalar_lea.vmem %s9411_s0, %s6341_s23  ;;  %s7106_s30 = scalar_lea.vmem %s9417_s6, %s6342_s24  ;;  %v7270_v18 = vsub.s32 0, %v290_v16  ;;  %v7279_v20 = vsub.s32 1, %v290_v16  ;;  %vm327_vm1 = vcmp.lt.s32.totalorder %v7268_v17, 16  ;;  %vm1015_vm2 = vcmp.lt.s32.totalorder %v7268_v17, 127  ;;  %6952 = vset.pattern.permute.xlu0 %v9426_v59  ;;  %6953 = vset.pattern.permute.xlu1 %v9426_v59 }
  0x12   : > { %v7108_v0 = vld [vmem:[%s246_s27 + $0x8] sm:$0xff]  ;;  %v7110_v1 = vld [vmem:[%s246_s27] sm:$0xff]  ;;  %v7116_v2 = vld [vmem:[%s246_s27 + $0x18] sm:$0xff]  ;;  %s9424_s15 = smov 15   ;;  %s9422_s16 = smov 112   ;;  %vm278_vm3 = vcmp.lt.s32.totalorder %v7268_v17, 17 }
  0x13   : > { %319 = vrot.lane.b32.xlu1 %v7108_v0, %s7037_s7  ;;  %311 = vrot.lane.b32.xlu0 %v7110_v1, %s7037_s7  ;;  %v7118_v3 = vld [vmem:[%s246_s27 + $0x10] sm:$0xff]  ;;  %v7122_v4 = vpack.c.bf16 %v7116_v2, %v7108_v0  ;;  %v7134_v7 = vld [vmem:[%s246_s27 + $0x20] sm:$0xff]  ;;  %s9420_s17 = smov 1   ;;  %9445 = vst [vmem:[#allocation2_spill] sm:$0xff] %v7270_v18  ;;  %s9418_s18 = smov 111   ;;  %9446 = vst [vmem:[#allocation3_spill] sm:$0xff] %v7279_v20  ;;  %v7283_v23 = vrot.slane %v5962_v19, %v7270_v18 }
  0x14   : > { %v7130_v5 = vpack.c.bf16 %v7118_v3, %v7110_v1  ;;  %v7132_v6 = vld [vmem:[%s246_s27 + $0x30] sm:$0xff]  ;;  %v7137_v8 = vld [vmem:[%s246_s27 + $0x38] sm:$0xff]  ;;  %v7139_v9 = vld [vmem:[%s246_s27 + $0x28] sm:$0xff]  ;;  %v7292_v25 = vrot.slane %v5962_v19, %v7279_v20  ;;  %v7329_v54 = vrot.slane %v6001_v49, %v7270_v18  ;;  %v7332_v55 = vrot.slane %v6001_v49, %v7279_v20  ;;  %s7764_s28 = smov 0  }
  0x15   : > { %6381 = vmatprep.subr.bf16.mxu0 %v7122_v4  ;;  %v7144_v10 = vpack.c.bf16 %v7137_v8, %v7139_v9  ;;  %v7152_v11 = vpack.c.bf16 %v7132_v6, %v7134_v7  ;;  %vm1175_vm4 = vcmp.lt.s32.totalorder %v7268_v17, 113  ;;  %vm581_vm5 = vcmp.lt.s32.totalorder %v7268_v17, 15 }
  0x16   : > { %6383 = vmatpush1.bf16.msra.mxu0 %v7130_v5  ;;  %vm1335_vm6 = vcmp.lt.s32.totalorder %v7268_v17, 112  ;;  %vm741_vm7 = vcmp.lt.s32.totalorder %v7268_v17, 1  ;;  %vm1495_vm8 = vcmp.lt.s32.totalorder %v7268_v17, 111 }
  0x17   : > { %321 = vrot.lane.b32.xlu1 %v7116_v2, %s7037_s7  ;;  %313 = vrot.lane.b32.xlu0 %v7118_v3, %s7037_s7 }
  0x18   : > { %6385 = vmatprep.subr.bf16.mxu0 %v7144_v10 }
  0x1a   : > { %6387 = vmatpush1.bf16.msra.mxu0 %v7152_v11 }
  0x1b   : > { %317 = vrot.lane.b32.xlu1 %v7132_v6, %s7037_s7  ;;  %315 = vrot.lane.b32.xlu0 %v7134_v7, %s7037_s7 }
  0x1d   : > { %5997 = vmatmul.mubr.msk.f32.vlgmr.msra.gmra.mrb[0].mxu0 %vm362_vm0, %v5993_v13  ;;  %v5964_v13 = vld [vmem:[%s9412_s1 + $0x28] sm:$0xff] }
  0x1e   : > { %972 = vmatprep.mubr.f32.mxu0 %v9427_v12 }
  0x1f   : > { %325 = vrot.lane.b32.xlu1 %v7137_v8, %s7037_s7  ;;  %323 = vrot.lane.b32.xlu0 %v7139_v9, %s7037_s7 }
  0x21   : > { %5998 = vmatmul.mubr.msk.f32.gmra.mrb[2].mxu0 %vm362_vm0, %v5994_v14 }
  0x22   : > { %1126 = vmatprep.mubr.f32.mxu0 %v9427_v12 }
  0x23   : > { %1001 = vrot.lane.b32.xlu1 %v7118_v3, %s7039_s10  ;;  %999 = vrot.lane.b32.xlu0 %v7110_v1, %s7039_s10 }
  0x27   : > { %1009 = vrot.lane.b32.xlu1 %v7116_v2, %s7039_s10  ;;  %1007 = vrot.lane.b32.xlu0 %v7108_v0, %s7039_s10 }
  0x2b   : > { %1005 = vrot.lane.b32.xlu1 %v7132_v6, %s7039_s10  ;;  %1003 = vrot.lane.b32.xlu0 %v7134_v7, %s7039_s10 }
  0x2f   : > { %1013 = vrot.lane.b32.xlu1 %v7137_v8, %s7039_s10  ;;  %1011 = vrot.lane.b32.xlu0 %v7139_v9, %s7039_s10 }
  0x33   : > { %262 = vrot.lane.b32.xlu1 %v7118_v3, %s7040_s11  ;;  %260 = vrot.lane.b32.xlu0 %v7110_v1, %s7040_s11 }
  0x37   : > { %270 = vrot.lane.b32.xlu1 %v7116_v2, %s7040_s11  ;;  %268 = vrot.lane.b32.xlu0 %v7108_v0, %s7040_s11 }
  0x3b   : > { %266 = vrot.lane.b32.xlu1 %v7132_v6, %s7040_s11  ;;  %264 = vrot.lane.b32.xlu0 %v7134_v7, %s7040_s11 }
  0x3f   : > { %274 = vrot.lane.b32.xlu1 %v7137_v8, %s7040_s11  ;;  %272 = vrot.lane.b32.xlu0 %v7139_v9, %s7040_s11 }
  0x43   : > { %1161 = vrot.lane.b32.xlu1 %v7118_v3, %s7041_s14  ;;  %1159 = vrot.lane.b32.xlu0 %v7110_v1, %s7041_s14 }
  0x47   : > { %1169 = vrot.lane.b32.xlu1 %v7116_v2, %s7041_s14  ;;  %1167 = vrot.lane.b32.xlu0 %v7108_v0, %s7041_s14 }
  0x4b   : > { %1165 = vrot.lane.b32.xlu1 %v7132_v6, %s7041_s14  ;;  %1163 = vrot.lane.b32.xlu0 %v7134_v7, %s7041_s14 }
  0x4f   : > { %1173 = vrot.lane.b32.xlu1 %v7137_v8, %s7041_s14  ;;  %1171 = vrot.lane.b32.xlu0 %v7139_v9, %s7041_s14 }
  0x53   : > { %567 = vrot.lane.b32.xlu1 %v7118_v3, %s9424_s15  ;;  %565 = vrot.lane.b32.xlu0 %v7110_v1, %s9424_s15 }
  0x57   : > { %575 = vrot.lane.b32.xlu1 %v7116_v2, %s9424_s15  ;;  %573 = vrot.lane.b32.xlu0 %v7108_v0, %s9424_s15 }
  0x5b   : > { %571 = vrot.lane.b32.xlu1 %v7132_v6, %s9424_s15  ;;  %569 = vrot.lane.b32.xlu0 %v7134_v7, %s9424_s15 }
  0x5f   : > { %579 = vrot.lane.b32.xlu1 %v7137_v8, %s9424_s15  ;;  %577 = vrot.lane.b32.xlu0 %v7139_v9, %s9424_s15 }
  0x63   : > { %1321 = vrot.lane.b32.xlu1 %v7118_v3, %s9422_s16  ;;  %1319 = vrot.lane.b32.xlu0 %v7110_v1, %s9422_s16 }
  0x67   : > { %1329 = vrot.lane.b32.xlu1 %v7116_v2, %s9422_s16  ;;  %1327 = vrot.lane.b32.xlu0 %v7108_v0, %s9422_s16 }
  0x6b   : > { %1325 = vrot.lane.b32.xlu1 %v7132_v6, %s9422_s16  ;;  %1323 = vrot.lane.b32.xlu0 %v7134_v7, %s9422_s16 }
  0x6f   : > { %1333 = vrot.lane.b32.xlu1 %v7137_v8, %s9422_s16  ;;  %1331 = vrot.lane.b32.xlu0 %v7139_v9, %s9422_s16 }
  0x73   : > { %727 = vrot.lane.b32.xlu1 %v7118_v3, %s9420_s17  ;;  %725 = vrot.lane.b32.xlu0 %v7110_v1, %s9420_s17 }
  0x77   : > { %735 = vrot.lane.b32.xlu1 %v7116_v2, %s9420_s17  ;;  %733 = vrot.lane.b32.xlu0 %v7108_v0, %s9420_s17 }
  0x7b   : > { %731 = vrot.lane.b32.xlu1 %v7132_v6, %s9420_s17  ;;  %729 = vrot.lane.b32.xlu0 %v7134_v7, %s9420_s17 }
  0x7f   : > { %739 = vrot.lane.b32.xlu1 %v7137_v8, %s9420_s17  ;;  %737 = vrot.lane.b32.xlu0 %v7139_v9, %s9420_s17 }
  0x83   : > { %1481 = vrot.lane.b32.xlu1 %v7118_v3, %s9418_s18  ;;  %1479 = vrot.lane.b32.xlu0 %v7110_v1, %s9418_s18 }
  0x85   : > { %v320_v21 = vpop.permute.xlu1 %319  ;;  %v312_v22 = vpop.permute.xlu0 %311 }
  0x86   : > { %v332_v24 = vsel %vm327_vm1, %v320_v21, %v312_v22  ;;  %v328_v26 = vsel %vm327_vm1, %v312_v22, %v320_v21  ;;  %v5965_v21 = vld [vmem:[%s9412_s1 + $0x30] sm:$0xff] }
  0x87   : > { %1489 = vrot.lane.b32.xlu1 %v7116_v2, %s9418_s18  ;;  %1487 = vrot.lane.b32.xlu0 %v7108_v0, %s9418_s18  ;;  %v349_v29 = vmul.f32 %v7283_v23, %v332_v24  ;;  %v350_v33 = vmul.f32 %v7292_v25, %v328_v26  ;;  %v1642_v2 = vld [vmem:[%s9413_s2 + $0x18] sm:$0xff] }
  0x89   : > { %v322_v27 = vpop.permute.xlu1 %321  ;;  %v314_v28 = vpop.permute.xlu0 %313 }
  0x8a   : > { %v329_v30 = vsel %vm327_vm1, %v314_v28, %v322_v27  ;;  %v333_v31 = vsel %vm327_vm1, %v322_v27, %v314_v28 }
  0x8b   : > { %v351_v32 = vmul.f32 %v7283_v23, %v333_v31  ;;  %1485 = vrot.lane.b32.xlu1 %v7132_v6, %s9418_s18  ;;  %1483 = vrot.lane.b32.xlu0 %v7134_v7, %s9418_s18  ;;  %v352_v34 = vmul.f32 %v7292_v25, %v329_v30 }
  0x8d   : > { %v318_v35 = vpop.permute.xlu1 %317  ;;  %v316_v36 = vpop.permute.xlu0 %315  ;;  %v6348_v37 = vpack.c.bf16 %v352_v34, %v350_v33  ;;  %v6350_v38 = vpack.c.bf16 %v351_v32, %v349_v29  ;;  %v287_v34 = vld [vmem:[%s9416_s5] sm:$0x3] }
  0x8f   : > { %1493 = vrot.lane.b32.xlu1 %v7137_v8, %s9418_s18  ;;  %1491 = vrot.lane.b32.xlu0 %v7139_v9, %s9418_s18  ;;  %v1641_v9 = vld [vmem:[%s9413_s2 + $0x10] sm:$0xff] }
  0x90   : > { %6349 = vmatprep.subr.bf16.mxu1 %v6348_v37 }
  0x91   : > { %6351 = vmatpush1.bf16.msra.mxu1 %v6350_v38  ;;  %v326_v39 = vpop.permute.xlu1 %325  ;;  %v324_v40 = vpop.permute.xlu0 %323 }
  0x92   : > { %v331_v41 = vsel %vm327_vm1, %v318_v35, %v326_v39  ;;  %v335_v42 = vsel %vm327_vm1, %v326_v39, %v318_v35  ;;  %v330_v43 = vsel %vm327_vm1, %v316_v36, %v324_v40  ;;  %v334_v44 = vsel %vm327_vm1, %v324_v40, %v316_v36  ;;  %v5966_v35 = vld [vmem:[%s9412_s1 + $0x38] sm:$0xff] }
  0x93   : > { %v355_v45 = vmul.f32 %v7283_v23, %v335_v42  ;;  %v356_v46 = vmul.f32 %v7292_v25, %v331_v41  ;;  %v353_v47 = vmul.f32 %v7283_v23, %v334_v44  ;;  %v354_v48 = vmul.f32 %v7292_v25, %v330_v43  ;;  %1645 = vperm.xlu0 %6952, %v1639_v56   ;;  %v6002_v42 = vld [vmem:[%s9412_s1 + $0xa0] sm:$0xff] }
  0x94   : > { %1650 = vperm.xlu1 %6953, %v1640_v57   ;;  %v7395_v40 = vrot.slane %v287_v34, %v7270_v18  ;;  %v7398_v41 = vrot.slane %v287_v34, %v7279_v20 }
  0x95   : > { %v1002_v50 = vpop.permute.xlu1 %1001  ;;  %v1000_v51 = vpop.permute.xlu0 %999  ;;  %v6352_v52 = vpack.c.bf16 %v356_v46, %v354_v48  ;;  %v6354_v53 = vpack.c.bf16 %v355_v45, %v353_v47 }
  0x97   : > { %6353 = vmatprep.subr.bf16.mxu1 %v6352_v52  ;;  %1660 = vperm.xlu0 %6952, %v1642_v2  }
  0x98   : > { %6355 = vmatpush1.bf16.msra.mxu1 %v6354_v53  ;;  %1655 = vperm.xlu1 %6953, %v1641_v9   ;;  %v6003_v53 = vld [vmem:[%s9412_s1 + $0xa8] sm:$0xff] }
  0x99   : > { %v1010_v60 = vpop.permute.xlu1 %1009  ;;  %v1008_v61 = vpop.permute.xlu0 %1007 }
  0x9a   : > { %v1017_v62 = vsel %vm1015_vm2, %v1002_v50, %v1010_v60  ;;  %v1021_v63 = vsel %vm1015_vm2, %v1010_v60, %v1002_v50  ;;  %v1016_v0 = vsel %vm1015_vm2, %v1000_v51, %v1008_v61  ;;  %v1020_v1 = vsel %vm1015_vm2, %v1008_v61, %v1000_v51  ;;  %v6004_v61 = vld [vmem:[%s9412_s1 + $0xb0] sm:$0xff] }
  0x9b   : > { %v1039_v3 = vmul.f32 %v7329_v54, %v1017_v62  ;;  %v1040_v6 = vmul.f32 %v7332_v55, %v1021_v63  ;;  %v1037_v7 = vmul.f32 %v7329_v54, %v1016_v0  ;;  %v1038_v8 = vmul.f32 %v7332_v55, %v1020_v1  ;;  %5967 = vmatmul.mubr.msk.f32.vlgmr.msra.gmra.mrb[0].mxu1 %vm362_vm0, %v5963_v58 }
  0x9c   : > { %445 = vmatprep.mubr.f32.mxu1 %v9427_v12 }
  0x9d   : > { %v6390_v14 = vpack.c.bf16 %v1039_v3, %v1037_v7  ;;  %v1006_v15 = vpop.permute.xlu1 %1005  ;;  %v1004_v16 = vpop.permute.xlu0 %1003  ;;  %v6388_v19 = vpack.c.bf16 %v1040_v6, %v1038_v8 }
  0x9f   : > { %6389 = vmatprep.subr.bf16.mxu0 %v6388_v19  ;;  %5968 = vmatmul.mubr.msk.f32.gmra.mrb[2].mxu1 %vm362_vm0, %v5964_v13  ;;  %v6010_v13 = vld [vmem:[%s9416_s5 + $0xc] sm:$0x3] }
  0xa0   : > { %6391 = vmatpush1.bf16.msra.mxu0 %v6390_v14  ;;  %451 = vmatprep.mubr.f32.mxu1 %v9427_v12  ;;  %v6005_v14 = vld [vmem:[%s9412_s1 + $0xb8] sm:$0xff] }
  0xa1   : > { %v1014_v22 = vpop.permute.xlu1 %1013  ;;  %v1012_v24 = vpop.permute.xlu0 %1011 }
  0xa2   : > { %v1019_v26 = vsel %vm1015_vm2, %v1006_v15, %v1014_v22  ;;  %v1023_v27 = vsel %vm1015_vm2, %v1014_v22, %v1006_v15  ;;  %v1018_v28 = vsel %vm1015_vm2, %v1004_v16, %v1012_v24  ;;  %v1022_v29 = vsel %vm1015_vm2, %v1012_v24, %v1004_v16 }
  0xa3   : > { %v1043_v30 = vmul.f32 %v7329_v54, %v1019_v26  ;;  %v1044_v31 = vmul.f32 %v7332_v55, %v1023_v27  ;;  %v1041_v32 = vmul.f32 %v7329_v54, %v1018_v28  ;;  %v1042_v33 = vmul.f32 %v7332_v55, %v1022_v29  ;;  %5969 = vmatmul.mubr.msk.f32.gmra.mrb[4].mxu1 %vm362_vm0, %v5965_v21  ;;  %v307_v26 = vld [vmem:[%s9412_s1] sm:$0xff] }
  0xa4   : > { %457 = vmatprep.mubr.f32.mxu1 %v9427_v12  ;;  %v7449_v22 = vrot.slane %v6010_v13, %v7270_v18  ;;  %v7452_v24 = vrot.slane %v6010_v13, %v7279_v20 }
  0xa5   : > { %v6394_v36 = vpack.c.bf16 %v1043_v30, %v1041_v32  ;;  %v263_v37 = vpop.permute.xlu1 %262  ;;  %v261_v38 = vpop.permute.xlu0 %260  ;;  %v6392_v39 = vpack.c.bf16 %v1044_v31, %v1042_v33 }
  0xa7   : > { %6393 = vmatprep.subr.bf16.mxu0 %v6392_v39  ;;  %5970 = vmatmul.mubr.msk.f32.gmra.mrb[6].mxu1 %vm362_vm0, %v5966_v35 }
  0xa8   : > { %6395 = vmatpush1.bf16.msra.mxu0 %v6394_v36  ;;  %540 = vmatprep.mubr.f32.mxu1 %v9427_v12 }
  0xa9   : > { %v271_v43 = vpop.permute.xlu1 %270  ;;  %v269_v44 = vpop.permute.xlu0 %268 }
  0xaa   : > { %v280_v45 = vsel %vm278_vm3, %v263_v37, %v271_v43  ;;  %v284_v46 = vsel %vm278_vm3, %v271_v43, %v263_v37  ;;  %v279_v47 = vsel %vm278_vm3, %v261_v38, %v269_v44  ;;  %v283_v48 = vsel %vm278_vm3, %v269_v44, %v261_v38  ;;  %v308_v37 = vld [vmem:[%s9412_s1 + $0x8] sm:$0xff]  ;;  %v309_v44 = vld [vmem:[%s9412_s1 + $0x10] sm:$0xff] }
  0xab   : > { %v301_v49 = vmul.f32 %v7395_v40, %v284_v46  ;;  %v302_v50 = vmul.f32 %v7398_v41, %v280_v45  ;;  %v299_v51 = vmul.f32 %v7395_v40, %v283_v48  ;;  %v300_v52 = vmul.f32 %v7398_v41, %v279_v47  ;;  %6006 = vmatmul.mubr.msk.f32.vlgmr.msra.gmra.mrb[0].mxu0 %vm362_vm0, %v6002_v42 }
  0xac   : > { %1132 = vmatprep.mubr.f32.mxu0 %v9427_v12 }
  0xad   : > { %v6358_v56 = vpack.c.bf16 %v301_v49, %v299_v51  ;;  %v267_v57 = vpop.permute.xlu1 %266  ;;  %v265_v58 = vpop.permute.xlu0 %264  ;;  %v6356_v60 = vpack.c.bf16 %v302_v50, %v300_v52 }
  0xaf   : > { %6357 = vmatprep.subr.bf16.mxu1 %v6356_v60  ;;  %6007 = vmatmul.mubr.msk.f32.gmra.mrb[2].mxu0 %vm362_vm0, %v6003_v53 }
  0xb0   : > { %6359 = vmatpush1.bf16.msra.mxu1 %v6358_v56  ;;  %1138 = vmatprep.mubr.f32.mxu0 %v9427_v12 }
  0xb1   : > { %v275_v62 = vpop.permute.xlu1 %274  ;;  %v273_v63 = vpop.permute.xlu0 %272 }
  0xb2   : > { %v282_v0 = vsel %vm278_vm3, %v267_v57, %v275_v62  ;;  %v286_v1 = vsel %vm278_vm3, %v275_v62, %v267_v57  ;;  %v281_v2 = vsel %vm278_vm3, %v265_v58, %v273_v63  ;;  %v285_v3 = vsel %vm278_vm3, %v273_v63, %v265_v58  ;;  %v5975_v57 = vld [vmem:[%s9416_s5 + $0x4] sm:$0x3]  ;;  %v310_v58 = vld [vmem:[%s9412_s1 + $0x18] sm:$0xff] }
  0xb3   : > { %v305_v6 = vmul.f32 %v7395_v40, %v286_v1  ;;  %v306_v7 = vmul.f32 %v7398_v41, %v282_v0  ;;  %v303_v8 = vmul.f32 %v7395_v40, %v285_v3  ;;  %v304_v9 = vmul.f32 %v7398_v41, %v281_v2  ;;  %6008 = vmatmul.mubr.msk.f32.gmra.mrb[4].mxu0 %vm362_vm0, %v6004_v61  ;;  %v6011_v2 = vld [vmem:[%s9412_s1 + $0xc0] sm:$0xff] }
  0xb4   : > { %1144 = vmatprep.mubr.f32.mxu0 %v9427_v12  ;;  %v7503_v0 = vrot.slane %v5975_v57, %v7270_v18  ;;  %v7506_v1 = vrot.slane %v5975_v57, %v7279_v20 }
  0xb5   : > { %v6362_v15 = vpack.c.bf16 %v305_v6, %v303_v8  ;;  %v1162_v16 = vpop.permute.xlu1 %1161  ;;  %v1160_v19 = vpop.permute.xlu0 %1159  ;;  %v6360_v21 = vpack.c.bf16 %v306_v7, %v304_v9 }
  0xb7   : > { %6361 = vmatprep.subr.bf16.mxu1 %v6360_v21  ;;  %6009 = vmatmul.mubr.msk.f32.gmra.mrb[6].mxu0 %vm362_vm0, %v6005_v14  ;;  %v6012_v21 = vld [vmem:[%s9412_s1 + $0xc8] sm:$0xff] }
  0xb8   : > { %6363 = vmatpush1.bf16.msra.mxu1 %v6362_v15  ;;  %1286 = vmatprep.mubr.f32.mxu0 %v9427_v12 }
  0xb9   : > { %v1170_v27 = vpop.permute.xlu1 %1169  ;;  %v1168_v28 = vpop.permute.xlu0 %1167 }
  0xba   : > { %v1177_v29 = vsel %vm1175_vm4, %v1162_v16, %v1170_v27  ;;  %v1181_v30 = vsel %vm1175_vm4, %v1170_v27, %v1162_v16  ;;  %v1176_v31 = vsel %vm1175_vm4, %v1160_v19, %v1168_v28  ;;  %v1180_v32 = vsel %vm1175_vm4, %v1168_v28, %v1160_v19 }
  0xbb   : > { %v1199_v33 = vmul.f32 %v7449_v22, %v1177_v29  ;;  %v1200_v34 = vmul.f32 %v7452_v24, %v1181_v30  ;;  %v1197_v35 = vmul.f32 %v7449_v22, %v1176_v31  ;;  %v1198_v36 = vmul.f32 %v7452_v24, %v1180_v32  ;;  %5971 = vmatmul.mubr.msk.f32.vlgmr.msra.gmra.mrb[0].mxu1 %vm362_vm0, %v307_v26  ;;  %v6013_v30 = vld [vmem:[%s9412_s1 + $0xd0] sm:$0xff] }
  0xbc   : > { %546 = vmatprep.mubr.f32.mxu1 %v9427_v12 }
  0xbd   : > { %v6398_v38 = vpack.c.bf16 %v1199_v33, %v1197_v35  ;;  %v1166_v39 = vpop.permute.xlu1 %1165  ;;  %v1164_v42 = vpop.permute.xlu0 %1163  ;;  %v6396_v43 = vpack.c.bf16 %v1200_v34, %v1198_v36 }
  0xbf   : > { %6397 = vmatprep.subr.bf16.mxu0 %v6396_v43  ;;  %5972 = vmatmul.mubr.msk.f32.gmra.mrb[2].mxu1 %vm362_vm0, %v308_v37  ;;  %v6019_v43 = vld [vmem:[%s9416_s5 + $0xe] sm:$0x3] }
  0xc0   : > { %6399 = vmatpush1.bf16.msra.mxu0 %v6398_v38  ;;  %552 = vmatprep.mubr.f32.mxu1 %v9427_v12 }
  0xc1   : > { %v1174_v45 = vpop.permute.xlu1 %1173  ;;  %v1172_v46 = vpop.permute.xlu0 %1171 }
  0xc2   : > { %v1179_v47 = vsel %vm1175_vm4, %v1166_v39, %v1174_v45  ;;  %v1183_v48 = vsel %vm1175_vm4, %v1174_v45, %v1166_v39  ;;  %v1178_v49 = vsel %vm1175_vm4, %v1164_v42, %v1172_v46  ;;  %v1182_v50 = vsel %vm1175_vm4, %v1172_v46, %v1164_v42 }
  0xc3   : > { %v1203_v51 = vmul.f32 %v7449_v22, %v1179_v47  ;;  %v1204_v52 = vmul.f32 %v7452_v24, %v1183_v48  ;;  %v1201_v53 = vmul.f32 %v7449_v22, %v1178_v49  ;;  %v1202_v56 = vmul.f32 %v7452_v24, %v1182_v50  ;;  %5973 = vmatmul.mubr.msk.f32.gmra.mrb[4].mxu1 %vm362_vm0, %v309_v44  ;;  %v6014_v44 = vld [vmem:[%s9412_s1 + $0xd8] sm:$0xff] }
  0xc4   : > { %558 = vmatprep.mubr.f32.mxu1 %v9427_v12  ;;  %v7557_v49 = vrot.slane %v6019_v43, %v7270_v18  ;;  %v7560_v50 = vrot.slane %v6019_v43, %v7279_v20 }
  0xc5   : > { %v6402_v60 = vpack.c.bf16 %v1203_v51, %v1201_v53  ;;  %v568_v61 = vpop.permute.xlu1 %567  ;;  %v566_v62 = vpop.permute.xlu0 %565  ;;  %v6400_v63 = vpack.c.bf16 %v1204_v52, %v1202_v56  ;;  %v5976_v51 = vld [vmem:[%s9412_s1 + $0x40] sm:$0xff] }
  0xc6   : > { %9447 = vst [vmem:[#allocation4_spill] sm:$0xff] %v7560_v50 }
  0xc7   : > { %6401 = vmatprep.subr.bf16.mxu0 %v6400_v63  ;;  %5974 = vmatmul.mubr.msk.f32.gmra.mrb[6].mxu1 %vm362_vm0, %v310_v58 }
  0xc8   : > { %6403 = vmatpush1.bf16.msra.mxu0 %v6402_v60  ;;  %692 = vmatprep.mubr.f32.mxu1 %v9427_v12 }
  0xc9   : > { %v576_v3 = vpop.permute.xlu1 %575  ;;  %v574_v6 = vpop.permute.xlu0 %573 }
  0xca   : > { %v583_v7 = vsel %vm581_vm5, %v568_v61, %v576_v3  ;;  %v587_v8 = vsel %vm581_vm5, %v576_v3, %v568_v61  ;;  %v582_v9 = vsel %vm581_vm5, %v566_v62, %v574_v6  ;;  %v586_v13 = vsel %vm581_vm5, %v574_v6, %v566_v62  ;;  %v5977_v3 = vld [vmem:[%s9412_s1 + $0x48] sm:$0xff] }
  0xcb   : > { %v605_v14 = vmul.f32 %v7503_v0, %v587_v8  ;;  %v606_v15 = vmul.f32 %v7506_v1, %v583_v7  ;;  %v603_v16 = vmul.f32 %v7503_v0, %v586_v13  ;;  %v604_v19 = vmul.f32 %v7506_v1, %v582_v9  ;;  %6015 = vmatmul.mubr.msk.f32.vlgmr.msra.gmra.mrb[0].mxu0 %vm362_vm0, %v6011_v2  ;;  %v5978_v13 = vld [vmem:[%s9412_s1 + $0x50] sm:$0xff] }
  0xcc   : > { %1292 = vmatprep.mubr.f32.mxu0 %v9427_v12 }
  0xcd   : > { %v6366_v26 = vpack.c.bf16 %v605_v14, %v603_v16  ;;  %v572_v27 = vpop.permute.xlu1 %571  ;;  %v570_v28 = vpop.permute.xlu0 %569  ;;  %v6364_v29 = vpack.c.bf16 %v606_v15, %v604_v19 }
  0xcf   : > { %6365 = vmatprep.subr.bf16.mxu1 %v6364_v29  ;;  %6016 = vmatmul.mubr.msk.f32.gmra.mrb[2].mxu0 %vm362_vm0, %v6012_v21 }
  0xd0   : > { %6367 = vmatpush1.bf16.msra.mxu1 %v6366_v26  ;;  %1298 = vmatprep.mubr.f32.mxu0 %v9427_v12 }
  0xd1   : > { %v580_v31 = vpop.permute.xlu1 %579  ;;  %v578_v32 = vpop.permute.xlu0 %577 }
  0xd2   : > { %v585_v33 = vsel %vm581_vm5, %v572_v27, %v580_v31  ;;  %v589_v34 = vsel %vm581_vm5, %v580_v31, %v572_v27  ;;  %v584_v35 = vsel %vm581_vm5, %v570_v28, %v578_v32  ;;  %v588_v36 = vsel %vm581_vm5, %v578_v32, %v570_v28  ;;  %v5984_v31 = vld [vmem:[%s9416_s5 + $0x6] sm:$0x3]  ;;  %v5979_v32 = vld [vmem:[%s9412_s1 + $0x58] sm:$0xff] }
  0xd3   : > { %v609_v37 = vmul.f32 %v7503_v0, %v589_v34  ;;  %v610_v38 = vmul.f32 %v7506_v1, %v585_v33  ;;  %v607_v39 = vmul.f32 %v7503_v0, %v588_v36  ;;  %v608_v42 = vmul.f32 %v7506_v1, %v584_v35  ;;  %6017 = vmatmul.mubr.msk.f32.gmra.mrb[4].mxu0 %vm362_vm0, %v6013_v30 }
  0xd4   : > { %1304 = vmatprep.mubr.f32.mxu0 %v9427_v12 }
  0xd5   : > { %v6370_v45 = vpack.c.bf16 %v609_v37, %v607_v39  ;;  %v1322_v46 = vpop.permute.xlu1 %1321  ;;  %v1320_v47 = vpop.permute.xlu0 %1319  ;;  %v6368_v48 = vpack.c.bf16 %v610_v38, %v608_v42  ;;  %v7611_v37 = vrot.slane %v5984_v31, %v7270_v18  ;;  %v7614_v38 = vrot.slane %v5984_v31, %v7279_v20  ;;  %v6020_v39 = vld [vmem:[%s9412_s1 + $0xe0] sm:$0xff] }
  0xd6   : > { %v5985_v31 = vld [vmem:[%s9412_s1 + $0x60] sm:$0xff] }
  0xd7   : > { %6369 = vmatprep.subr.bf16.mxu1 %v6368_v48  ;;  %6018 = vmatmul.mubr.msk.f32.gmra.mrb[6].mxu0 %vm362_vm0, %v6014_v44  ;;  %9448 = vst [vmem:[#allocation5_spill] sm:$0xff] %v7611_v37  ;;  %9449 = vst [vmem:[#allocation6_spill] sm:$0xff] %v7614_v38 }
  0xd8   : > { %6371 = vmatpush1.bf16.msra.mxu1 %v6370_v45  ;;  %1446 = vmatprep.mubr.f32.mxu0 %v9427_v12 }
  0xd9   : > { %v1330_v52 = vpop.permute.xlu1 %1329  ;;  %v1328_v53 = vpop.permute.xlu0 %1327 }
  0xda   : > { %v1337_v56 = vsel %vm1335_vm6, %v1322_v46, %v1330_v52  ;;  %v1341_v57 = vsel %vm1335_vm6, %v1330_v52, %v1322_v46  ;;  %v1336_v58 = vsel %vm1335_vm6, %v1320_v47, %v1328_v53  ;;  %v1340_v60 = vsel %vm1335_vm6, %v1328_v53, %v1320_v47 }
  0xdb   : > { %v1359_v61 = vmul.f32 %v7557_v49, %v1337_v56  ;;  %v1360_v62 = vmul.f32 %v7560_v50, %v1341_v57  ;;  %v1357_v63 = vmul.f32 %v7557_v49, %v1336_v58  ;;  %v1358_v2 = vmul.f32 %v7560_v50, %v1340_v60  ;;  %5980 = vmatmul.mubr.msk.f32.vlgmr.msra.gmra.mrb[0].mxu1 %vm362_vm0, %v5976_v51  ;;  %v6021_v56 = vld [vmem:[%s9412_s1 + $0xe8] sm:$0xff] }
  0xdc   : > { %698 = vmatprep.mubr.f32.mxu1 %v9427_v12 }
  0xdd   : > { %v6406_v6 = vpack.c.bf16 %v1359_v61, %v1357_v63  ;;  %v1326_v7 = vpop.permute.xlu1 %1325  ;;  %v1324_v8 = vpop.permute.xlu0 %1323  ;;  %v6404_v9 = vpack.c.bf16 %v1360_v62, %v1358_v2  ;;  %v6022_v62 = vld [vmem:[%s9412_s1 + $0xf0] sm:$0xff] }
  0xdf   : > { %6405 = vmatprep.subr.bf16.mxu0 %v6404_v9  ;;  %5981 = vmatmul.mubr.msk.f32.gmra.mrb[2].mxu1 %vm362_vm0, %v5977_v3 }
  0xe0   : > { %6407 = vmatpush1.bf16.msra.mxu0 %v6406_v6  ;;  %704 = vmatprep.mubr.f32.mxu1 %v9427_v12 }
  0xe1   : > { %v1334_v14 = vpop.permute.xlu1 %1333  ;;  %v1332_v15 = vpop.permute.xlu0 %1331 }
  0xe2   : > { %v1339_v16 = vsel %vm1335_vm6, %v1326_v7, %v1334_v14  ;;  %v1343_v19 = vsel %vm1335_vm6, %v1334_v14, %v1326_v7  ;;  %v1338_v21 = vsel %vm1335_vm6, %v1324_v8, %v1332_v15  ;;  %v1342_v26 = vsel %vm1335_vm6, %v1332_v15, %v1324_v8 }
  0xe3   : > { %v1363_v27 = vmul.f32 %v7557_v49, %v1339_v16  ;;  %v1364_v28 = vmul.f32 %v7560_v50, %v1343_v19  ;;  %v1361_v29 = vmul.f32 %v7557_v49, %v1338_v21  ;;  %v1362_v30 = vmul.f32 %v7560_v50, %v1342_v26  ;;  %5982 = vmatmul.mubr.msk.f32.gmra.mrb[4].mxu1 %vm362_vm0, %v5978_v13  ;;  %v6028_v16 = vld [vmem:[%s9416_s5 + $0x10] sm:$0x3]  ;;  %v6023_v19 = vld [vmem:[%s9412_s1 + $0xf8] sm:$0xff] }
  0xe4   : > { %710 = vmatprep.mubr.f32.mxu1 %v9427_v12 }
  0xe5   : > { %v6410_v33 = vpack.c.bf16 %v1363_v27, %v1361_v29  ;;  %v728_v34 = vpop.permute.xlu1 %727  ;;  %v726_v35 = vpop.permute.xlu0 %725  ;;  %v6408_v36 = vpack.c.bf16 %v1364_v28, %v1362_v30  ;;  %v7665_v29 = vrot.slane %v6028_v16, %v7270_v18  ;;  %v7668_v30 = vrot.slane %v6028_v16, %v7279_v20 }
  0xe7   : > { %6409 = vmatprep.subr.bf16.mxu0 %v6408_v36  ;;  %5983 = vmatmul.mubr.msk.f32.gmra.mrb[6].mxu1 %vm362_vm0, %v5979_v32  ;;  %9450 = vst [vmem:[#allocation7_spill] sm:$0xff] %v7665_v29  ;;  %9451 = vst [vmem:[#allocation8_spill] sm:$0xff] %v7668_v30 }
  0xe8   : > { %6411 = vmatpush1.bf16.msra.mxu0 %v6410_v33  ;;  %852 = vmatprep.mubr.f32.mxu1 %v9427_v12 }
  0xe9   : > { %v736_v42 = vpop.permute.xlu1 %735  ;;  %v734_v43 = vpop.permute.xlu0 %733 }
  0xea   : > { %v743_v44 = vsel %vm741_vm7, %v728_v34, %v736_v42  ;;  %v747_v45 = vsel %vm741_vm7, %v736_v42, %v728_v34  ;;  %v742_v46 = vsel %vm741_vm7, %v726_v35, %v734_v43  ;;  %v746_v47 = vsel %vm741_vm7, %v734_v43, %v726_v35 }
  0xeb   : > { %v765_v48 = vmul.f32 %v7611_v37, %v747_v45  ;;  %v766_v51 = vmul.f32 %v7614_v38, %v743_v44  ;;  %v763_v52 = vmul.f32 %v7611_v37, %v746_v47  ;;  %v764_v53 = vmul.f32 %v7614_v38, %v742_v46  ;;  %6024 = vmatmul.mubr.msk.f32.vlgmr.msra.gmra.mrb[0].mxu0 %vm362_vm0, %v6020_v39  ;;  %v5986_v45 = vld [vmem:[%s9412_s1 + $0x68] sm:$0xff] }
  0xec   : > { %1452 = vmatprep.mubr.f32.mxu0 %v9427_v12 }
  0xed   : > { %v6374_v57 = vpack.c.bf16 %v765_v48, %v763_v52  ;;  %v732_v58 = vpop.permute.xlu1 %731  ;;  %v730_v60 = vpop.permute.xlu0 %729  ;;  %v6372_v61 = vpack.c.bf16 %v766_v51, %v764_v53  ;;  %v5987_v52 = vld [vmem:[%s9412_s1 + $0x70] sm:$0xff] }
  0xef   : > { %6373 = vmatprep.subr.bf16.mxu1 %v6372_v61  ;;  %6025 = vmatmul.mubr.msk.f32.gmra.mrb[2].mxu0 %vm362_vm0, %v6021_v56 }
  0xf0   : > { %6375 = vmatpush1.bf16.msra.mxu1 %v6374_v57  ;;  %1458 = vmatprep.mubr.f32.mxu0 %v9427_v12 }
  0xf1   : > { %v740_v63 = vpop.permute.xlu1 %739  ;;  %v738_v2 = vpop.permute.xlu0 %737 }
  0xf2   : > { %v745_v3 = vsel %vm741_vm7, %v732_v58, %v740_v63  ;;  %v749_v6 = vsel %vm741_vm7, %v740_v63, %v732_v58  ;;  %v744_v7 = vsel %vm741_vm7, %v730_v60, %v738_v2  ;;  %v748_v8 = vsel %vm741_vm7, %v738_v2, %v730_v60  ;;  %v5988_v63 = vld [vmem:[%s9412_s1 + $0x78] sm:$0xff] }
  0xf3   : > { %v769_v9 = vmul.f32 %v7611_v37, %v749_v6  ;;  %v770_v13 = vmul.f32 %v7614_v38, %v745_v3  ;;  %v767_v14 = vmul.f32 %v7611_v37, %v748_v8  ;;  %v768_v15 = vmul.f32 %v7614_v38, %v744_v7  ;;  %6026 = vmatmul.mubr.msk.f32.gmra.mrb[4].mxu0 %vm362_vm0, %v6022_v62  ;;  %v5995_v6 = vld [vmem:[%s9412_s1 + $0x90] sm:$0xff]  ;;  %v6029_v7 = vld [vmem:[%s9412_s1 + $0x100] sm:$0xff]  ;;  %v5996_v8 = vld [vmem:[%s9412_s1 + $0x98] sm:$0xff] }
  0xf4   : > { %1464 = vmatprep.mubr.f32.mxu0 %v9427_v12 }
  0xf5   : > { %v6378_v21 = vpack.c.bf16 %v769_v9, %v767_v14  ;;  %v1482_v26 = vpop.permute.xlu1 %1481  ;;  %v1480_v27 = vpop.permute.xlu0 %1479  ;;  %v6376_v28 = vpack.c.bf16 %v770_v13, %v768_v15  ;;  %v6030_v9 = vld [vmem:[%s9412_s1 + $0x108] sm:$0xff]  ;;  %v6031_v13 = vld [vmem:[%s9412_s1 + $0x110] sm:$0xff]  ;;  %v6032_v14 = vld [vmem:[%s9412_s1 + $0x118] sm:$0xff] }
  0xf7   : > { %6377 = vmatprep.subr.bf16.mxu1 %v6376_v28  ;;  %6027 = vmatmul.mubr.msk.f32.gmra.mrb[6].mxu0 %vm362_vm0, %v6023_v19 }
  0xf8   : > { %6379 = vmatpush1.bf16.msra.mxu1 %v6378_v21  ;;  %1606 = vmatprep.mubr.f32.mxu0 %v9427_v12 }
  0xf9   : > { %v1490_v32 = vpop.permute.xlu1 %1489  ;;  %v1488_v33 = vpop.permute.xlu0 %1487  ;;  %6636 = vmatprep.subr.bf16.mxu1 %v7122_v4 }
  0xfa   : > { %v1497_v34 = vsel %vm1495_vm8, %v1482_v26, %v1490_v32  ;;  %v1501_v35 = vsel %vm1495_vm8, %v1490_v32, %v1482_v26  ;;  %v1496_v36 = vsel %vm1495_vm8, %v1480_v27, %v1488_v33  ;;  %v1500_v39 = vsel %vm1495_vm8, %v1488_v33, %v1480_v27 }
  0xfb   : > { %v1519_v42 = vmul.f32 %v7665_v29, %v1497_v34  ;;  %v1520_v43 = vmul.f32 %v7668_v30, %v1501_v35  ;;  %v1517_v44 = vmul.f32 %v7665_v29, %v1496_v36  ;;  %v1518_v4 = vmul.f32 %v7668_v30, %v1500_v39  ;;  %5989 = vmatmul.mubr.msk.f32.vlgmr.msra.gmra.mrb[0].mxu1 %vm362_vm0, %v5985_v31 }
  0xfc   : > { %858 = vmatprep.mubr.f32.mxu1 %v9427_v12  ;;  %6638 = vmatpush1.bf16.msra.mxu1 %v7130_v5 }
  0xfd   : > { %v6414_v46 = vpack.c.bf16 %v1519_v42, %v1517_v44  ;;  %v1486_v47 = vpop.permute.xlu1 %1485  ;;  %v1484_v48 = vpop.permute.xlu0 %1483  ;;  %v6412_v51 = vpack.c.bf16 %v1520_v43, %v1518_v4  ;;  %6637 = vmatprep.subr.bf16.mxu1 %v7144_v10 }
  0xff   : > { %5990 = vmatmul.mubr.msk.f32.gmra.mrb[2].mxu1 %vm362_vm0, %v5986_v45  ;;  %6413 = vmatprep.subr.bf16.mxu0 %v6412_v51 }
 0x100   : > { %6415 = vmatpush1.bf16.msra.mxu0 %v6414_v46  ;;  %864 = vmatprep.mubr.f32.mxu1 %v9427_v12 }
 0x101   : > { %v1494_v53 = vpop.permute.xlu1 %1493  ;;  %v1492_v56 = vpop.permute.xlu0 %1491  ;;  %6639 = vmatpush1.bf16.msra.mxu1 %v7152_v11 }
 0x102   : > { %v1499_v5 = vsel %vm1495_vm8, %v1486_v47, %v1494_v53  ;;  %v1503_v10 = vsel %vm1495_vm8, %v1494_v53, %v1486_v47  ;;  %v1498_v57 = vsel %vm1495_vm8, %v1484_v48, %v1492_v56  ;;  %v1502_v58 = vsel %vm1495_vm8, %v1492_v56, %v1484_v48 }
 0x103   : > { %v1523_v60 = vmul.f32 %v7665_v29, %v1499_v5  ;;  %v1524_v61 = vmul.f32 %v7668_v30, %v1503_v10  ;;  %v1521_v62 = vmul.f32 %v7665_v29, %v1498_v57  ;;  %v1522_v11 = vmul.f32 %v7668_v30, %v1502_v58  ;;  %5991 = vmatmul.mubr.msk.f32.gmra.mrb[4].mxu1 %vm362_vm0, %v5987_v52 }
 0x104   : > { %870 = vmatprep.mubr.f32.mxu1 %v9427_v12 }
 0x105   : > { %v6418_v2 = vpack.c.bf16 %v1523_v60, %v1521_v62  ;;  %v6416_v3 = vpack.c.bf16 %v1524_v61, %v1522_v11 }
 0x107   : > { %5992 = vmatmul.mubr.msk.f32.gmra.mrb[6].mxu1 %vm362_vm0, %v5988_v63  ;;  %6417 = vmatprep.subr.bf16.mxu0 %v6416_v3 }
 0x108   : > { %6419 = vmatpush1.bf16.msra.mxu0 %v6418_v2  ;;  %978 = vmatprep.mubr.f32.mxu1 %v9427_v12 }
 0x10b   : > { %5999 = vmatmul.mubr.msk.f32.vlgmr.msra.gmra.mrb[4].mxu1 %vm362_vm0, %v5995_v6  ;;  %6033 = vmatmul.mubr.msk.f32.vlgmr.msra.gmra.mrb[0].mxu0 %vm362_vm0, %v6029_v7 }
 0x10c   : > { %984 = vmatprep.mubr.f32.mxu1 %v9427_v12  ;;  %1612 = vmatprep.mubr.f32.mxu0 %v9427_v12 }
 0x10f   : > { %6000 = vmatmul.mubr.msk.f32.gmra.mrb[6].mxu1 %vm362_vm0, %v5996_v8  ;;  %6034 = vmatmul.mubr.msk.f32.gmra.mrb[2].mxu0 %vm362_vm0, %v6030_v9 }
 0x110   : > { %1618 = vmatprep.mubr.f32.mxu0 %v9427_v12 }
 0x112   : > { %v1646_v26 = vpop.permute.xlu0 %1645 }
 0x113   : > { %6035 = vmatmul.mubr.msk.f32.gmra.mrb[4].mxu0 %vm362_vm0, %v6031_v13  ;;  %v1651_v35 = vpop.permute.xlu1 %1650 }
 0x114   : > { %1624 = vmatprep.mubr.f32.mxu0 %v9427_v12 }
 0x116   : > { %v1661_v11 = vpop.permute.xlu0 %1660 }
 0x117   : > { %6036 = vmatmul.mubr.msk.f32.gmra.mrb[6].mxu0 %vm362_vm0, %v6032_v14  ;;  %v1656_v52 = vpop.permute.xlu1 %1655 }
 0x1ce   : > { %v854_v15 = vpop.f32.mrb[0].mxu1 }
 0x1cf   : > { %v856_v16 = vpop.f32.mrb[1].mxu1 }
 0x1d2   : > { %v860_v19 = vpop.f32.mrb[2].mxu1 }
 0x1d3   : > { %v862_v21 = vpop.f32.mrb[3].mxu1 }
 0x1de   : > { %v980_v27 = vpop.f32.mrb[4].mxu1  ;;  %v1608_v28 = vpop.f32.mrb[0].mxu0 }
 0x1df   : > { %v6640_v31 = vadd.f32 %v1608_v28, %v854_v15  ;;  %v982_v32 = vpop.f32.mrb[5].mxu1  ;;  %v1610_v33 = vpop.f32.mrb[1].mxu0 }
 0x1e0   : > { %v6641_v34 = vadd.f32 %v1610_v33, %v856_v16 }
 0x1e1   : > { %v1663_v36 = vadd.f32 %v6640_v31, %v1646_v26  }
 0x1e2   : > { %v1664_v39 = vadd.f32 %v6641_v34, %v1646_v26   ;;  %v986_v42 = vpop.f32.mrb[6].mxu1  ;;  %v1614_v43 = vpop.f32.mrb[2].mxu0 }
 0x1e3   : > { %v6642_v44 = vadd.f32 %v1614_v43, %v860_v19  ;;  %v988_v4 = vpop.f32.mrb[7].mxu1  ;;  %v1616_v45 = vpop.f32.mrb[3].mxu0 }
 0x1e4   : > { %v6643_v46 = vadd.f32 %v1616_v45, %v862_v21 }
 0x1e5   : > { %v1665_v47 = vadd.f32 %v6642_v44, %v1651_v35  }
 0x1e6   : > { %v1666_v48 = vadd.f32 %v6643_v46, %v1651_v35   ;;  %v1620_v51 = vpop.f32.mrb[4].mxu0 }
 0x1e7   : > { %v6644_v53 = vadd.f32 %v1620_v51, %v980_v27  ;;  %v1622_v56 = vpop.f32.mrb[5].mxu0 }
 0x1e8   : > { %v6645_v5 = vadd.f32 %v1622_v56, %v982_v32 }
 0x1e9   : > { %v1667_v10 = vadd.f32 %v6644_v53, %v1656_v52  }
 0x1ea   : > { %v1668_v57 = vadd.f32 %v6645_v5, %v1656_v52   ;;  %v1626_v58 = vpop.f32.mrb[6].mxu0 }
 0x1eb   : > { %v6646_v60 = vadd.f32 %v1626_v58, %v986_v42  ;;  %v1628_v61 = vpop.f32.mrb[7].mxu0 }
 0x1ec   : > { %v6647_v62 = vadd.f32 %v1628_v61, %v988_v4 }
 0x1ed   : > { %v1669_v63 = vadd.f32 %v6646_v60, %v1661_v11  }
 0x1ee   : > { %v1670_v2 = vadd.f32 %v6647_v62, %v1661_v11  }
 0x1ef LB: >> { %v9452_v18 = vld [vmem:[#allocation2_spill] sm:$0xff]  ;;  %v9453_v20 = vld [vmem:[#allocation3_spill] sm:$0xff]  ;;  %v7047_v3 = vmov 0   ;;  %s7794_s29 = sshll.u32 %s7035_s28, 6  ;;  %s7048_s22 = smov 16   ;;  %v7007_v63 = vphi %v1669_v63, %v9464_v63   ;;  %v7003_v2 = vphi %v1670_v2, %v9463_v2   ;;  %s7035_s28 = sphi %s7764_s28, %s1676_s28   ;;  %v7031_v36 = vphi %v1663_v36, %v9470_v36   ;;  %v7027_v39 = vphi %v1664_v39, %v9469_v39   ;;  %v7023_v47 = vphi %v1665_v47, %v9468_v47   ;;  %v7019_v48 = vphi %v1666_v48, %v9467_v48   ;;  %v7015_v10 = vphi %v1667_v10, %v9466_v10   ;;  %v7011_v57 = vphi %v1668_v57, %v9465_v57  }
 0x1f0   : >> { %6955 = vset.pattern.permute.xlu1 %v7047_v3  ;;  %6954 = vset.pattern.permute.xlu0 %v7047_v3  ;;  %s7800_s12 = scalar_lea.vmem %s9415_s4, %s7794_s29  ;;  %s7806_s20 = scalar_lea.vmem %s9414_s3, %s7794_s29 }
 0x1f1   : >> { %v1721_v6 = vld [vmem:[%s7800_s12] sm:$0xff]  ;;  %v1722_v8 = vld [vmem:[%s7800_s12 + $0x8] sm:$0xff]  ;;  %v1691_v13 = vld [vmem:[%s7806_s20 + $0x18] sm:$0xff]  ;;  %s7050_s23 = smov 17   ;;  %s7051_s24 = smov 15  }
 0x1f2   : >> { %v1688_v7 = vld [vmem:[%s7806_s20] sm:$0xff]  ;;  %1727 = vperm.xlu1 %6955, %v1721_v6   ;;  %v1689_v9 = vld [vmem:[%s7806_s20 + $0x8] sm:$0xff]  ;;  %v1690_v14 = vld [vmem:[%s7806_s20 + $0x10] sm:$0xff]  ;;  %s7052_s25 = smov 1   ;;  %s7053_s26 = smov 127  }
 0x1f3   : >> { %1694 = vperm.xlu0 %6954, %v1688_v7   ;;  %v1724_v15 = vld [vmem:[%s7800_s12 + $0x18] sm:$0xff]  ;;  %v1723_v16 = vld [vmem:[%s7800_s12 + $0x10] sm:$0xff]  ;;  %s7054_s27 = smov 113   ;;  %s7055_s8 = smov 112  }
 0x1f4   : >> { %s7056_s9 = smov 111   ;;  %s7991_s18 = scalar_lea.vmem %s9413_s2, %s7794_s29 }
 0x1f5   : >> { %s6040_s29 = smul.u32 576, %s7035_s28  ;;  %s1676_s28 = sadd.s32 1, %s7035_s28  }
 0x1f6   : >> { %1732 = vperm.xlu1 %6955, %v1722_v8   ;;  %p1673_p4 = scmp.ge.s32.totalorder %s1676_s28, 2  }
 0x1f7   : >> { %1699 = vperm.xlu0 %6954, %v1689_v9   ;;  %s8020_s15 = scalar_lea.vmem %s9412_s1, %s6040_s29  ;;  %s9475_s28 = smov (%p1673_p4), 1   ;;  %v6330_v17 = vld [vmem:[%s9412_s1 + $0x6a0] sm:$0xff] (%p1673_p4) }
 0x1fa   : >> { %1709 = vperm.xlu1 %6955, %v1691_v13   ;;  %v9429_v13 = vmov 0.0  }
 0x1fb   : >> { %1704 = vperm.xlu0 %6954, %v1690_v14   ;;  %1940 = vmatprep.mubr.f32.mxu0 %v9429_v13 }
 0x1fc   : >> { %3405 = vmatprep.mubr.f32.mxu1 %v9429_v13 }
 0x1fe   : >> { %1742 = vperm.xlu1 %6955, %v1724_v15  }
 0x1ff   : >> { %1737 = vperm.xlu0 %6954, %v1723_v16   ;;  %v6045_v16 = vld [vmem:[%s9416_s5 + $0x2] sm:$0x3] }
 0x271   : >> { %v1728_v19 = vpop.permute.xlu1 %1727 }
 0x272   : >> { %v1695_v21 = vpop.permute.xlu0 %1694 }
 0x273   : >> { %v1712_v26 = vmul.f32 %v7031_v36, %v1695_v21  ;;  %v1713_v27 = vmul.f32 %v7027_v39, %v1695_v21 }
 0x275   : >> { %v1745_v28 = vadd.f32 %v1728_v19, %v1712_v26  ;;  %v1733_v31 = vpop.permute.xlu1 %1732  ;;  %v1746_v33 = vadd.f32 %v1728_v19, %v1713_v27  ;;  %v7966_v26 = vrot.slane %v6045_v16, %v9452_v18  ;;  %v7969_v27 = vrot.slane %v6045_v16, %v9453_v20  ;;  %v6152_v16 = vld [vmem:[%s7806_s20 + $0x20] sm:$0xff] }
 0x276   : >> { %v1700_v32 = vpop.permute.xlu0 %1699 }
 0x277   : >> { %v7818_v34 = vmax.f32 %v1745_v28, 0.0  ;;  %v1714_v35 = vmul.f32 %v7023_v47, %v1700_v32  ;;  %v1715_v42 = vmul.f32 %v7019_v48, %v1700_v32  ;;  %v7824_v45 = vmax.f32 %v1746_v33, 0.0 }
 0x279   : >> { %v1747_v43 = vadd.f32 %v1733_v31, %v1714_v35  ;;  %1813 = vrot.lane.b32.xlu0 %v7818_v34, %s7048_s22  ;;  %v1710_v44 = vpop.permute.xlu1 %1709  ;;  %v1748_v46 = vadd.f32 %v1733_v31, %v1715_v42 }
 0x27a   : >> { %v1705_v4 = vpop.permute.xlu0 %1704  ;;  %v1718_v52 = vmul.f32 %v7007_v63, %v1710_v44  ;;  %v1719_v11 = vmul.f32 %v7003_v2, %v1710_v44 }
 0x27b   : >> { %v7826_v51 = vmax.f32 %v1747_v43, 0.0  ;;  %v1716_v53 = vmul.f32 %v7015_v10, %v1705_v4  ;;  %v7834_v58 = vmax.f32 %v1748_v46, 0.0  ;;  %v1717_v60 = vmul.f32 %v7011_v57, %v1705_v4 }
 0x27d   : >> { %1821 = vrot.lane.b32.xlu0 %v7824_v45, %s7048_s22  ;;  %1815 = vrot.lane.b32.xlu1 %v7826_v51, %s7048_s22  ;;  %v1743_v56 = vpop.permute.xlu1 %1742 }
 0x27e   : >> { %v1738_v5 = vpop.permute.xlu0 %1737  ;;  %v1751_v61 = vadd.f32 %v1743_v56, %v1718_v52  ;;  %v1752_v7 = vadd.f32 %v1743_v56, %v1719_v11  ;;  %v6147_v11 = vld [vmem:[%s7991_s18 + $0x28] sm:$0xff] }
 0x27f   : >> { %v1749_v62 = vadd.f32 %v1738_v5, %v1716_v53  ;;  %v1750_v3 = vadd.f32 %v1738_v5, %v1717_v60  ;;  %v6146_v5 = vld [vmem:[%s7991_s18 + $0x20] sm:$0xff] }
 0x280   : >> { %v7842_v8 = vmax.f32 %v1751_v61, 0.0  ;;  %v7852_v14 = vmax.f32 %v1752_v7, 0.0 }
 0x281   : >> { %v7838_v6 = vmax.f32 %v1749_v62, 0.0  ;;  %1823 = vrot.lane.b32.xlu1 %v7834_v58, %s7048_s22  ;;  %v7846_v9 = vmax.f32 %v1750_v3, 0.0 }
 0x283   : >> { %1817 = vrot.lane.b32.xlu0 %v7838_v6, %s7048_s22 }
 0x285   : >> { %1819 = vrot.lane.b32.xlu1 %v7842_v8, %s7048_s22 }
 0x287   : >> { %1825 = vrot.lane.b32.xlu0 %v7846_v9, %s7048_s22 }
 0x289   : >> { %1827 = vrot.lane.b32.xlu1 %v7852_v14, %s7048_s22 }
 0x28b   : >> { %1762 = vrot.lane.b32.xlu0 %v7818_v34, %s7050_s23 }
 0x28d   : >> { %1764 = vrot.lane.b32.xlu1 %v7826_v51, %s7050_s23 }
 0x28f   : >> { %1770 = vrot.lane.b32.xlu0 %v7824_v45, %s7050_s23 }
 0x291   : >> { %1772 = vrot.lane.b32.xlu1 %v7834_v58, %s7050_s23 }
 0x293   : >> { %1766 = vrot.lane.b32.xlu0 %v7838_v6, %s7050_s23 }
 0x295   : >> { %1768 = vrot.lane.b32.xlu1 %v7842_v8, %s7050_s23 }
 0x297   : >> { %1774 = vrot.lane.b32.xlu0 %v7846_v9, %s7050_s23 }
 0x299   : >> { %1776 = vrot.lane.b32.xlu1 %v7852_v14, %s7050_s23 }
 0x29b   : >> { %2066 = vrot.lane.b32.xlu0 %v7818_v34, %s7051_s24 }
 0x29d   : >> { %2068 = vrot.lane.b32.xlu1 %v7826_v51, %s7051_s24 }
 0x29f   : >> { %2074 = vrot.lane.b32.xlu0 %v7824_v45, %s7051_s24 }
 0x2a1   : >> { %2076 = vrot.lane.b32.xlu1 %v7834_v58, %s7051_s24 }
 0x2a3   : >> { %2070 = vrot.lane.b32.xlu0 %v7838_v6, %s7051_s24 }
 0x2a5   : >> { %2072 = vrot.lane.b32.xlu1 %v7842_v8, %s7051_s24 }
 0x2a7   : >> { %2078 = vrot.lane.b32.xlu0 %v7846_v9, %s7051_s24 }
 0x2a9   : >> { %2080 = vrot.lane.b32.xlu1 %v7852_v14, %s7051_s24 }
 0x2ab   : >> { %2226 = vrot.lane.b32.xlu0 %v7818_v34, %s7052_s25 }
 0x2ad   : >> { %2228 = vrot.lane.b32.xlu1 %v7826_v51, %s7052_s25 }
 0x2af   : >> { %2234 = vrot.lane.b32.xlu0 %v7824_v45, %s7052_s25 }
 0x2b1   : >> { %2236 = vrot.lane.b32.xlu1 %v7834_v58, %s7052_s25 }
 0x2b3   : >> { %2230 = vrot.lane.b32.xlu0 %v7838_v6, %s7052_s25 }
 0x2b5   : >> { %2232 = vrot.lane.b32.xlu1 %v7842_v8, %s7052_s25 }
 0x2b7   : >> { %2238 = vrot.lane.b32.xlu0 %v7846_v9, %s7052_s25 }
 0x2b9   : >> { %2240 = vrot.lane.b32.xlu1 %v7852_v14, %s7052_s25 }
 0x2bb   : >> { %2502 = vrot.lane.b32.xlu0 %v7818_v34, %s7053_s26 }
 0x2bd   : >> { %2504 = vrot.lane.b32.xlu1 %v7826_v51, %s7053_s26 }
 0x2bf   : >> { %2510 = vrot.lane.b32.xlu0 %v7824_v45, %s7053_s26 }
 0x2c1   : >> { %2512 = vrot.lane.b32.xlu1 %v7834_v58, %s7053_s26 }
 0x2c3   : >> { %2506 = vrot.lane.b32.xlu0 %v7838_v6, %s7053_s26 }
 0x2c5   : >> { %2508 = vrot.lane.b32.xlu1 %v7842_v8, %s7053_s26 }
 0x2c7   : >> { %2514 = vrot.lane.b32.xlu0 %v7846_v9, %s7053_s26 }
 0x2c9   : >> { %2516 = vrot.lane.b32.xlu1 %v7852_v14, %s7053_s26 }
 0x2cb   : >> { %2662 = vrot.lane.b32.xlu0 %v7818_v34, %s7054_s27 }
 0x2cd   : >> { %2664 = vrot.lane.b32.xlu1 %v7826_v51, %s7054_s27 }
 0x2cf   : >> { %2670 = vrot.lane.b32.xlu0 %v7824_v45, %s7054_s27 }
 0x2d1   : >> { %2672 = vrot.lane.b32.xlu1 %v7834_v58, %s7054_s27 }
 0x2d3   : >> { %2666 = vrot.lane.b32.xlu0 %v7838_v6, %s7054_s27 }
 0x2d5   : >> { %2668 = vrot.lane.b32.xlu1 %v7842_v8, %s7054_s27 }
 0x2d7   : >> { %2674 = vrot.lane.b32.xlu0 %v7846_v9, %s7054_s27 }
 0x2d9   : >> { %2676 = vrot.lane.b32.xlu1 %v7852_v14, %s7054_s27 }
 0x2db   : >> { %2822 = vrot.lane.b32.xlu0 %v7818_v34, %s7055_s8 }
 0x2dd   : >> { %2824 = vrot.lane.b32.xlu1 %v7826_v51, %s7055_s8 }
 0x2df   : >> { %2830 = vrot.lane.b32.xlu0 %v7824_v45, %s7055_s8 }
 0x2e1   : >> { %2832 = vrot.lane.b32.xlu1 %v7834_v58, %s7055_s8 }
 0x2e3   : >> { %2826 = vrot.lane.b32.xlu0 %v7838_v6, %s7055_s8 }
 0x2e5   : >> { %2828 = vrot.lane.b32.xlu1 %v7842_v8, %s7055_s8 }
 0x2e7   : >> { %2834 = vrot.lane.b32.xlu0 %v7846_v9, %s7055_s8 }
 0x2e9   : >> { %2836 = vrot.lane.b32.xlu1 %v7852_v14, %s7055_s8 }
 0x2eb   : >> { %v1814_v15 = vpop.permute.xlu0 %1813  ;;  %2982 = vrot.lane.b32.xlu0 %v7818_v34, %s7056_s9 }
 0x2ed   : >> { %2984 = vrot.lane.b32.xlu1 %v7826_v51, %s7056_s9 }
 0x2ef   : >> { %v1822_v19 = vpop.permute.xlu0 %1821  ;;  %v1816_v21 = vpop.permute.xlu1 %1815  ;;  %2990 = vrot.lane.b32.xlu0 %v7824_v45, %s7056_s9 }
 0x2f0   : >> { %v1833_v28 = vsel %vm327_vm1, %v1822_v19, %v1814_v15  ;;  %v1829_v31 = vsel %vm327_vm1, %v1814_v15, %v1822_v19 }
 0x2f1   : >> { %2992 = vrot.lane.b32.xlu1 %v7834_v58, %s7056_s9  ;;  %v1850_v43 = vmul.f32 %v7969_v27, %v1829_v31  ;;  %v1849_v4 = vmul.f32 %v7966_v26, %v1833_v28 }
 0x2f3   : >> { %v1824_v32 = vpop.permute.xlu1 %1823  ;;  %2986 = vrot.lane.b32.xlu0 %v7838_v6, %s7056_s9 }
 0x2f4   : >> { %v1834_v33 = vsel %vm327_vm1, %v1824_v32, %v1816_v21  ;;  %v1830_v35 = vsel %vm327_vm1, %v1816_v21, %v1824_v32 }
 0x2f5   : >> { %v1818_v42 = vpop.permute.xlu0 %1817  ;;  %2988 = vrot.lane.b32.xlu1 %v7842_v8, %s7056_s9  ;;  %v1852_v44 = vmul.f32 %v7969_v27, %v1830_v35  ;;  %v1851_v46 = vmul.f32 %v7966_v26, %v1834_v33  ;;  %v1786_v33 = vld [vmem:[%s9416_s5] sm:$0x3]  ;;  %v6153_v35 = vld [vmem:[%s7806_s20 + $0x28] sm:$0xff] }
 0x2f7   : >> { %2994 = vrot.lane.b32.xlu0 %v7846_v9, %s7056_s9  ;;  %v1820_v52 = vpop.permute.xlu1 %1819  ;;  %v6420_v53 = vpack.c.bf16 %v1852_v44, %v1850_v43  ;;  %v6422_v56 = vpack.c.bf16 %v1851_v46, %v1849_v4  ;;  %v8023_v4 = vrot.slane %v1786_v33, %v9452_v18  ;;  %v6148_v46 = vld [vmem:[%s7991_s18 + $0x30] sm:$0xff] }
 0x2f9   : >> { %6421 = vmatprep.subr.bf16.mxu0 %v6420_v53  ;;  %v1826_v60 = vpop.permute.xlu0 %1825  ;;  %2996 = vrot.lane.b32.xlu1 %v7852_v14, %s7056_s9 }
 0x2fa   : >> { %v1831_v61 = vsel %vm327_vm1, %v1818_v42, %v1826_v60  ;;  %v1835_v62 = vsel %vm327_vm1, %v1826_v60, %v1818_v42  ;;  %6423 = vmatpush1.bf16.msra.mxu0 %v6422_v56  ;;  %v6149_v60 = vld [vmem:[%s7991_s18 + $0x38] sm:$0xff] }
 0x2fb   : >> { %3150 = vperm.xlu0 %6954, %v6146_v5   ;;  %v1828_v3 = vpop.permute.xlu1 %1827  ;;  %v1853_v19 = vmul.f32 %v7966_v26, %v1835_v62  ;;  %v1854_v21 = vmul.f32 %v7969_v27, %v1831_v61  ;;  %v6049_v61 = vld [vmem:[%s8020_s15 + $0x140] sm:$0xff] }
 0x2fc   : >> { %v1832_v7 = vsel %vm327_vm1, %v1820_v52, %v1828_v3  ;;  %v1836_v15 = vsel %vm327_vm1, %v1828_v3, %v1820_v52  ;;  %v8027_v52 = vrot.slane %v1786_v33, %v9453_v20 }
 0x2fd   : >> { %v1855_v28 = vmul.f32 %v7966_v26, %v1836_v15  ;;  %v1856_v31 = vmul.f32 %v7969_v27, %v1832_v7  ;;  %v1763_v32 = vpop.permute.xlu0 %1762  ;;  %3155 = vperm.xlu1 %6955, %v6147_v11   ;;  %v6158_v15 = vld [vmem:[%s7800_s12 + $0x20] sm:$0xff] }
 0x2ff   : >> { %3183 = vperm.xlu0 %6954, %v6152_v16   ;;  %v1765_v42 = vpop.permute.xlu1 %1764  ;;  %v6424_v43 = vpack.c.bf16 %v1856_v31, %v1854_v21  ;;  %v6426_v44 = vpack.c.bf16 %v1855_v28, %v1853_v19  ;;  %v6159_v31 = vld [vmem:[%s7800_s12 + $0x28] sm:$0xff] }
 0x301   : >> { %v1771_v53 = vpop.permute.xlu0 %1770  ;;  %3188 = vperm.xlu1 %6955, %v6153_v35   ;;  %6425 = vmatprep.subr.bf16.mxu0 %v6424_v43  ;;  %v6154_v43 = vld [vmem:[%s7806_s20 + $0x30] sm:$0xff] }
 0x302   : >> { %v1778_v56 = vsel %vm278_vm3, %v1763_v32, %v1771_v53  ;;  %v1782_v5 = vsel %vm278_vm3, %v1771_v53, %v1763_v32  ;;  %6427 = vmatpush1.bf16.msra.mxu0 %v6426_v44  ;;  %v6050_v32 = vld [vmem:[%s8020_s15 + $0x148] sm:$0xff] }
 0x303   : >> { %3160 = vperm.xlu0 %6954, %v6148_v46   ;;  %v1773_v62 = vpop.permute.xlu1 %1772  ;;  %v1798_v11 = vmul.f32 %v8023_v4, %v1782_v5  ;;  %v1799_v16 = vmul.f32 %v8027_v52, %v1778_v56  ;;  %v6155_v56 = vld [vmem:[%s7806_s20 + $0x38] sm:$0xff]  ;;  %v6051_v5 = vld [vmem:[%s8020_s15 + $0x150] sm:$0xff] }
 0x304   : >> { %v1779_v3 = vsel %vm278_vm3, %v1765_v42, %v1773_v62  ;;  %v1783_v7 = vsel %vm278_vm3, %v1773_v62, %v1765_v42 }
 0x305   : >> { %v1800_v19 = vmul.f32 %v8023_v4, %v1783_v7  ;;  %v1801_v21 = vmul.f32 %v8027_v52, %v1779_v3  ;;  %v1767_v28 = vpop.permute.xlu0 %1766  ;;  %3165 = vperm.xlu1 %6955, %v6149_v60   ;;  %6053 = vmatmul.mubr.msk.f32.vlgmr.msra.gmra.mrb[0].mxu0 %vm362_vm0, %v6049_v61  ;;  %v6160_v3 = vld [vmem:[%s7800_s12 + $0x30] sm:$0xff] }
 0x306   : >> { %1946 = vmatprep.mubr.f32.mxu0 %v9429_v13 }
 0x307   : >> { %v6430_v33 = vpack.c.bf16 %v1800_v19, %v1798_v11  ;;  %3216 = vperm.xlu0 %6954, %v6158_v15   ;;  %v1769_v35 = vpop.permute.xlu1 %1768  ;;  %v6428_v42 = vpack.c.bf16 %v1801_v21, %v1799_v16  ;;  %v6061_v21 = vld [vmem:[%s9416_s5 + $0x4] sm:$0x3] }
 0x309   : >> { %v1775_v44 = vpop.permute.xlu0 %1774  ;;  %3221 = vperm.xlu1 %6955, %v6159_v31   ;;  %6054 = vmatmul.mubr.msk.f32.gmra.mrb[2].mxu0 %vm362_vm0, %v6050_v32  ;;  %v6052_v31 = vld [vmem:[%s8020_s15 + $0x158] sm:$0xff] }
 0x30a   : >> { %v1780_v46 = vsel %vm278_vm3, %v1767_v28, %v1775_v44  ;;  %v1784_v53 = vsel %vm278_vm3, %v1775_v44, %v1767_v28  ;;  %6429 = vmatprep.subr.bf16.mxu0 %v6428_v42  ;;  %1952 = vmatprep.mubr.f32.mxu0 %v9429_v13  ;;  %v6161_v28 = vld [vmem:[%s7800_s12 + $0x38] sm:$0xff]  ;;  %v8074_v42 = vrot.slane %v6061_v21, %v9452_v18 }
 0x30b   : >> { %6431 = vmatpush1.bf16.msra.mxu0 %v6430_v33  ;;  %3193 = vperm.xlu0 %6954, %v6154_v43   ;;  %v1777_v60 = vpop.permute.xlu1 %1776  ;;  %v1802_v61 = vmul.f32 %v8023_v4, %v1784_v53  ;;  %v1803_v7 = vmul.f32 %v8027_v52, %v1780_v46  ;;  %v8077_v43 = vrot.slane %v6061_v21, %v9453_v20  ;;  %v6042_v21 = vld [vmem:[%s8020_s15 + $0x128] sm:$0xff] }
 0x30c   : >> { %v1781_v62 = vsel %vm278_vm3, %v1769_v35, %v1777_v60  ;;  %v1785_v11 = vsel %vm278_vm3, %v1777_v60, %v1769_v35 }
 0x30d   : >> { %v1804_v15 = vmul.f32 %v8023_v4, %v1785_v11  ;;  %v1805_v16 = vmul.f32 %v8027_v52, %v1781_v62  ;;  %v2067_v19 = vpop.permute.xlu0 %2066  ;;  %3198 = vperm.xlu1 %6955, %v6155_v56   ;;  %6055 = vmatmul.mubr.msk.f32.gmra.mrb[4].mxu0 %vm362_vm0, %v6051_v5  ;;  %v6041_v5 = vld [vmem:[%s8020_s15 + $0x120] sm:$0xff] }
 0x30e   : >> { %1958 = vmatprep.mubr.f32.mxu0 %v9429_v13 }
 0x30f   : >> { %v6434_v32 = vpack.c.bf16 %v1804_v15, %v1802_v61  ;;  %3226 = vperm.xlu0 %6954, %v6160_v3   ;;  %v2069_v33 = vpop.permute.xlu1 %2068  ;;  %v6432_v35 = vpack.c.bf16 %v1805_v16, %v1803_v7 }
 0x311   : >> { %v2075_v44 = vpop.permute.xlu0 %2074  ;;  %3231 = vperm.xlu1 %6955, %v6161_v28   ;;  %6056 = vmatmul.mubr.msk.f32.gmra.mrb[6].mxu0 %vm362_vm0, %v6052_v31 }
 0x312   : >> { %v2082_v46 = vsel %vm581_vm5, %v2067_v19, %v2075_v44  ;;  %v2086_v53 = vsel %vm581_vm5, %v2075_v44, %v2067_v19  ;;  %6433 = vmatprep.subr.bf16.mxu0 %v6432_v35  ;;  %2041 = vmatprep.mubr.f32.mxu0 %v9429_v13  ;;  %v6043_v44 = vld [vmem:[%s8020_s15 + $0x130] sm:$0xff] }
 0x313   : >> { %6435 = vmatpush1.bf16.msra.mxu0 %v6434_v32  ;;  %v2077_v56 = vpop.permute.xlu1 %2076  ;;  %v2102_v62 = vmul.f32 %v8074_v42, %v2086_v53  ;;  %v2103_v11 = vmul.f32 %v8077_v43, %v2082_v46 }
 0x314   : >> { %v2083_v60 = vsel %vm581_vm5, %v2069_v33, %v2077_v56  ;;  %v2087_v61 = vsel %vm581_vm5, %v2077_v56, %v2069_v33 }
 0x315   : >> { %v2104_v3 = vmul.f32 %v8074_v42, %v2087_v61  ;;  %v2105_v7 = vmul.f32 %v8077_v43, %v2083_v60  ;;  %v2071_v15 = vpop.permute.xlu0 %2070 }
 0x316   : >> { %6057 = vmatmul.mubr.msk.f32.vlgmr.msra.gmra.mrb[0].mxu0 %vm362_vm0, %v6041_v5 }
 0x317   : >> { %v6438_v16 = vpack.c.bf16 %v2104_v3, %v2102_v62  ;;  %v2073_v19 = vpop.permute.xlu1 %2072  ;;  %2047 = vmatprep.mubr.f32.mxu0 %v9429_v13  ;;  %v6436_v28 = vpack.c.bf16 %v2105_v7, %v2103_v11  ;;  %v6073_v11 = vld [vmem:[%s9416_s5 + $0x6] sm:$0x3] }
 0x319   : >> { %v2079_v31 = vpop.permute.xlu0 %2078  ;;  %6437 = vmatprep.subr.bf16.mxu0 %v6436_v28 }
 0x31a   : >> { %v2084_v32 = vsel %vm581_vm5, %v2071_v15, %v2079_v31  ;;  %v2088_v33 = vsel %vm581_vm5, %v2079_v31, %v2071_v15  ;;  %6058 = vmatmul.mubr.msk.f32.gmra.mrb[2].mxu0 %vm362_vm0, %v6042_v21  ;;  %v6044_v15 = vld [vmem:[%s8020_s15 + $0x138] sm:$0xff]  ;;  %v8122_v21 = vrot.slane %v6073_v11, %v9453_v20 }
 0x31b   : >> { %6439 = vmatpush1.bf16.msra.mxu0 %v6438_v16  ;;  %v2081_v35 = vpop.permute.xlu1 %2080  ;;  %2053 = vmatprep.mubr.f32.mxu0 %v9429_v13  ;;  %v2106_v56 = vmul.f32 %v8074_v42, %v2088_v33  ;;  %v2107_v5 = vmul.f32 %v8077_v43, %v2084_v32 }
 0x31c   : >> { %v2085_v46 = vsel %vm581_vm5, %v2073_v19, %v2081_v35  ;;  %v2089_v53 = vsel %vm581_vm5, %v2081_v35, %v2073_v19  ;;  %v8119_v19 = vrot.slane %v6073_v11, %v9452_v18  ;;  %v6065_v35 = vld [vmem:[%s8020_s15 + $0x160] sm:$0xff] }
 0x31d   : >> { %v2108_v60 = vmul.f32 %v8074_v42, %v2089_v53  ;;  %v2109_v61 = vmul.f32 %v8077_v43, %v2085_v46  ;;  %v2227_v62 = vpop.permute.xlu0 %2226 }
 0x31e   : >> { %6059 = vmatmul.mubr.msk.f32.gmra.mrb[4].mxu0 %vm362_vm0, %v6043_v44 }
 0x31f   : >> { %v6442_v3 = vpack.c.bf16 %v2108_v60, %v2106_v56  ;;  %v2229_v7 = vpop.permute.xlu1 %2228  ;;  %2059 = vmatprep.mubr.f32.mxu0 %v9429_v13  ;;  %v6440_v16 = vpack.c.bf16 %v2109_v61, %v2107_v5 }
 0x321   : >> { %v2235_v28 = vpop.permute.xlu0 %2234  ;;  %6441 = vmatprep.subr.bf16.mxu0 %v6440_v16 }
 0x322   : >> { %v2242_v31 = vsel %vm741_vm7, %v2227_v62, %v2235_v28  ;;  %v2246_v32 = vsel %vm741_vm7, %v2235_v28, %v2227_v62  ;;  %6060 = vmatmul.mubr.msk.f32.gmra.mrb[6].mxu0 %vm362_vm0, %v6044_v15 }
 0x323   : >> { %6443 = vmatpush1.bf16.msra.mxu0 %v6442_v3  ;;  %v2237_v33 = vpop.permute.xlu1 %2236  ;;  %2193 = vmatprep.mubr.f32.mxu0 %v9429_v13  ;;  %v2262_v53 = vmul.f32 %v8119_v19, %v2246_v32  ;;  %v2263_v56 = vmul.f32 %v8122_v21, %v2242_v31  ;;  %v6066_v3 = vld [vmem:[%s8020_s15 + $0x168] sm:$0xff]  ;;  %v6067_v32 = vld [vmem:[%s8020_s15 + $0x170] sm:$0xff] }
 0x324   : >> { %v2243_v44 = vsel %vm741_vm7, %v2229_v7, %v2237_v33  ;;  %v2247_v46 = vsel %vm741_vm7, %v2237_v33, %v2229_v7 }
 0x325   : >> { %v2264_v5 = vmul.f32 %v8119_v19, %v2247_v46  ;;  %v2265_v60 = vmul.f32 %v8122_v21, %v2243_v44  ;;  %v2231_v61 = vpop.permute.xlu0 %2230 }
 0x326   : >> { %6069 = vmatmul.mubr.msk.f32.vlgmr.msra.gmra.mrb[0].mxu0 %vm362_vm0, %v6065_v35 }
 0x327   : >> { %v6446_v62 = vpack.c.bf16 %v2264_v5, %v2262_v53  ;;  %v2233_v11 = vpop.permute.xlu1 %2232  ;;  %2199 = vmatprep.mubr.f32.mxu0 %v9429_v13  ;;  %v6444_v15 = vpack.c.bf16 %v2265_v60, %v2263_v56 }
 0x329   : >> { %v2239_v16 = vpop.permute.xlu0 %2238  ;;  %6445 = vmatprep.subr.bf16.mxu0 %v6444_v15 }
 0x32a   : >> { %v2244_v7 = vsel %vm741_vm7, %v2231_v61, %v2239_v16  ;;  %v2248_v28 = vsel %vm741_vm7, %v2239_v16, %v2231_v61  ;;  %6070 = vmatmul.mubr.msk.f32.gmra.mrb[2].mxu0 %vm362_vm0, %v6066_v3  ;;  %v6452_v16 = vpack.c.bf16 %v7834_v58, %v7824_v45  ;;  %v6454_v45 = vpack.c.bf16 %v7826_v51, %v7818_v34 }
 0x32b   : >> { %6447 = vmatpush1.bf16.msra.mxu0 %v6446_v62  ;;  %v2241_v31 = vpop.permute.xlu1 %2240  ;;  %2205 = vmatprep.mubr.f32.mxu0 %v9429_v13  ;;  %v2266_v44 = vmul.f32 %v8119_v19, %v2248_v28  ;;  %v2267_v46 = vmul.f32 %v8122_v21, %v2244_v7  ;;  %v6068_v62 = vld [vmem:[%s8020_s15 + $0x178] sm:$0xff]  ;;  %v6077_v28 = vld [vmem:[%s8020_s15 + $0x180] sm:$0xff]  ;;  %v6458_v34 = vpack.c.bf16 %v7842_v8, %v7838_v6 }
 0x32c   : >> { %v2245_v33 = vsel %vm741_vm7, %v2233_v11, %v2241_v31  ;;  %v2249_v35 = vsel %vm741_vm7, %v2241_v31, %v2233_v11  ;;  %v6096_v11 = vld [vmem:[%s9416_s5 + $0xa] sm:$0x3] }
 0x32d   : >> { %v2268_v53 = vmul.f32 %v8119_v19, %v2249_v35  ;;  %v2269_v56 = vmul.f32 %v8122_v21, %v2245_v33  ;;  %v2503_v5 = vpop.permute.xlu0 %2502  ;;  %v8169_v31 = vrot.slane %v6096_v11, %v9453_v20 }
 0x32e   : >> { %6071 = vmatmul.mubr.msk.f32.gmra.mrb[4].mxu0 %vm362_vm0, %v6067_v32 }
 0x32f   : >> { %v6450_v60 = vpack.c.bf16 %v2268_v53, %v2266_v44  ;;  %v2505_v61 = vpop.permute.xlu1 %2504  ;;  %2211 = vmatprep.mubr.f32.mxu0 %v9429_v13  ;;  %v6448_v3 = vpack.c.bf16 %v2269_v56, %v2267_v46  ;;  %v6456_v44 = vpack.c.bf16 %v7852_v14, %v7846_v9  ;;  %v6078_v53 = vld [vmem:[%s8020_s15 + $0x188] sm:$0xff]  ;;  %v6079_v9 = vld [vmem:[%s8020_s15 + $0x190] sm:$0xff] }
 0x331   : >> { %v2511_v15 = vpop.permute.xlu0 %2510  ;;  %6449 = vmatprep.subr.bf16.mxu0 %v6448_v3 }
 0x332   : >> { %6072 = vmatmul.mubr.msk.f32.gmra.mrb[6].mxu0 %vm362_vm0, %v6068_v62  ;;  %v2522_v33 = vsel %vm1015_vm2, %v2511_v15, %v2503_v5 }
 0x333   : >> { %6451 = vmatpush1.bf16.msra.mxu0 %v6450_v60  ;;  %v2513_v7 = vpop.permute.xlu1 %2512  ;;  %2353 = vmatprep.mubr.f32.mxu0 %v9429_v13  ;;  %v2539_v56 = vmul.f32 %v8169_v31, %v2522_v33 }
 0x334   : >> { %6453 = vmatprep.subr.bf16.mxu0 %v6452_v16  ;;  %v2523_v32 = vsel %vm1015_vm2, %v2513_v7, %v2505_v61  ;;  %v2519_v3 = vsel %vm1015_vm2, %v2505_v61, %v2513_v7  ;;  %v8193_v16 = vrot.slane %v6096_v11, %v9452_v18  ;;  %v2518_v61 = vsel %vm1015_vm2, %v2503_v5, %v2511_v15 }
 0x335   : >> { %v2507_v35 = vpop.permute.xlu0 %2506  ;;  %v2541_v58 = vmul.f32 %v8169_v31, %v2523_v32  ;;  %v6080_v32 = vld [vmem:[%s8020_s15 + $0x198] sm:$0xff] }
 0x336   : >> { %6081 = vmatmul.mubr.msk.f32.vlgmr.msra.gmra.mrb[0].mxu0 %vm362_vm0, %v6077_v28  ;;  %v6108_v28 = vld [vmem:[%s9416_s5 + $0xc] sm:$0x3]  ;;  %v2540_v7 = vmul.f32 %v8193_v16, %v2519_v3 }
 0x337   : >> { %6455 = vmatpush1.bf16.msra.mxu0 %v6454_v45  ;;  %v2509_v46 = vpop.permute.xlu1 %2508  ;;  %2359 = vmatprep.mubr.f32.mxu0 %v9429_v13  ;;  %v6460_v51 = vpack.c.bf16 %v2541_v58, %v2539_v56  ;;  %v6088_v56 = vld [vmem:[%s8020_s15 + $0x1a0] sm:$0xff] }
 0x338   : >> { %6457 = vmatprep.subr.bf16.mxu0 %v6456_v44  ;;  %v8211_v44 = vrot.slane %v6108_v28, %v9453_v20 }
 0x339   : >> { %v2515_v60 = vpop.permute.xlu0 %2514 }
 0x33a   : >> { %6082 = vmatmul.mubr.msk.f32.gmra.mrb[2].mxu0 %vm362_vm0, %v6078_v53  ;;  %v2524_v11 = vsel %vm1015_vm2, %v2515_v60, %v2507_v35  ;;  %v2538_v53 = vmul.f32 %v8193_v16, %v2518_v61 }
 0x33b   : >> { %6459 = vmatpush1.bf16.msra.mxu0 %v6458_v34  ;;  %v2517_v62 = vpop.permute.xlu1 %2516  ;;  %2365 = vmatprep.mubr.f32.mxu0 %v9429_v13  ;;  %v2543_v34 = vmul.f32 %v8169_v31, %v2524_v11 }
 0x33c   : >> { %6461 = vmatprep.subr.bf16.mxu0 %v6460_v51  ;;  %v2525_v6 = vsel %vm1015_vm2, %v2517_v62, %v2509_v46  ;;  %v2521_v45 = vsel %vm1015_vm2, %v2509_v46, %v2517_v62  ;;  %v2520_v46 = vsel %vm1015_vm2, %v2507_v35, %v2515_v60  ;;  %v6462_v62 = vpack.c.bf16 %v2540_v7, %v2538_v53  ;;  %v6089_v60 = vld [vmem:[%s8020_s15 + $0x1a8] sm:$0xff] }
 0x33d   : >> { %v2663_v14 = vpop.permute.xlu0 %2662  ;;  %v2545_v58 = vmul.f32 %v8169_v31, %v2525_v6  ;;  %v2542_v59 = vmul.f32 %v8193_v16, %v2520_v46  ;;  %v8238_v46 = vrot.slane %v6108_v28, %v9452_v18 }
 0x33e   : >> { %6083 = vmatmul.mubr.msk.f32.gmra.mrb[4].mxu0 %vm362_vm0, %v6079_v9  ;;  %v2544_v9 = vmul.f32 %v8193_v16, %v2521_v45 }
 0x33f   : >> { %v2665_v8 = vpop.permute.xlu1 %2664  ;;  %2371 = vmatprep.mubr.f32.mxu0 %v9429_v13  ;;  %v6464_v61 = vpack.c.bf16 %v2545_v58, %v2543_v34 }
 0x340   : >> { %v6466_v11 = vpack.c.bf16 %v2544_v9, %v2542_v59 }
 0x341   : >> { %v2671_v33 = vpop.permute.xlu0 %2670 }
 0x342   : >> { %6084 = vmatmul.mubr.msk.f32.gmra.mrb[6].mxu0 %vm362_vm0, %v6080_v32  ;;  %v2682_v5 = vsel %vm1175_vm4, %v2671_v33, %v2663_v14 }
 0x343   : >> { %v2673_v15 = vpop.permute.xlu1 %2672  ;;  %2469 = vmatprep.mubr.f32.mxu0 %v9429_v13  ;;  %v2699_v32 = vmul.f32 %v8211_v44, %v2682_v5  ;;  %v6090_v5 = vld [vmem:[%s8020_s15 + $0x1b0] sm:$0xff] }
 0x344   : >> { %v2683_v51 = vsel %vm1175_vm4, %v2673_v15, %v2665_v8 }
 0x345   : >> { %v2701_v3 = vmul.f32 %v8211_v44, %v2683_v51  ;;  %v2667_v6 = vpop.permute.xlu0 %2666  ;;  %v6120_v51 = vld [vmem:[%s9416_s5 + $0xe] sm:$0x3] }
 0x346   : >> { %6092 = vmatmul.mubr.msk.f32.vlgmr.msra.gmra.mrb[0].mxu0 %vm362_vm0, %v6088_v56  ;;  %v2679_v56 = vsel %vm1175_vm4, %v2665_v8, %v2673_v15  ;;  %v2678_v8 = vsel %vm1175_vm4, %v2663_v14, %v2671_v33 }
 0x347   : >> { %6463 = vmatpush1.bf16.msra.mxu0 %v6462_v62  ;;  %v2669_v35 = vpop.permute.xlu1 %2668  ;;  %2475 = vmatprep.mubr.f32.mxu0 %v9429_v13  ;;  %v6468_v7 = vpack.c.bf16 %v2701_v3, %v2699_v32  ;;  %v6091_v62 = vld [vmem:[%s8020_s15 + $0x1b8] sm:$0xff]  ;;  %v2700_v15 = vmul.f32 %v8238_v46, %v2679_v56 }
 0x348   : >> { %6465 = vmatprep.subr.bf16.mxu0 %v6464_v61  ;;  %v8256_v61 = vrot.slane %v6120_v51, %v9453_v20 }
 0x349   : >> { %v2675_v45 = vpop.permute.xlu0 %2674 }
 0x34a   : >> { %6093 = vmatmul.mubr.msk.f32.gmra.mrb[2].mxu0 %vm362_vm0, %v6089_v60  ;;  %v2684_v28 = vsel %vm1175_vm4, %v2675_v45, %v2667_v6  ;;  %v2698_v60 = vmul.f32 %v8238_v46, %v2678_v8 }
 0x34b   : >> { %6467 = vmatpush1.bf16.msra.mxu0 %v6466_v11  ;;  %v2677_v53 = vpop.permute.xlu1 %2676  ;;  %2481 = vmatprep.mubr.f32.mxu0 %v9429_v13  ;;  %v2703_v11 = vmul.f32 %v8211_v44, %v2684_v28  ;;  %v6101_v28 = vld [vmem:[%s8020_s15 + $0x1c8] sm:$0xff] }
 0x34c   : >> { %6469 = vmatprep.subr.bf16.mxu0 %v6468_v7  ;;  %v2685_v59 = vsel %vm1175_vm4, %v2677_v53, %v2669_v35  ;;  %v2681_v3 = vsel %vm1175_vm4, %v2669_v35, %v2677_v53  ;;  %v6100_v7 = vld [vmem:[%s8020_s15 + $0x1c0] sm:$0xff]  ;;  %v2680_v35 = vsel %vm1175_vm4, %v2667_v6, %v2675_v45  ;;  %v9454_v45 = vmov 0.0  }
 0x34d   : >> { %v2823_v58 = vpop.permute.xlu0 %2822  ;;  %v2705_v32 = vmul.f32 %v8211_v44, %v2685_v59  ;;  %v2704_v56 = vmul.f32 %v8238_v46, %v2681_v3 }
 0x34e   : >> { %6094 = vmatmul.mubr.msk.f32.gmra.mrb[4].mxu0 %vm362_vm0, %v6090_v5  ;;  %v6470_v5 = vpack.c.bf16 %v2700_v15, %v2698_v60 }
 0x34f   : >> { %v2825_v34 = vpop.permute.xlu1 %2824  ;;  %2487 = vmatprep.mubr.f32.mxu0 %v9429_v13  ;;  %v6472_v12 = vpack.c.bf16 %v2705_v32, %v2703_v11 }
 0x351   : >> { %v2831_v9 = vpop.permute.xlu0 %2830 }
 0x352   : >> { %6095 = vmatmul.mubr.msk.f32.gmra.mrb[6].mxu0 %vm362_vm0, %v6091_v62  ;;  %v2842_v14 = vsel %vm1335_vm6, %v2831_v9, %v2823_v58 }
 0x353   : >> { %v2833_v33 = vpop.permute.xlu1 %2832  ;;  %2629 = vmatprep.mubr.f32.mxu0 %v9429_v13  ;;  %v2859_v8 = vmul.f32 %v8256_v61, %v2842_v14  ;;  %v2702_v13 = vmul.f32 %v8238_v46, %v2680_v35 }
 0x354   : >> { %v2843_v53 = vsel %vm1335_vm6, %v2833_v33, %v2825_v34  ;;  %v2839_v35 = vsel %vm1335_vm6, %v2825_v34, %v2833_v33  ;;  %v2838_v34 = vsel %vm1335_vm6, %v2823_v58, %v2831_v9 }
 0x355   : >> { %v2861_v59 = vmul.f32 %v8256_v61, %v2843_v53  ;;  %v2827_v62 = vpop.permute.xlu0 %2826  ;;  %v6474_v60 = vpack.c.bf16 %v2704_v56, %v2702_v13  ;;  %v6132_v53 = vld [vmem:[%s9416_s5 + $0x10] sm:$0x3] }
 0x356   : >> { %6104 = vmatmul.mubr.msk.f32.vlgmr.msra.gmra.mrb[0].mxu0 %vm362_vm0, %v6100_v7  ;;  %v6102_v7 = vld [vmem:[%s8020_s15 + $0x1d0] sm:$0xff] }
 0x357   : >> { %6471 = vmatpush1.bf16.msra.mxu0 %v6470_v5  ;;  %v2829_v6 = vpop.permute.xlu1 %2828  ;;  %2635 = vmatprep.mubr.f32.mxu0 %v9454_v45  ;;  %v6476_v15 = vpack.c.bf16 %v2861_v59, %v2859_v8  ;;  %v6103_v5 = vld [vmem:[%s8020_s15 + $0x1d8] sm:$0xff] }
 0x358   : >> { %6473 = vmatprep.subr.bf16.mxu0 %v6472_v12  ;;  %v8283_v12 = vrot.slane %v6120_v51, %v9452_v18 }
 0x359   : >> { %v2835_v3 = vpop.permute.xlu0 %2834 }
 0x35a   : >> { %6105 = vmatmul.mubr.msk.f32.gmra.mrb[2].mxu0 %vm362_vm0, %v6101_v28  ;;  %v2860_v33 = vmul.f32 %v8283_v12, %v2839_v35  ;;  %v2844_v51 = vsel %vm1335_vm6, %v2835_v3, %v2827_v62  ;;  %v8301_v28 = vrot.slane %v6132_v53, %v9453_v20 }
 0x35b   : >> { %6475 = vmatpush1.bf16.msra.mxu0 %v6474_v60  ;;  %v2837_v14 = vpop.permute.xlu1 %2836  ;;  %2641 = vmatprep.mubr.f32.mxu0 %v9454_v45  ;;  %v6112_v60 = vld [vmem:[%s8020_s15 + $0x1e0] sm:$0xff] }
 0x35c   : >> { %6477 = vmatprep.subr.bf16.mxu0 %v6476_v15  ;;  %v2845_v13 = vsel %vm1335_vm6, %v2837_v14, %v2829_v6  ;;  %v2841_v59 = vsel %vm1335_vm6, %v2829_v6, %v2837_v14  ;;  %v2858_v15 = vmul.f32 %v8283_v12, %v2838_v34  ;;  %v2840_v6 = vsel %vm1335_vm6, %v2827_v62, %v2835_v3  ;;  %v6113_v3 = vld [vmem:[%s8020_s15 + $0x1e8] sm:$0xff] }
 0x35d   : >> { %v2983_v32 = vpop.permute.xlu0 %2982  ;;  %v2865_v8 = vmul.f32 %v8256_v61, %v2845_v13  ;;  %v2863_v14 = vmul.f32 %v8256_v61, %v2844_v51  ;;  %v2864_v13 = vmul.f32 %v8283_v12, %v2841_v59  ;;  %v2862_v30 = vmul.f32 %v8283_v12, %v2840_v6 }
 0x35e   : >> { %6106 = vmatmul.mubr.msk.f32.gmra.mrb[4].mxu0 %vm362_vm0, %v6102_v7  ;;  %v6478_v35 = vpack.c.bf16 %v2860_v33, %v2858_v15  ;;  %v6114_v15 = vld [vmem:[%s8020_s15 + $0x1f0] sm:$0xff]  ;;  %v8328_v6 = vrot.slane %v6132_v53, %v9452_v18 }
 0x35f   : >> { %v2985_v11 = vpop.permute.xlu1 %2984  ;;  %2647 = vmatprep.mubr.f32.mxu0 %v9454_v45  ;;  %v6480_v20 = vpack.c.bf16 %v2865_v8, %v2863_v14  ;;  %v6482_v59 = vpack.c.bf16 %v2864_v13, %v2862_v30  ;;  %v6115_v30 = vld [vmem:[%s8020_s15 + $0x1f8] sm:$0xff]  ;;  %v6124_v13 = vld [vmem:[%s8020_s15 + $0x200] sm:$0xff] }
 0x361   : >> { %v2991_v56 = vpop.permute.xlu0 %2990 }
 0x362   : >> { %6107 = vmatmul.mubr.msk.f32.gmra.mrb[6].mxu0 %vm362_vm0, %v6103_v5  ;;  %v3002_v58 = vsel %vm1495_vm8, %v2991_v56, %v2983_v32  ;;  %v2998_v14 = vsel %vm1495_vm8, %v2983_v32, %v2991_v56 }
 0x363   : >> { %v2993_v9 = vpop.permute.xlu1 %2992  ;;  %2789 = vmatprep.mubr.f32.mxu0 %v9454_v45  ;;  %v3019_v34 = vmul.f32 %v8301_v28, %v3002_v58 }
 0x364   : >> { %v3003_v7 = vsel %vm1495_vm8, %v2993_v9, %v2985_v11  ;;  %v2999_v58 = vsel %vm1495_vm8, %v2985_v11, %v2993_v9 }
 0x365   : >> { %v3021_v5 = vmul.f32 %v8301_v28, %v3003_v7  ;;  %v2987_v51 = vpop.permute.xlu0 %2986  ;;  %v3020_v7 = vmul.f32 %v8328_v6, %v2999_v58  ;;  %v6137_v58 = vld [vmem:[%s8020_s15 + $0x228] sm:$0xff] }
 0x366   : >> { %6116 = vmatmul.mubr.msk.f32.vlgmr.msra.gmra.mrb[0].mxu0 %vm362_vm0, %v6112_v60 }
 0x367   : >> { %6479 = vmatpush1.bf16.msra.mxu0 %v6478_v35  ;;  %v2989_v62 = vpop.permute.xlu1 %2988  ;;  %2795 = vmatprep.mubr.f32.mxu0 %v9454_v45  ;;  %v6484_v33 = vpack.c.bf16 %v3021_v5, %v3019_v34  ;;  %v3018_v35 = vmul.f32 %v8328_v6, %v2998_v14 }
 0x368   : >> { %6481 = vmatprep.subr.bf16.mxu0 %v6480_v20 }
 0x369   : >> { %v2995_v60 = vpop.permute.xlu0 %2994  ;;  %v6486_v5 = vpack.c.bf16 %v3020_v7, %v3018_v35 }
 0x36a   : >> { %6117 = vmatmul.mubr.msk.f32.gmra.mrb[2].mxu0 %vm362_vm0, %v6113_v3  ;;  %v3004_v11 = vsel %vm1495_vm8, %v2995_v60, %v2987_v51  ;;  %v3000_v32 = vsel %vm1495_vm8, %v2987_v51, %v2995_v60  ;;  %v6126_v51 = vld [vmem:[%s8020_s15 + $0x210] sm:$0xff] }
 0x36b   : >> { %6483 = vmatpush1.bf16.msra.mxu0 %v6482_v59  ;;  %2801 = vmatprep.mubr.f32.mxu0 %v9454_v45  ;;  %v2997_v8 = vpop.permute.xlu1 %2996  ;;  %v3023_v56 = vmul.f32 %v8301_v28, %v3004_v11  ;;  %v3022_v3 = vmul.f32 %v8328_v6, %v3000_v32  ;;  %v6138_v60 = vld [vmem:[%s8020_s15 + $0x230] sm:$0xff] }
 0x36c   : >> { %6485 = vmatprep.subr.bf16.mxu0 %v6484_v33  ;;  %v3005_v20 = vsel %vm1495_vm8, %v2997_v8, %v2989_v62  ;;  %v3001_v9 = vsel %vm1495_vm8, %v2989_v62, %v2997_v8  ;;  %v6125_v33 = vld [vmem:[%s8020_s15 + $0x208] sm:$0xff]  ;;  %v6136_v8 = vld [vmem:[%s8020_s15 + $0x220] sm:$0xff] }
 0x36d   : >> { %v3025_v53 = vmul.f32 %v8301_v28, %v3005_v20  ;;  %v3024_v34 = vmul.f32 %v8328_v6, %v3001_v9  ;;  %v6139_v20 = vld [vmem:[%s8020_s15 + $0x238] sm:$0xff] }
 0x36e   : >> { %6118 = vmatmul.mubr.msk.f32.gmra.mrb[4].mxu0 %vm362_vm0, %v6114_v15  ;;  %v6127_v15 = vld [vmem:[%s8020_s15 + $0x218] sm:$0xff] }
 0x36f   : >> { %2807 = vmatprep.mubr.f32.mxu0 %v9454_v45  ;;  %v6488_v62 = vpack.c.bf16 %v3025_v53, %v3023_v56  ;;  %v6490_v59 = vpack.c.bf16 %v3024_v34, %v3022_v3 }
 0x372   : >> { %6119 = vmatmul.mubr.msk.f32.gmra.mrb[6].mxu0 %vm362_vm0, %v6115_v30 }
 0x373   : >> { %2949 = vmatprep.mubr.f32.mxu0 %v9454_v45 }
 0x376   : >> { %6128 = vmatmul.mubr.msk.f32.vlgmr.msra.gmra.mrb[0].mxu0 %vm362_vm0, %v6124_v13 }
 0x377   : >> { %6487 = vmatpush1.bf16.msra.mxu0 %v6486_v5  ;;  %2955 = vmatprep.mubr.f32.mxu0 %v9454_v45 }
 0x378   : >> { %6489 = vmatprep.subr.bf16.mxu0 %v6488_v62 }
 0x37a   : >> { %6129 = vmatmul.mubr.msk.f32.gmra.mrb[2].mxu0 %vm362_vm0, %v6125_v33  ;;  %v3151_v30 = vpop.permute.xlu0 %3150 }
 0x37b   : >> { %6491 = vmatpush1.bf16.msra.mxu0 %v6490_v59  ;;  %2961 = vmatprep.mubr.f32.mxu0 %v9454_v45 }
 0x37c   : >> { %v3156_v14 = vpop.permute.xlu1 %3155 }
 0x37e   : >> { %6130 = vmatmul.mubr.msk.f32.gmra.mrb[4].mxu0 %vm362_vm0, %v6126_v51  ;;  %v3184_v7 = vpop.permute.xlu0 %3183 }
 0x37f   : >> { %2967 = vmatprep.mubr.f32.mxu0 %v9454_v45 }
 0x380   : >> { %v3189_v11 = vpop.permute.xlu1 %3188 }
 0x382   : >> { %6131 = vmatmul.mubr.msk.f32.gmra.mrb[6].mxu0 %vm362_vm0, %v6127_v15  ;;  %v3161_v9 = vpop.permute.xlu0 %3160 }
 0x383   : >> { %3109 = vmatprep.mubr.f32.mxu0 %v9454_v45 }
 0x384   : >> { %v3166_v53 = vpop.permute.xlu1 %3165 }
 0x386   : >> { %6140 = vmatmul.mubr.msk.f32.vlgmr.msra.gmra.mrb[0].mxu0 %vm362_vm0, %v6136_v8  ;;  %v3217_v35 = vpop.permute.xlu0 %3216 }
 0x387   : >> { %3115 = vmatprep.mubr.f32.mxu0 %v9454_v45 }
 0x388   : >> { %v3222_v62 = vpop.permute.xlu1 %3221 }
 0x38a   : >> { %6141 = vmatmul.mubr.msk.f32.gmra.mrb[2].mxu0 %vm362_vm0, %v6137_v58  ;;  %v3194_v8 = vpop.permute.xlu0 %3193 }
 0x38b   : >> { %3121 = vmatprep.mubr.f32.mxu0 %v9454_v45 }
 0x38e   : >> { %6142 = vmatmul.mubr.msk.f32.gmra.mrb[4].mxu0 %vm362_vm0, %v6138_v60 }
 0x38f   : >> { %3127 = vmatprep.mubr.f32.mxu0 %v9454_v45 }
 0x392   : >> { %6143 = vmatmul.mubr.msk.f32.gmra.mrb[6].mxu0 %vm362_vm0, %v6139_v20 }
 0x459   : >> { %v3111_v13 = vpop.f32.mrb[0].mxu0 }
 0x45a   : >> { %v3168_v32 = vadd.f32 %v3151_v30, %v3111_v13  ;;  %v3113_v56 = vpop.f32.mrb[1].mxu0  ;;  %v3199_v13 = vpop.permute.xlu1 %3198 }
 0x45b   : >> { %v3169_v5 = vadd.f32 %v3151_v30, %v3113_v56 }
 0x45c   : >> { %v3201_v34 = vmul.f32 %v3184_v7, %v3168_v32 }
 0x45d   : >> { %v3202_v3 = vmul.f32 %v3184_v7, %v3169_v5  ;;  %v3117_v33 = vpop.f32.mrb[2].mxu0 }
 0x45e   : >> { %v3234_v59 = vadd.f32 %v3217_v35, %v3201_v34  ;;  %v3170_v51 = vadd.f32 %v3156_v14, %v3117_v33  ;;  %v3119_v15 = vpop.f32.mrb[3].mxu0  ;;  %v3227_v34 = vpop.permute.xlu0 %3226 }
 0x45f   : >> { %v3171_v58 = vadd.f32 %v3156_v14, %v3119_v15  ;;  %v3235_v20 = vadd.f32 %v3217_v35, %v3202_v3 }
 0x460   : >> { %v8373_v60 = vmax.f32 %v3234_v59, 0.0  ;;  %v3203_v18 = vmul.f32 %v3189_v11, %v3170_v51 }
 0x461   : >> { %v3204_v29 = vmul.f32 %v3189_v11, %v3171_v58  ;;  %v3123_v38 = vpop.f32.mrb[4].mxu0  ;;  %v8377_v32 = vmax.f32 %v3235_v20, 0.0 }
 0x462   : >> { %v3236_v37 = vadd.f32 %v3222_v62, %v3203_v18  ;;  %v3172_v50 = vadd.f32 %v3161_v9, %v3123_v38  ;;  %3290 = vrot.lane.b32.xlu0 %v8373_v60, %s7048_s22  ;;  %v3125_v30 = vpop.f32.mrb[5].mxu0 }
 0x463   : >> { %v3173_v7 = vadd.f32 %v3161_v9, %v3125_v30  ;;  %v3237_v5 = vadd.f32 %v3222_v62, %v3204_v29 }
 0x464   : >> { %v8379_v56 = vmax.f32 %v3236_v37, 0.0  ;;  %v3205_v14 = vmul.f32 %v3194_v8, %v3172_v50  ;;  %v3232_v50 = vpop.permute.xlu1 %3231 }
 0x465   : >> { %v3206_v33 = vmul.f32 %v3194_v8, %v3173_v7  ;;  %v3129_v35 = vpop.f32.mrb[6].mxu0  ;;  %v8385_v9 = vmax.f32 %v3237_v5, 0.0 }
 0x466   : >> { %v3238_v3 = vadd.f32 %v3227_v34, %v3205_v14  ;;  %v3174_v11 = vadd.f32 %v3166_v53, %v3129_v35  ;;  %3298 = vrot.lane.b32.xlu0 %v8377_v32, %s7048_s22  ;;  %3292 = vrot.lane.b32.xlu1 %v8379_v56, %s7048_s22  ;;  %v3131_v18 = vpop.f32.mrb[7].mxu0 }
 0x467   : >> { %v3175_v38 = vadd.f32 %v3166_v53, %v3131_v18  ;;  %v3239_v37 = vadd.f32 %v3227_v34, %v3206_v33 }
 0x468   : >> { %v8387_v59 = vmax.f32 %v3238_v3, 0.0  ;;  %v3207_v29 = vmul.f32 %v3199_v13, %v3174_v11 }
 0x469   : >> { %v3208_v62 = vmul.f32 %v3199_v13, %v3175_v38  ;;  %v8393_v15 = vmax.f32 %v3239_v37, 0.0  ;;  %v6262_v37 = vld [vmem:[%s7991_s18 + $0x40] sm:$0xff] }
 0x46a   : >> { %v3240_v51 = vadd.f32 %v3232_v50, %v3207_v29  ;;  %3300 = vrot.lane.b32.xlu1 %v8385_v9, %s7048_s22  ;;  %3294 = vrot.lane.b32.xlu0 %v8387_v59, %s7048_s22 }
 0x46b   : >> { %v3241_v53 = vadd.f32 %v3232_v50, %v3208_v62 }
 0x46c   : >> { %v8395_v8 = vmax.f32 %v3240_v51, 0.0 }
 0x46d   : >> { %v8401_v58 = vmax.f32 %v3241_v53, 0.0 }
 0x46e   : >> { %3302 = vrot.lane.b32.xlu0 %v8393_v15, %s7048_s22  ;;  %3296 = vrot.lane.b32.xlu1 %v8395_v8, %s7048_s22 }
 0x472   : >> { %3251 = vrot.lane.b32.xlu0 %v8373_v60, %s7050_s23  ;;  %3304 = vrot.lane.b32.xlu1 %v8401_v58, %s7048_s22  ;;  %s9476_s22 = smov (%p1673_p4), 111  }
 0x476   : >> { %3259 = vrot.lane.b32.xlu0 %v8377_v32, %s7050_s23  ;;  %3253 = vrot.lane.b32.xlu1 %v8379_v56, %s7050_s23 }
 0x47a   : >> { %3255 = vrot.lane.b32.xlu0 %v8387_v59, %s7050_s23  ;;  %3261 = vrot.lane.b32.xlu1 %v8385_v9, %s7050_s23 }
 0x47e   : >> { %3263 = vrot.lane.b32.xlu0 %v8393_v15, %s7050_s23  ;;  %3257 = vrot.lane.b32.xlu1 %v8395_v8, %s7050_s23 }
 0x482   : >> { %3531 = vrot.lane.b32.xlu0 %v8373_v60, %s7051_s24  ;;  %3265 = vrot.lane.b32.xlu1 %v8401_v58, %s7050_s23 }
 0x486   : >> { %3539 = vrot.lane.b32.xlu0 %v8377_v32, %s7051_s24  ;;  %3533 = vrot.lane.b32.xlu1 %v8379_v56, %s7051_s24 }
 0x48a   : >> { %3535 = vrot.lane.b32.xlu0 %v8387_v59, %s7051_s24  ;;  %3541 = vrot.lane.b32.xlu1 %v8385_v9, %s7051_s24 }
 0x48e   : >> { %3543 = vrot.lane.b32.xlu0 %v8393_v15, %s7051_s24  ;;  %3537 = vrot.lane.b32.xlu1 %v8395_v8, %s7051_s24 }
 0x492   : >> { %3679 = vrot.lane.b32.xlu0 %v8373_v60, %s7052_s25  ;;  %3545 = vrot.lane.b32.xlu1 %v8401_v58, %s7051_s24 }
 0x496   : >> { %3687 = vrot.lane.b32.xlu0 %v8377_v32, %s7052_s25  ;;  %3681 = vrot.lane.b32.xlu1 %v8379_v56, %s7052_s25 }
 0x49a   : >> { %3683 = vrot.lane.b32.xlu0 %v8387_v59, %s7052_s25  ;;  %3689 = vrot.lane.b32.xlu1 %v8385_v9, %s7052_s25 }
 0x49e   : >> { %3691 = vrot.lane.b32.xlu0 %v8393_v15, %s7052_s25  ;;  %3685 = vrot.lane.b32.xlu1 %v8395_v8, %s7052_s25 }
 0x4a2   : >> { %3943 = vrot.lane.b32.xlu0 %v8373_v60, %s7053_s26  ;;  %3693 = vrot.lane.b32.xlu1 %v8401_v58, %s7052_s25 }
 0x4a6   : >> { %3951 = vrot.lane.b32.xlu0 %v8377_v32, %s7053_s26  ;;  %3945 = vrot.lane.b32.xlu1 %v8379_v56, %s7053_s26 }
 0x4aa   : >> { %3947 = vrot.lane.b32.xlu0 %v8387_v59, %s7053_s26  ;;  %3953 = vrot.lane.b32.xlu1 %v8385_v9, %s7053_s26 }
 0x4ae   : >> { %3955 = vrot.lane.b32.xlu0 %v8393_v15, %s7053_s26  ;;  %3949 = vrot.lane.b32.xlu1 %v8395_v8, %s7053_s26 }
 0x4b2   : >> { %4091 = vrot.lane.b32.xlu0 %v8373_v60, %s7054_s27  ;;  %3957 = vrot.lane.b32.xlu1 %v8401_v58, %s7053_s26 }
 0x4b6   : >> { %4099 = vrot.lane.b32.xlu0 %v8377_v32, %s7054_s27  ;;  %4093 = vrot.lane.b32.xlu1 %v8379_v56, %s7054_s27 }
 0x4ba   : >> { %4095 = vrot.lane.b32.xlu0 %v8387_v59, %s7054_s27  ;;  %4101 = vrot.lane.b32.xlu1 %v8385_v9, %s7054_s27 }
 0x4be   : >> { %4103 = vrot.lane.b32.xlu0 %v8393_v15, %s7054_s27  ;;  %4097 = vrot.lane.b32.xlu1 %v8395_v8, %s7054_s27 }
 0x4c2   : >> { %4239 = vrot.lane.b32.xlu0 %v8373_v60, %s7055_s8  ;;  %4105 = vrot.lane.b32.xlu1 %v8401_v58, %s7054_s27 }
 0x4c6   : >> { %4247 = vrot.lane.b32.xlu0 %v8377_v32, %s7055_s8  ;;  %4241 = vrot.lane.b32.xlu1 %v8379_v56, %s7055_s8 }
 0x4ca   : >> { %4243 = vrot.lane.b32.xlu0 %v8387_v59, %s7055_s8  ;;  %4249 = vrot.lane.b32.xlu1 %v8385_v9, %s7055_s8 }
 0x4ce   : >> { %4251 = vrot.lane.b32.xlu0 %v8393_v15, %s7055_s8  ;;  %4245 = vrot.lane.b32.xlu1 %v8395_v8, %s7055_s8 }
 0x4d2   : >> { %4387 = vrot.lane.b32.xlu0 %v8373_v60, %s7056_s9  ;;  %4253 = vrot.lane.b32.xlu1 %v8401_v58, %s7055_s8 }
 0x4d4   : >> { %v3291_v20 = vpop.permute.xlu0 %3290 }
 0x4d6   : >> { %4395 = vrot.lane.b32.xlu0 %v8377_v32, %s7056_s9  ;;  %4389 = vrot.lane.b32.xlu1 %v8379_v56, %s7056_s9 }
 0x4d8   : >> { %v3299_v30 = vpop.permute.xlu0 %3298  ;;  %v3293_v13 = vpop.permute.xlu1 %3292 }
 0x4d9   : >> { %v3310_v7 = vsel %vm327_vm1, %v3299_v30, %v3291_v20  ;;  %v3306_v5 = vsel %vm327_vm1, %v3291_v20, %v3299_v30  ;;  %v6264_v30 = vld [vmem:[%s7991_s18 + $0x50] sm:$0xff] }
 0x4da   : >> { %4391 = vrot.lane.b32.xlu0 %v8387_v59, %s7056_s9  ;;  %4397 = vrot.lane.b32.xlu1 %v8385_v9, %s7056_s9  ;;  %v3314_v33 = vmul.f32 %v3310_v7, %v7966_v26  ;;  %v3315_v18 = vmul.f32 %v3306_v5, %v7969_v27  ;;  %v6263_v5 = vld [vmem:[%s7991_s18 + $0x48] sm:$0xff] }
 0x4dc   : >> { %v3301_v14 = vpop.permute.xlu1 %3300  ;;  %v3295_v34 = vpop.permute.xlu0 %3294 }
 0x4dd   : >> { %v3307_v35 = vsel %vm327_vm1, %v3293_v13, %v3301_v14  ;;  %v3311_v3 = vsel %vm327_vm1, %v3301_v14, %v3293_v13 }
 0x4de   : >> { %v3316_v11 = vmul.f32 %v3311_v3, %v7966_v26  ;;  %4399 = vrot.lane.b32.xlu0 %v8393_v15, %s7056_s9  ;;  %4393 = vrot.lane.b32.xlu1 %v8395_v8, %s7056_s9  ;;  %v3317_v38 = vmul.f32 %v3307_v35, %v7969_v27 }
 0x4e0   : >> { %v3303_v29 = vpop.permute.xlu0 %3302  ;;  %v3297_v50 = vpop.permute.xlu1 %3296  ;;  %v6492_v62 = vpack.c.bf16 %v3317_v38, %v3315_v18  ;;  %v6494_v51 = vpack.c.bf16 %v3316_v11, %v3314_v33 }
 0x4e1   : >> { %v3308_v53 = vsel %vm327_vm1, %v3295_v34, %v3303_v29  ;;  %v3312_v20 = vsel %vm327_vm1, %v3303_v29, %v3295_v34 }
 0x4e2   : >> { %6493 = vmatprep.subr.bf16.mxu1 %v6492_v62  ;;  %4543 = vperm.xlu0 %6954, %v6262_v37   ;;  %v3318_v35 = vmul.f32 %v3312_v20, %v7966_v26  ;;  %v3319_v34 = vmul.f32 %v3308_v53, %v7969_v27  ;;  %v6265_v37 = vld [vmem:[%s7991_s18 + $0x58] sm:$0xff] }
 0x4e3   : >> { %4401 = vrot.lane.b32.xlu1 %v8401_v58, %s7056_s9  ;;  %6495 = vmatpush1.bf16.msra.mxu1 %v6494_v51 }
 0x4e4   : >> { %v3252_v13 = vpop.permute.xlu0 %3251  ;;  %v3305_v7 = vpop.permute.xlu1 %3304 }
 0x4e5   : >> { %v3309_v14 = vsel %vm327_vm1, %v3297_v50, %v3305_v7  ;;  %v3313_v33 = vsel %vm327_vm1, %v3305_v7, %v3297_v50 }
 0x4e6   : >> { %v3320_v3 = vmul.f32 %v3313_v33, %v7966_v26  ;;  %v3321_v11 = vmul.f32 %v3309_v14, %v7969_v27  ;;  %4553 = vperm.xlu0 %6954, %v6264_v30   ;;  %v6171_v26 = vld [vmem:[%s8020_s15 + $0x260] sm:$0xff]  ;;  %v6172_v33 = vld [vmem:[%s8020_s15 + $0x268] sm:$0xff] }
 0x4e7   : >> { %4548 = vperm.xlu1 %6955, %v6263_v5  }
 0x4e8   : >> { %v3260_v18 = vpop.permute.xlu0 %3259  ;;  %v3254_v38 = vpop.permute.xlu1 %3253  ;;  %v6496_v29 = vpack.c.bf16 %v3321_v11, %v3319_v34  ;;  %v6498_v62 = vpack.c.bf16 %v3320_v3, %v3318_v35 }
 0x4e9   : >> { %v3267_v50 = vsel %vm278_vm3, %v3252_v13, %v3260_v18  ;;  %v3271_v51 = vsel %vm278_vm3, %v3260_v18, %v3252_v13 }
 0x4ea   : >> { %6497 = vmatprep.subr.bf16.mxu1 %v6496_v29  ;;  %v3275_v7 = vmul.f32 %v3271_v51, %v8023_v4  ;;  %v3276_v5 = vmul.f32 %v3267_v50, %v8027_v52 }
 0x4eb   : >> { %4558 = vperm.xlu1 %6955, %v6265_v37   ;;  %6499 = vmatpush1.bf16.msra.mxu1 %v6498_v62  ;;  %v6173_v37 = vld [vmem:[%s8020_s15 + $0x270] sm:$0xff] }
 0x4ec   : >> { %v3256_v53 = vpop.permute.xlu0 %3255  ;;  %v3262_v27 = vpop.permute.xlu1 %3261 }
 0x4ed   : >> { %v3268_v20 = vsel %vm278_vm3, %v3254_v38, %v3262_v27  ;;  %v3272_v30 = vsel %vm278_vm3, %v3262_v27, %v3254_v38 }
 0x4ee   : >> { %v3277_v14 = vmul.f32 %v3272_v30, %v8023_v4  ;;  %v3278_v13 = vmul.f32 %v3268_v20, %v8027_v52  ;;  %6175 = vmatmul.mubr.msk.f32.vlgmr.msra.gmra.mrb[0].mxu1 %vm362_vm0, %v6171_v26  ;;  %v6174_v30 = vld [vmem:[%s8020_s15 + $0x278] sm:$0xff] }
 0x4ef   : >> { %3411 = vmatprep.mubr.f32.mxu1 %v9454_v45 }
 0x4f0   : >> { %v6502_v35 = vpack.c.bf16 %v3277_v14, %v3275_v7  ;;  %v3264_v34 = vpop.permute.xlu0 %3263  ;;  %v3258_v3 = vpop.permute.xlu1 %3257  ;;  %v6500_v11 = vpack.c.bf16 %v3278_v13, %v3276_v5 }
 0x4f1   : >> { %v3269_v18 = vsel %vm278_vm3, %v3256_v53, %v3264_v34  ;;  %v3273_v38 = vsel %vm278_vm3, %v3264_v34, %v3256_v53 }
 0x4f2   : >> { %6176 = vmatmul.mubr.msk.f32.gmra.mrb[2].mxu1 %vm362_vm0, %v6172_v33  ;;  %6501 = vmatprep.subr.bf16.mxu1 %v6500_v11  ;;  %v3279_v26 = vmul.f32 %v3273_v38, %v8023_v4  ;;  %v3280_v27 = vmul.f32 %v3269_v18, %v8027_v52 }
 0x4f3   : >> { %6503 = vmatpush1.bf16.msra.mxu1 %v6502_v35  ;;  %3417 = vmatprep.mubr.f32.mxu1 %v9454_v45 }
 0x4f4   : >> { %v3532_v29 = vpop.permute.xlu0 %3531  ;;  %v3266_v62 = vpop.permute.xlu1 %3265 }
 0x4f5   : >> { %v3270_v50 = vsel %vm278_vm3, %v3258_v3, %v3266_v62  ;;  %v3274_v51 = vsel %vm278_vm3, %v3266_v62, %v3258_v3  ;;  %v6165_v62 = vld [vmem:[%s8020_s15 + $0x248] sm:$0xff] }
 0x4f6   : >> { %v3281_v20 = vmul.f32 %v3274_v51, %v8023_v4  ;;  %v3282_v53 = vmul.f32 %v3270_v50, %v8027_v52  ;;  %6177 = vmatmul.mubr.msk.f32.gmra.mrb[4].mxu1 %vm362_vm0, %v6173_v37  ;;  %v6164_v52 = vld [vmem:[%s8020_s15 + $0x240] sm:$0xff] }
 0x4f7   : >> { %3423 = vmatprep.mubr.f32.mxu1 %v9454_v45 }
 0x4f8   : >> { %v6506_v7 = vpack.c.bf16 %v3281_v20, %v3279_v26  ;;  %v3540_v5 = vpop.permute.xlu0 %3539  ;;  %v3534_v14 = vpop.permute.xlu1 %3533  ;;  %v6504_v13 = vpack.c.bf16 %v3282_v53, %v3280_v27 }
 0x4f9   : >> { %v3547_v33 = vsel %vm581_vm5, %v3532_v29, %v3540_v5  ;;  %v3551_v4 = vsel %vm581_vm5, %v3540_v5, %v3532_v29 }
 0x4fa   : >> { %6178 = vmatmul.mubr.msk.f32.gmra.mrb[6].mxu1 %vm362_vm0, %v6174_v30  ;;  %6505 = vmatprep.subr.bf16.mxu1 %v6504_v13  ;;  %v3555_v18 = vmul.f32 %v3551_v4, %v8074_v42  ;;  %v3556_v38 = vmul.f32 %v3547_v33, %v8077_v43  ;;  %v6166_v30 = vld [vmem:[%s8020_s15 + $0x250] sm:$0xff] }
 0x4fb   : >> { %6507 = vmatpush1.bf16.msra.mxu1 %v6506_v7  ;;  %3506 = vmatprep.mubr.f32.mxu1 %v9454_v45 }
 0x4fc   : >> { %v3536_v35 = vpop.permute.xlu0 %3535  ;;  %v3542_v34 = vpop.permute.xlu1 %3541 }
 0x4fd   : >> { %v3548_v3 = vsel %vm581_vm5, %v3534_v14, %v3542_v34  ;;  %v3552_v11 = vsel %vm581_vm5, %v3542_v34, %v3534_v14  ;;  %v6167_v34 = vld [vmem:[%s8020_s15 + $0x258] sm:$0xff] }
 0x4fe   : >> { %v3557_v37 = vmul.f32 %v3552_v11, %v8074_v42  ;;  %v3558_v29 = vmul.f32 %v3548_v3, %v8077_v43  ;;  %6179 = vmatmul.mubr.msk.f32.vlgmr.msra.gmra.mrb[0].mxu1 %vm362_vm0, %v6164_v52 }
 0x4ff   : >> { %3512 = vmatprep.mubr.f32.mxu1 %v9454_v45 }
 0x500   : >> { %v6510_v50 = vpack.c.bf16 %v3557_v37, %v3555_v18  ;;  %v3544_v51 = vpop.permute.xlu0 %3543  ;;  %v3538_v26 = vpop.permute.xlu1 %3537  ;;  %v6508_v27 = vpack.c.bf16 %v3558_v29, %v3556_v38 }
 0x501   : >> { %v3549_v20 = vsel %vm581_vm5, %v3536_v35, %v3544_v51  ;;  %v3553_v53 = vsel %vm581_vm5, %v3544_v51, %v3536_v35 }
 0x502   : >> { %6180 = vmatmul.mubr.msk.f32.gmra.mrb[2].mxu1 %vm362_vm0, %v6165_v62  ;;  %6509 = vmatprep.subr.bf16.mxu1 %v6508_v27  ;;  %v3559_v33 = vmul.f32 %v3553_v53, %v8074_v42  ;;  %v3560_v4 = vmul.f32 %v3549_v20, %v8077_v43 }
 0x503   : >> { %6511 = vmatpush1.bf16.msra.mxu1 %v6510_v50  ;;  %3518 = vmatprep.mubr.f32.mxu1 %v9454_v45 }
 0x504   : >> { %v3680_v7 = vpop.permute.xlu0 %3679  ;;  %v3546_v5 = vpop.permute.xlu1 %3545 }
 0x505   : >> { %v3550_v14 = vsel %vm581_vm5, %v3538_v26, %v3546_v5  ;;  %v3554_v13 = vsel %vm581_vm5, %v3546_v5, %v3538_v26 }
 0x506   : >> { %v3561_v52 = vmul.f32 %v3554_v13, %v8074_v42  ;;  %v3562_v35 = vmul.f32 %v3550_v14, %v8077_v43  ;;  %6181 = vmatmul.mubr.msk.f32.gmra.mrb[4].mxu1 %vm362_vm0, %v6166_v30  ;;  %v6186_v43 = vld [vmem:[%s8020_s15 + $0x280] sm:$0xff]  ;;  %v6187_v30 = vld [vmem:[%s8020_s15 + $0x288] sm:$0xff] }
 0x507   : >> { %3524 = vmatprep.mubr.f32.mxu1 %v9454_v45 }
 0x508   : >> { %v6514_v3 = vpack.c.bf16 %v3561_v52, %v3559_v33  ;;  %v3688_v11 = vpop.permute.xlu0 %3687  ;;  %v3682_v18 = vpop.permute.xlu1 %3681  ;;  %v6512_v38 = vpack.c.bf16 %v3562_v35, %v3560_v4  ;;  %v6188_v52 = vld [vmem:[%s8020_s15 + $0x290] sm:$0xff] }
 0x509   : >> { %v3695_v37 = vsel %vm741_vm7, %v3680_v7, %v3688_v11  ;;  %v3699_v42 = vsel %vm741_vm7, %v3688_v11, %v3680_v7 }
 0x50a   : >> { %6182 = vmatmul.mubr.msk.f32.gmra.mrb[6].mxu1 %vm362_vm0, %v6167_v34  ;;  %6513 = vmatprep.subr.bf16.mxu1 %v6512_v38  ;;  %v3703_v26 = vmul.f32 %v3699_v42, %v8119_v19  ;;  %v3704_v27 = vmul.f32 %v3695_v37, %v8122_v21 }
 0x50b   : >> { %6515 = vmatpush1.bf16.msra.mxu1 %v6514_v3  ;;  %3646 = vmatprep.mubr.f32.mxu1 %v9454_v45 }
 0x50c   : >> { %v3684_v29 = vpop.permute.xlu0 %3683  ;;  %v3690_v62 = vpop.permute.xlu1 %3689 }
 0x50d   : >> { %v3696_v50 = vsel %vm741_vm7, %v3682_v18, %v3690_v62  ;;  %v3700_v51 = vsel %vm741_vm7, %v3690_v62, %v3682_v18 }
 0x50e   : >> { %v3705_v20 = vmul.f32 %v3700_v51, %v8119_v19  ;;  %v3706_v53 = vmul.f32 %v3696_v50, %v8122_v21  ;;  %6190 = vmatmul.mubr.msk.f32.vlgmr.msra.gmra.mrb[0].mxu1 %vm362_vm0, %v6186_v43  ;;  %v6189_v43 = vld [vmem:[%s8020_s15 + $0x298] sm:$0xff] }
 0x50f   : >> { %3652 = vmatprep.mubr.f32.mxu1 %v9454_v45 }
 0x510   : >> { %v6518_v7 = vpack.c.bf16 %v3705_v20, %v3703_v26  ;;  %v3692_v5 = vpop.permute.xlu0 %3691  ;;  %v3686_v14 = vpop.permute.xlu1 %3685  ;;  %v6516_v13 = vpack.c.bf16 %v3706_v53, %v3704_v27  ;;  %v6524_v26 = vpack.c.bf16 %v8385_v9, %v8377_v32  ;;  %v6528_v32 = vpack.c.bf16 %v8401_v58, %v8393_v15  ;;  %v6198_v9 = vld [vmem:[%s8020_s15 + $0x2a8] sm:$0xff]  ;;  %v6199_v15 = vld [vmem:[%s8020_s15 + $0x2b0] sm:$0xff] }
 0x511   : >> { %v3697_v33 = vsel %vm741_vm7, %v3684_v29, %v3692_v5  ;;  %v3701_v4 = vsel %vm741_vm7, %v3692_v5, %v3684_v29 }
 0x512   : >> { %6191 = vmatmul.mubr.msk.f32.gmra.mrb[2].mxu1 %vm362_vm0, %v6187_v30  ;;  %6517 = vmatprep.subr.bf16.mxu1 %v6516_v13  ;;  %v3707_v18 = vmul.f32 %v3701_v4, %v8119_v19  ;;  %v3708_v38 = vmul.f32 %v3697_v33, %v8122_v21  ;;  %v6526_v30 = vpack.c.bf16 %v8379_v56, %v8373_v60 }
 0x513   : >> { %6519 = vmatpush1.bf16.msra.mxu1 %v6518_v7  ;;  %3658 = vmatprep.mubr.f32.mxu1 %v9454_v45  ;;  %v6530_v60 = vpack.c.bf16 %v8395_v8, %v8387_v59  ;;  %v6200_v59 = vld [vmem:[%s8020_s15 + $0x2b8] sm:$0xff] }
 0x514   : >> { %v3944_v35 = vpop.permute.xlu0 %3943  ;;  %v3694_v34 = vpop.permute.xlu1 %3693 }
 0x515   : >> { %v3698_v3 = vsel %vm741_vm7, %v3686_v14, %v3694_v34  ;;  %v3702_v11 = vsel %vm741_vm7, %v3694_v34, %v3686_v14 }
 0x516   : >> { %v3709_v37 = vmul.f32 %v3702_v11, %v8119_v19  ;;  %v3710_v42 = vmul.f32 %v3698_v3, %v8122_v21  ;;  %6192 = vmatmul.mubr.msk.f32.gmra.mrb[4].mxu1 %vm362_vm0, %v6188_v52  ;;  %v6197_v19 = vld [vmem:[%s8020_s15 + $0x2a0] sm:$0xff] }
 0x517   : >> { %3664 = vmatprep.mubr.f32.mxu1 %v9454_v45 }
 0x518   : >> { %v6522_v29 = vpack.c.bf16 %v3709_v37, %v3707_v18  ;;  %v3952_v62 = vpop.permute.xlu0 %3951  ;;  %v3946_v50 = vpop.permute.xlu1 %3945  ;;  %v6520_v51 = vpack.c.bf16 %v3710_v42, %v3708_v38 }
 0x519   : >> { %v3963_v20 = vsel %vm1015_vm2, %v3952_v62, %v3944_v35  ;;  %v3959_v8 = vsel %vm1015_vm2, %v3944_v35, %v3952_v62  ;;  %v6208_v35 = vld [vmem:[%s8020_s15 + $0x2c0] sm:$0xff] }
 0x51a   : >> { %6193 = vmatmul.mubr.msk.f32.gmra.mrb[6].mxu1 %vm362_vm0, %v6189_v43  ;;  %6521 = vmatprep.subr.bf16.mxu1 %v6520_v51  ;;  %v3968_v5 = vmul.f32 %v3963_v20, %v8169_v31  ;;  %v3967_v42 = vmul.f32 %v3959_v8, %v8193_v16 }
 0x51b   : >> { %6523 = vmatpush1.bf16.msra.mxu1 %v6522_v29  ;;  %3794 = vmatprep.mubr.f32.mxu1 %v9454_v45 }
 0x51c   : >> { %v3948_v21 = vpop.permute.xlu0 %3947  ;;  %6525 = vmatprep.subr.bf16.mxu1 %v6524_v26  ;;  %v3954_v27 = vpop.permute.xlu1 %3953 }
 0x51d   : >> { %v3964_v53 = vsel %vm1015_vm2, %v3954_v27, %v3946_v50  ;;  %v3960_v4 = vsel %vm1015_vm2, %v3946_v50, %v3954_v27 }
 0x51e   : >> { %v3970_v7 = vmul.f32 %v3964_v53, %v8169_v31  ;;  %6201 = vmatmul.mubr.msk.f32.vlgmr.msra.gmra.mrb[0].mxu1 %vm362_vm0, %v6197_v19  ;;  %v3969_v11 = vmul.f32 %v3960_v4, %v8193_v16 }
 0x51f   : >> { %6527 = vmatpush1.bf16.msra.mxu1 %v6526_v30  ;;  %3800 = vmatprep.mubr.f32.mxu1 %v9454_v45 }
 0x520   : >> { %v3956_v14 = vpop.permute.xlu0 %3955  ;;  %v3950_v13 = vpop.permute.xlu1 %3949  ;;  %6529 = vmatprep.subr.bf16.mxu1 %v6528_v32  ;;  %v6532_v56 = vpack.c.bf16 %v3970_v7, %v3968_v5  ;;  %v6534_v26 = vpack.c.bf16 %v3969_v11, %v3967_v42 }
 0x521   : >> { %v3965_v18 = vsel %vm1015_vm2, %v3956_v14, %v3948_v21  ;;  %v3961_v29 = vsel %vm1015_vm2, %v3948_v21, %v3956_v14  ;;  %v6210_v14 = vld [vmem:[%s8020_s15 + $0x2d0] sm:$0xff] }
 0x522   : >> { %6202 = vmatmul.mubr.msk.f32.gmra.mrb[2].mxu1 %vm362_vm0, %v6198_v9  ;;  %v3972_v62 = vmul.f32 %v3965_v18, %v8169_v31  ;;  %v3971_v21 = vmul.f32 %v3961_v29, %v8193_v16 }
 0x523   : >> { %6531 = vmatpush1.bf16.msra.mxu1 %v6530_v60  ;;  %3806 = vmatprep.mubr.f32.mxu1 %v9454_v45 }
 0x524   : >> { %v4092_v58 = vpop.permute.xlu0 %4091  ;;  %v3958_v33 = vpop.permute.xlu1 %3957  ;;  %6533 = vmatprep.subr.bf16.mxu1 %v6532_v56 }
 0x525   : >> { %v3966_v52 = vsel %vm1015_vm2, %v3958_v33, %v3950_v13  ;;  %v3962_v38 = vsel %vm1015_vm2, %v3950_v13, %v3958_v33 }
 0x526   : >> { %6203 = vmatmul.mubr.msk.f32.gmra.mrb[4].mxu1 %vm362_vm0, %v6199_v15  ;;  %v3974_v37 = vmul.f32 %v3966_v52, %v8169_v31  ;;  %v3973_v19 = vmul.f32 %v3962_v38, %v8193_v16  ;;  %v6209_v31 = vld [vmem:[%s8020_s15 + $0x2c8] sm:$0xff]  ;;  %v6211_v15 = vld [vmem:[%s8020_s15 + $0x2d8] sm:$0xff] }
 0x527   : >> { %3812 = vmatprep.mubr.f32.mxu1 %v9454_v45 }
 0x528   : >> { %v4100_v34 = vpop.permute.xlu0 %4099  ;;  %v4094_v3 = vpop.permute.xlu1 %4093  ;;  %v6536_v30 = vpack.c.bf16 %v3974_v37, %v3972_v62  ;;  %v6538_v5 = vpack.c.bf16 %v3973_v19, %v3971_v21  ;;  %v6221_v21 = vld [vmem:[%s8020_s15 + $0x2f0] sm:$0xff] }
 0x529   : >> { %v4111_v43 = vsel %vm1175_vm4, %v4100_v34, %v4092_v58  ;;  %v4107_v33 = vsel %vm1175_vm4, %v4092_v58, %v4100_v34  ;;  %v6219_v58 = vld [vmem:[%s8020_s15 + $0x2e0] sm:$0xff] }
 0x52a   : >> { %6204 = vmatmul.mubr.msk.f32.gmra.mrb[6].mxu1 %vm362_vm0, %v6200_v59  ;;  %v4116_v20 = vmul.f32 %v4111_v43, %v8211_v44  ;;  %v4115_v18 = vmul.f32 %v4107_v33, %v8238_v46 }
 0x52b   : >> { %3910 = vmatprep.mubr.f32.mxu1 %v9454_v45 }
 0x52c   : >> { %v4096_v50 = vpop.permute.xlu0 %4095  ;;  %v4102_v51 = vpop.permute.xlu1 %4101 }
 0x52d   : >> { %v4112_v27 = vsel %vm1175_vm4, %v4102_v51, %v4094_v3  ;;  %v4108_v16 = vsel %vm1175_vm4, %v4094_v3, %v4102_v51 }
 0x52e   : >> { %v4118_v53 = vmul.f32 %v4112_v27, %v8211_v44  ;;  %6212 = vmatmul.mubr.msk.f32.vlgmr.msra.gmra.mrb[0].mxu1 %vm362_vm0, %v6208_v35  ;;  %v4117_v59 = vmul.f32 %v4108_v16, %v8238_v46 }
 0x52f   : >> { %6535 = vmatpush1.bf16.msra.mxu1 %v6534_v26  ;;  %3916 = vmatprep.mubr.f32.mxu1 %v9454_v45 }
 0x530   : >> { %6537 = vmatprep.subr.bf16.mxu1 %v6536_v30  ;;  %v4104_v7 = vpop.permute.xlu0 %4103  ;;  %v4098_v32 = vpop.permute.xlu1 %4097  ;;  %v6540_v9 = vpack.c.bf16 %v4118_v53, %v4116_v20  ;;  %v6542_v35 = vpack.c.bf16 %v4117_v59, %v4115_v18 }
 0x531   : >> { %v4113_v8 = vsel %vm1175_vm4, %v4104_v7, %v4096_v50  ;;  %v4109_v34 = vsel %vm1175_vm4, %v4096_v50, %v4104_v7 }
 0x532   : >> { %6213 = vmatmul.mubr.msk.f32.gmra.mrb[2].mxu1 %vm362_vm0, %v6209_v31  ;;  %v4120_v37 = vmul.f32 %v4113_v8, %v8211_v44  ;;  %v4119_v50 = vmul.f32 %v4109_v34, %v8238_v46 }
 0x533   : >> { %6539 = vmatpush1.bf16.msra.mxu1 %v6538_v5  ;;  %3922 = vmatprep.mubr.f32.mxu1 %v9454_v45 }
 0x534   : >> { %6541 = vmatprep.subr.bf16.mxu1 %v6540_v9  ;;  %v4240_v13 = vpop.permute.xlu0 %4239  ;;  %v4106_v60 = vpop.permute.xlu1 %4105  ;;  %v6222_v9 = vld [vmem:[%s8020_s15 + $0x2f8] sm:$0xff] }
 0x535   : >> { %v4114_v56 = vsel %vm1175_vm4, %v4106_v60, %v4098_v32  ;;  %v4110_v3 = vsel %vm1175_vm4, %v4098_v32, %v4106_v60 }
 0x536   : >> { %6214 = vmatmul.mubr.msk.f32.gmra.mrb[4].mxu1 %vm362_vm0, %v6210_v14  ;;  %v4122_v11 = vmul.f32 %v4114_v56, %v8211_v44  ;;  %v4121_v29 = vmul.f32 %v4110_v3, %v8238_v46  ;;  %v6220_v44 = vld [vmem:[%s8020_s15 + $0x2e8] sm:$0xff] }
 0x537   : >> { %3928 = vmatprep.mubr.f32.mxu1 %v9454_v45 }
 0x538   : >> { %v4248_v4 = vpop.permute.xlu0 %4247  ;;  %v4242_v52 = vpop.permute.xlu1 %4241  ;;  %v6544_v19 = vpack.c.bf16 %v4122_v11, %v4120_v37  ;;  %v6546_v30 = vpack.c.bf16 %v4121_v29, %v4119_v50 }
 0x539   : >> { %v4259_v38 = vsel %vm1335_vm6, %v4248_v4, %v4240_v13  ;;  %v4255_v5 = vsel %vm1335_vm6, %v4240_v13, %v4248_v4  ;;  %v6230_v13 = vld [vmem:[%s8020_s15 + $0x300] sm:$0xff] }
 0x53a   : >> { %6215 = vmatmul.mubr.msk.f32.gmra.mrb[6].mxu1 %vm362_vm0, %v6211_v15  ;;  %v4264_v51 = vmul.f32 %v4259_v38, %v8256_v61 }
 0x53b   : >> { %4058 = vmatprep.mubr.f32.mxu1 %v9454_v45 }
 0x53c   : >> { %v4244_v42 = vpop.permute.xlu0 %4243  ;;  %v4250_v43 = vpop.permute.xlu1 %4249 }
 0x53d   : >> { %v4260_v62 = vsel %vm1335_vm6, %v4250_v43, %v4242_v52  ;;  %v4256_v46 = vsel %vm1335_vm6, %v4242_v52, %v4250_v43  ;;  %v4263_v52 = vmul.f32 %v4255_v5, %v8283_v12 }
 0x53e   : >> { %v4266_v26 = vmul.f32 %v4260_v62, %v8256_v61  ;;  %6223 = vmatmul.mubr.msk.f32.vlgmr.msra.gmra.mrb[0].mxu1 %vm362_vm0, %v6219_v58  ;;  %v4265_v16 = vmul.f32 %v4256_v46, %v8283_v12  ;;  %v6241_v46 = vld [vmem:[%s8020_s15 + $0x320] sm:$0xff] }
 0x53f   : >> { %6543 = vmatpush1.bf16.msra.mxu1 %v6542_v35  ;;  %4064 = vmatprep.mubr.f32.mxu1 %v9454_v45 }
 0x540   : >> { %6545 = vmatprep.subr.bf16.mxu1 %v6544_v19  ;;  %v4252_v27 = vpop.permute.xlu0 %4251  ;;  %v4246_v20 = vpop.permute.xlu1 %4245  ;;  %v6548_v53 = vpack.c.bf16 %v4266_v26, %v4264_v51  ;;  %v6550_v11 = vpack.c.bf16 %v4265_v16, %v4263_v52  ;;  %v6232_v51 = vld [vmem:[%s8020_s15 + $0x310] sm:$0xff]  ;;  %v6242_v16 = vld [vmem:[%s8020_s15 + $0x328] sm:$0xff] }
 0x541   : >> { %v4261_v56 = vsel %vm1335_vm6, %v4252_v27, %v4244_v42  ;;  %v4257_v4 = vsel %vm1335_vm6, %v4244_v42, %v4252_v27  ;;  %v6254_v52 = vld [vmem:[%s8020_s15 + $0x350] sm:$0xff] }
 0x542   : >> { %6224 = vmatmul.mubr.msk.f32.gmra.mrb[2].mxu1 %vm362_vm0, %v6220_v44  ;;  %v4268_v8 = vmul.f32 %v4261_v56, %v8256_v61  ;;  %v4267_v43 = vmul.f32 %v4257_v4, %v8283_v12  ;;  %v6233_v44 = vld [vmem:[%s8020_s15 + $0x318] sm:$0xff] }
 0x543   : >> { %6547 = vmatpush1.bf16.msra.mxu1 %v6546_v30  ;;  %4070 = vmatprep.mubr.f32.mxu1 %v9454_v45 }
 0x544   : >> { %6549 = vmatprep.subr.bf16.mxu1 %v6548_v53  ;;  %v4388_v31 = vpop.permute.xlu0 %4387  ;;  %v4254_v7 = vpop.permute.xlu1 %4253 }
 0x545   : >> { %v4262_v32 = vsel %vm1335_vm6, %v4254_v7, %v4246_v20  ;;  %v4258_v15 = vsel %vm1335_vm6, %v4246_v20, %v4254_v7 }
 0x546   : >> { %6225 = vmatmul.mubr.msk.f32.gmra.mrb[4].mxu1 %vm362_vm0, %v6221_v21  ;;  %v4270_v33 = vmul.f32 %v4262_v32, %v8256_v61  ;;  %v4269_v18 = vmul.f32 %v4258_v15, %v8283_v12  ;;  %v6231_v61 = vld [vmem:[%s8020_s15 + $0x308] sm:$0xff]  ;;  %v6252_v15 = vld [vmem:[%s8020_s15 + $0x340] sm:$0xff] }
 0x547   : >> { %4076 = vmatprep.mubr.f32.mxu1 %v9454_v45 }
 0x548   : >> { %v4396_v14 = vpop.permute.xlu0 %4395  ;;  %v4390_v60 = vpop.permute.xlu1 %4389  ;;  %v6552_v37 = vpack.c.bf16 %v4270_v33, %v4268_v8  ;;  %v6554_v62 = vpack.c.bf16 %v4269_v18, %v4267_v43  ;;  %v6253_v33 = vld [vmem:[%s8020_s15 + $0x348] sm:$0xff] }
 0x549   : >> { %v4407_v59 = vsel %vm1495_vm8, %v4396_v14, %v4388_v31  ;;  %v4403_v27 = vsel %vm1495_vm8, %v4388_v31, %v4396_v14 }
 0x54a   : >> { %6226 = vmatmul.mubr.msk.f32.gmra.mrb[6].mxu1 %vm362_vm0, %v6222_v9  ;;  %v4412_v58 = vmul.f32 %v4407_v59, %v8301_v28  ;;  %v4411_v7 = vmul.f32 %v4403_v27, %v8328_v6  ;;  %v6255_v59 = vld [vmem:[%s8020_s15 + $0x358] sm:$0xff] }
 0x54b   : >> { %4206 = vmatprep.mubr.f32.mxu1 %v9454_v45 }
 0x54c   : >> { %v4398_v3 = vpop.permute.xlu1 %4397  ;;  %v4392_v42 = vpop.permute.xlu0 %4391 }
 0x54d   : >> { %v4408_v38 = vsel %vm1495_vm8, %v4398_v3, %v4390_v60  ;;  %v4404_v12 = vsel %vm1495_vm8, %v4390_v60, %v4398_v3 }
 0x54e   : >> { %v4414_v34 = vmul.f32 %v4408_v38, %v8301_v28  ;;  %6234 = vmatmul.mubr.msk.f32.vlgmr.msra.gmra.mrb[0].mxu1 %vm362_vm0, %v6230_v13  ;;  %v4413_v20 = vmul.f32 %v4404_v12, %v8328_v6 }
 0x54f   : >> { %6551 = vmatpush1.bf16.msra.mxu1 %v6550_v11  ;;  %4212 = vmatprep.mubr.f32.mxu1 %v9454_v45 }
 0x550   : >> { %6553 = vmatprep.subr.bf16.mxu1 %v6552_v37  ;;  %v4394_v35 = vpop.permute.xlu1 %4393  ;;  %v6556_v29 = vpack.c.bf16 %v4414_v34, %v4412_v58  ;;  %v4400_v19 = vpop.permute.xlu0 %4399  ;;  %v6558_v9 = vpack.c.bf16 %v4413_v20, %v4411_v7 }
 0x551   : >> { %v4409_v53 = vsel %vm1495_vm8, %v4400_v19, %v4392_v42  ;;  %v4405_v31 = vsel %vm1495_vm8, %v4392_v42, %v4400_v19 }
 0x552   : >> { %6235 = vmatmul.mubr.msk.f32.gmra.mrb[2].mxu1 %vm362_vm0, %v6231_v61  ;;  %v4416_v32 = vmul.f32 %v4409_v53, %v8301_v28  ;;  %v4415_v60 = vmul.f32 %v4405_v31, %v8328_v6 }
 0x553   : >> { %6555 = vmatpush1.bf16.msra.mxu1 %v6554_v62  ;;  %4218 = vmatprep.mubr.f32.mxu1 %v9454_v45 }
 0x554   : >> { %6557 = vmatprep.subr.bf16.mxu1 %v6556_v29 }
 0x555   : >> { %v4402_v26 = vpop.permute.xlu1 %4401 }
 0x556   : >> { %6236 = vmatmul.mubr.msk.f32.gmra.mrb[4].mxu1 %vm362_vm0, %v6232_v51  ;;  %v4410_v50 = vsel %vm1495_vm8, %v4402_v26, %v4394_v35  ;;  %v4406_v30 = vsel %vm1495_vm8, %v4394_v35, %v4402_v26 }
 0x557   : >> { %4224 = vmatprep.mubr.f32.mxu1 %v9454_v45  ;;  %v4418_v21 = vmul.f32 %v4410_v50, %v8301_v28  ;;  %v4417_v5 = vmul.f32 %v4406_v30, %v8328_v6  ;;  %v6243_v28 = vld [vmem:[%s8020_s15 + $0x330] sm:$0xff]  ;;  %v6244_v6 = vld [vmem:[%s8020_s15 + $0x338] sm:$0xff]  ;;  %v9471_v30 = vmov (%p1673_p4), 0.0  }
 0x558   : > { %5190 = vmatprep.mubr.f32.mxu0 (%p1673_p4), %v9471_v30 }
 0x559   : >> { %v6560_v14 = vpack.c.bf16 %v4418_v21, %v4416_v32  ;;  %v6562_v56 = vpack.c.bf16 %v4417_v5, %v4415_v60  ;;  %v9472_v21 = vmov (%p1673_p4), 0  }
 0x55a   : >> { %6237 = vmatmul.mubr.msk.f32.gmra.mrb[6].mxu1 %vm362_vm0, %v6233_v44  ;;  %6956 = vset.pattern.permute.xlu0 (%p1673_p4), %v9472_v21 }
 0x55b   : >> { %4354 = vmatprep.mubr.f32.mxu1 %v9454_v45 }
 0x55e   : >> { %6245 = vmatmul.mubr.msk.f32.vlgmr.msra.gmra.mrb[0].mxu1 %vm362_vm0, %v6241_v46 }
 0x55f   : >> { %6559 = vmatpush1.bf16.msra.mxu1 %v6558_v9  ;;  %4360 = vmatprep.mubr.f32.mxu1 %v9454_v45 }
 0x560   : >> { %6561 = vmatprep.subr.bf16.mxu1 %v6560_v14 }
 0x561   : >> { %v4544_v13 = vpop.permute.xlu0 %4543 }
 0x562   : >> { %6246 = vmatmul.mubr.msk.f32.gmra.mrb[2].mxu1 %vm362_vm0, %v6242_v16 }
 0x563   : >> { %6563 = vmatpush1.bf16.msra.mxu1 %v6562_v56  ;;  %4366 = vmatprep.mubr.f32.mxu1 %v9454_v45 }
 0x565   : >> { %v4554_v42 = vpop.permute.xlu0 %4553 }
 0x566   : >> { %6247 = vmatmul.mubr.msk.f32.gmra.mrb[4].mxu1 %vm362_vm0, %v6243_v28  ;;  %v4549_v38 = vpop.permute.xlu1 %4548 }
 0x567   : >> { %4372 = vmatprep.mubr.f32.mxu1 %v9454_v45 }
 0x56a   : >> { %6248 = vmatmul.mubr.msk.f32.gmra.mrb[6].mxu1 %vm362_vm0, %v6244_v6 }
 0x56b   : >> { %4502 = vmatprep.mubr.f32.mxu1 %v9454_v45 }
 0x56e   : >> { %6256 = vmatmul.mubr.msk.f32.vlgmr.msra.gmra.mrb[0].mxu1 %vm362_vm0, %v6252_v15 }
 0x56f   : >> { %4508 = vmatprep.mubr.f32.mxu1 %v9454_v45 }
 0x572   : >> { %6257 = vmatmul.mubr.msk.f32.gmra.mrb[2].mxu1 %vm362_vm0, %v6253_v33 }
 0x573   : >> { %4514 = vmatprep.mubr.f32.mxu1 %v9454_v45 }
 0x576   : >> { %6258 = vmatmul.mubr.msk.f32.gmra.mrb[4].mxu1 %vm362_vm0, %v6254_v52 }
 0x577   : >> { %4520 = vmatprep.mubr.f32.mxu1 %v9454_v45 }
 0x57a   : >> { %6259 = vmatmul.mubr.msk.f32.gmra.mrb[6].mxu1 %vm362_vm0, %v6255_v59 }
 0x57b   : > { %4727 = vmatprep.mubr.f32.mxu1 (%p1673_p4), %v9471_v30 }
 0x641   : >> { %v4504_v4 = vpop.f32.mrb[0].mxu1 }
 0x642   : >> { %v4561_v8 = vadd.f32 %v4544_v13, %v4504_v4  ;;  %v4506_v3 = vpop.f32.mrb[1].mxu1 }
 0x643   : >> { %v4562_v11 = vadd.f32 %v4544_v13, %v4506_v3 }
 0x644   : >> { %v8829_v36 = vadd.f32 %v7031_v36, %v4561_v8  }
 0x645   : >> { %v8832_v39 = vadd.f32 %v7027_v39, %v4562_v11   ;;  %v4510_v34 = vpop.f32.mrb[2].mxu1 }
 0x646   : >> { %v9455_v18 = vmov %v8829_v36  ;;  %v4563_v37 = vadd.f32 %v4549_v38, %v4510_v34  ;;  %v4512_v43 = vpop.f32.mrb[3].mxu1  ;;  %v4559_v36 = vpop.permute.xlu1 %4558 }
 0x647   : >> { %v9456_v58 = vmov %v8832_v39  ;;  %v4564_v61 = vadd.f32 %v4549_v38, %v4512_v43  ;;  %4614 = vrot.lane.b32.xlu0 (%p1673_p4), %v9455_v18, %s7037_s7 }
 0x648   : >> { %v8835_v47 = vadd.f32 %v7023_v47, %v4563_v37   ;;  %4622 = vrot.lane.b32.xlu1 (%p1673_p4), %v9456_v58, %s7037_s7 }
 0x649   : >> { %v8838_v48 = vadd.f32 %v7019_v48, %v4564_v61   ;;  %v4516_v29 = vpop.f32.mrb[4].mxu1 }
 0x64a   : >> { %v9457_v45 = vmov %v8835_v47  ;;  %v4565_v62 = vadd.f32 %v4554_v42, %v4516_v29  ;;  %v4518_v51 = vpop.f32.mrb[5].mxu1  ;;  %v6270_v29 = vld [vmem:[%s9412_s1 + $0x5c0] sm:$0xff] (%p1673_p4) }
 0x64b   : >> { %v9458_v35 = vmov %v8838_v48  ;;  %v4566_v26 = vadd.f32 %v4554_v42, %v4518_v51  ;;  %v9468_v47 = vmov %v9457_v45  ;;  %4616 = vrot.lane.b32.xlu0 (%p1673_p4), %v9457_v45, %s7037_s7 }
 0x64c   : >> { %v8841_v10 = vadd.f32 %v7015_v10, %v4565_v62   ;;  %v9467_v48 = vmov %v9458_v35  ;;  %v8888_v7 = vpack.c.bf16 (%p1673_p4), %v9458_v35, %v9456_v58  ;;  %4624 = vrot.lane.b32.xlu1 (%p1673_p4), %v9458_v35, %s7037_s7  ;;  %v8896_v47 = vpack.c.bf16 (%p1673_p4), %v9457_v45, %v9455_v18 }
 0x64d   : >> { %v8844_v57 = vadd.f32 %v7011_v57, %v4566_v26   ;;  %v4522_v39 = vpop.f32.mrb[6].mxu1 }
 0x64e   : >> { %v9459_v12 = vmov %v8841_v10  ;;  %v4567_v50 = vadd.f32 %v4559_v36, %v4522_v39  ;;  %v4524_v44 = vpop.f32.mrb[7].mxu1  ;;  %v9469_v39 = vmov %v9456_v58  ;;  %1675 = sbr.rel (!%p1673_p4) target bundleno = 495 (0x1ef), region = 130  ;;  %6597 = vmatprep.subr.bf16.mxu0 (%p1673_p4), %v8888_v7 }
 0x64f   : >> { %v9460_v19 = vmov %v8844_v57  ;;  %v4568_v27 = vadd.f32 %v4559_v36, %v4524_v44  ;;  %v9466_v10 = vmov %v9459_v12  ;;  %v9470_v36 = vmov %v9455_v18  ;;  %6599 = vmatpush1.bf16.msra.mxu0 (%p1673_p4), %v8896_v47  ;;  %4618 = vrot.lane.b32.xlu0 (%p1673_p4), %v9459_v12, %s7037_s7  ;;  %v6271_v44 = vld [vmem:[%s9412_s1 + $0x5c8] sm:$0xff] (%p1673_p4) }
 0x650   : >> { %v8847_v63 = vadd.f32 %v7007_v63, %v4567_v50   ;;  %v9465_v57 = vmov %v9460_v19 }
 0x651   : >> { %v8850_v2 = vadd.f32 %v7003_v2, %v4568_v27   ;;  %v6298_v57 = vld [vmem:[%s9412_s1 + $0x620] sm:$0xff] (%p1673_p4) }
 0x652   : >> { %v9461_v20 = vmov %v8847_v63 }
 0x653   : >> { %v9462_v53 = vmov %v8850_v2  ;;  %v9464_v63 = vmov %v9461_v20  ;;  %4620 = vrot.lane.b32.xlu1 (%p1673_p4), %v9461_v20, %s7037_s7  ;;  %v8910_v10 = vpack.c.bf16 (%p1673_p4), %v9461_v20, %v9459_v12  ;;  %4626 = vrot.lane.b32.xlu0 (%p1673_p4), %v9460_v19, %s7037_s7 }
 0x654   : >> { %v9463_v2 = vmov %v9462_v53  ;;  %v8902_v48 = vpack.c.bf16 (%p1673_p4), %v9462_v53, %v9460_v19  ;;  %v6299_v63 = vld [vmem:[%s9412_s1 + $0x628] sm:$0xff] (%p1673_p4) }
 0x656   : > { %6601 = vmatprep.subr.bf16.mxu0 %v8902_v48 }
 0x657   : > { %6603 = vmatpush1.bf16.msra.mxu0 %v8910_v10  ;;  %4628 = vrot.lane.b32.xlu1 %v9462_v53, %s7037_s7 }
 0x658   : > { %5211 = vrot.lane.b32.xlu0 %v9455_v18, %s7039_s10 }
 0x65a   : > { %6302 = vmatmul.mubr.msk.f32.vlgmr.msra.gmra.mrb[0].mxu0 %vm362_vm0, %v6298_v57  ;;  %v6272_v57 = vld [vmem:[%s9412_s1 + $0x5d0] sm:$0xff] }
 0x65b   : > { %5196 = vmatprep.mubr.f32.mxu0 %v9471_v30  ;;  %5213 = vrot.lane.b32.xlu1 %v9457_v45, %s7039_s10 }
 0x65c   : > { %5219 = vrot.lane.b32.xlu0 %v9456_v58, %s7039_s10 }
 0x65e   : > { %6303 = vmatmul.mubr.msk.f32.gmra.mrb[2].mxu0 %vm362_vm0, %v6299_v63 }
 0x65f   : > { %5221 = vrot.lane.b32.xlu1 %v9458_v35, %s7039_s10  ;;  %5324 = vmatprep.mubr.f32.mxu0 %v9471_v30 }
 0x660   : > { %5215 = vrot.lane.b32.xlu0 %v9459_v12, %s7039_s10 }
 0x663   : > { %5217 = vrot.lane.b32.xlu1 %v9461_v20, %s7039_s10 }
 0x664   : > { %5223 = vrot.lane.b32.xlu0 %v9460_v19, %s7039_s10 }
 0x667   : > { %5225 = vrot.lane.b32.xlu1 %v9462_v53, %s7039_s10 }
 0x668   : > { %4577 = vrot.lane.b32.xlu0 %v9455_v18, %s7040_s11 }
 0x66b   : > { %4579 = vrot.lane.b32.xlu1 %v9457_v45, %s7040_s11 }
 0x66c   : > { %4585 = vrot.lane.b32.xlu0 %v9456_v58, %s7040_s11 }
 0x66f   : > { %4587 = vrot.lane.b32.xlu1 %v9458_v35, %s7040_s11 }
 0x670   : > { %4581 = vrot.lane.b32.xlu0 %v9459_v12, %s7040_s11 }
 0x673   : > { %4583 = vrot.lane.b32.xlu1 %v9461_v20, %s7040_s11 }
 0x674   : > { %4589 = vrot.lane.b32.xlu0 %v9460_v19, %s7040_s11 }
 0x677   : > { %4591 = vrot.lane.b32.xlu1 %v9462_v53, %s7040_s11  ;;  %s9473_s11 = smov 15  }
 0x678   : > { %5345 = vrot.lane.b32.xlu0 %v9455_v18, %s7041_s14 }
 0x67b   : > { %5347 = vrot.lane.b32.xlu1 %v9457_v45, %s7041_s14 }
 0x67c   : > { %5353 = vrot.lane.b32.xlu0 %v9456_v58, %s7041_s14 }
 0x67f   : > { %5355 = vrot.lane.b32.xlu1 %v9458_v35, %s7041_s14 }
 0x680   : > { %5349 = vrot.lane.b32.xlu0 %v9459_v12, %s7041_s14 }
 0x683   : > { %5351 = vrot.lane.b32.xlu1 %v9461_v20, %s7041_s14 }
 0x684   : > { %5357 = vrot.lane.b32.xlu0 %v9460_v19, %s7041_s14 }
 0x687   : > { %5359 = vrot.lane.b32.xlu1 %v9462_v53, %s7041_s14  ;;  %s9474_s14 = smov 112  }
 0x688   : > { %4841 = vrot.lane.b32.xlu0 %v9455_v18, %s9473_s11 }
 0x68b   : > { %4843 = vrot.lane.b32.xlu1 %v9457_v45, %s9473_s11 }
 0x68c   : > { %4849 = vrot.lane.b32.xlu0 %v9456_v58, %s9473_s11 }
 0x68f   : > { %4851 = vrot.lane.b32.xlu1 %v9458_v35, %s9473_s11 }
 0x690   : > { %4845 = vrot.lane.b32.xlu0 %v9459_v12, %s9473_s11 }
 0x693   : > { %4847 = vrot.lane.b32.xlu1 %v9461_v20, %s9473_s11 }
 0x694   : > { %4853 = vrot.lane.b32.xlu0 %v9460_v19, %s9473_s11 }
 0x697   : > { %4855 = vrot.lane.b32.xlu1 %v9462_v53, %s9473_s11 }
 0x698   : > { %5479 = vrot.lane.b32.xlu0 %v9455_v18, %s9474_s14 }
 0x69b   : > { %5481 = vrot.lane.b32.xlu1 %v9457_v45, %s9474_s14 }
 0x69c   : > { %5487 = vrot.lane.b32.xlu0 %v9456_v58, %s9474_s14 }
 0x69f   : > { %5489 = vrot.lane.b32.xlu1 %v9458_v35, %s9474_s14 }
 0x6a0   : > { %5483 = vrot.lane.b32.xlu0 %v9459_v12, %s9474_s14 }
 0x6a3   : > { %5485 = vrot.lane.b32.xlu1 %v9461_v20, %s9474_s14 }
 0x6a4   : > { %5491 = vrot.lane.b32.xlu0 %v9460_v19, %s9474_s14 }
 0x6a7   : > { %5493 = vrot.lane.b32.xlu1 %v9462_v53, %s9474_s14 }
 0x6a8   : > { %4975 = vrot.lane.b32.xlu0 %v9455_v18, %s9475_s28 }
 0x6ab   : > { %4977 = vrot.lane.b32.xlu1 %v9457_v45, %s9475_s28 }
 0x6ac   : > { %4983 = vrot.lane.b32.xlu0 %v9456_v58, %s9475_s28 }
 0x6af   : > { %4985 = vrot.lane.b32.xlu1 %v9458_v35, %s9475_s28 }
 0x6b0   : > { %4979 = vrot.lane.b32.xlu0 %v9459_v12, %s9475_s28 }
 0x6b3   : > { %4981 = vrot.lane.b32.xlu1 %v9461_v20, %s9475_s28 }
 0x6b4   : > { %4987 = vrot.lane.b32.xlu0 %v9460_v19, %s9475_s28 }
 0x6b7   : > { %4989 = vrot.lane.b32.xlu1 %v9462_v53, %s9475_s28 }
 0x6b8   : > { %5613 = vrot.lane.b32.xlu0 %v9455_v18, %s9476_s22 }
 0x6b9   : > { %v4615_v46 = vpop.permute.xlu0 %4614 }
 0x6ba   : > { %v4623_v2 = vpop.permute.xlu1 %4622 }
 0x6bb   : > { %5615 = vrot.lane.b32.xlu1 %v9457_v45, %s9476_s22  ;;  %v4634_v31 = vsel %vm327_vm1, %v4623_v2, %v4615_v46  ;;  %v4630_v32 = vsel %vm327_vm1, %v4615_v46, %v4623_v2 }
 0x6bc   : > { %5621 = vrot.lane.b32.xlu0 %v9456_v58, %s9476_s22  ;;  %v4638_v14 = vmul.f32 %v4634_v31, %v7283_v23  ;;  %v4639_v28 = vmul.f32 %v4630_v32, %v7292_v25 }
 0x6bd   : > { %v4617_v5 = vpop.permute.xlu0 %4616 }
 0x6be   : > { %v4625_v9 = vpop.permute.xlu1 %4624 }
 0x6bf   : > { %5623 = vrot.lane.b32.xlu1 %v9458_v35, %s9476_s22  ;;  %v4631_v60 = vsel %vm327_vm1, %v4617_v5, %v4625_v9  ;;  %v4635_v16 = vsel %vm327_vm1, %v4625_v9, %v4617_v5  ;;  %v6338_v35 = vld [vmem:[%s9413_s2 + $0xa0] sm:$0xff] }
 0x6c0   : > { %v4640_v56 = vmul.f32 %v4635_v16, %v7283_v23  ;;  %5617 = vrot.lane.b32.xlu0 %v9459_v12, %s9476_s22  ;;  %v4641_v6 = vmul.f32 %v4631_v60, %v7292_v25 }
 0x6c1   : > { %v4619_v33 = vpop.permute.xlu0 %4618 }
 0x6c2   : > { %v6564_v52 = vpack.c.bf16 %v4641_v6, %v4639_v28  ;;  %v6566_v59 = vpack.c.bf16 %v4640_v56, %v4638_v14  ;;  %v6273_v56 = vld [vmem:[%s9412_s1 + $0x5d8] sm:$0xff] }
 0x6c3   : > { %5619 = vrot.lane.b32.xlu1 %v9461_v20, %s9476_s22 }
 0x6c4   : > { %5625 = vrot.lane.b32.xlu0 %v9460_v19, %s9476_s22  ;;  %6565 = vmatprep.subr.bf16.mxu1 %v6564_v52 }
 0x6c5   : > { %v4621_v15 = vpop.permute.xlu1 %4620  ;;  %6567 = vmatpush1.bf16.msra.mxu1 %v6566_v59  ;;  %v4627_v4 = vpop.permute.xlu0 %4626 }
 0x6c6   : > { %v4632_v11 = vsel %vm327_vm1, %v4619_v33, %v4627_v4  ;;  %v4636_v18 = vsel %vm327_vm1, %v4627_v4, %v4619_v33 }
 0x6c7   : > { %5627 = vrot.lane.b32.xlu1 %v9462_v53, %s9476_s22  ;;  %v4642_v34 = vmul.f32 %v4636_v18, %v7283_v23  ;;  %v4643_v37 = vmul.f32 %v4632_v11, %v7292_v25 }
 0x6c8   : > { %5751 = vperm.xlu0 %6956, %v6338_v35  }
 0x6c9   : > { %v4629_v13 = vpop.permute.xlu1 %4628 }
 0x6ca   : > { %v4633_v8 = vsel %vm327_vm1, %v4621_v15, %v4629_v13  ;;  %v4637_v3 = vsel %vm327_vm1, %v4629_v13, %v4621_v15  ;;  %v5212_v61 = vpop.permute.xlu0 %5211 }
 0x6cb   : > { %v4644_v38 = vmul.f32 %v4637_v3, %v7283_v23  ;;  %v4645_v58 = vmul.f32 %v4633_v8, %v7292_v25 }
 0x6cd   : > { %v5214_v43 = vpop.permute.xlu1 %5213  ;;  %v6568_v45 = vpack.c.bf16 %v4645_v58, %v4643_v37  ;;  %v6570_v42 = vpack.c.bf16 %v4644_v38, %v4642_v34  ;;  %v6307_v58 = vld [vmem:[%s9412_s1 + $0x648] sm:$0xff] }
 0x6ce   : > { %v5220_v51 = vpop.permute.xlu0 %5219 }
 0x6cf   : > { %6569 = vmatprep.subr.bf16.mxu1 %v6568_v45  ;;  %v5227_v26 = vsel %vm1015_vm2, %v5212_v61, %v5220_v51  ;;  %v5231_v12 = vsel %vm1015_vm2, %v5220_v51, %v5212_v61  ;;  %v6308_v45 = vld [vmem:[%s9412_s1 + $0x650] sm:$0xff] }
 0x6d0   : > { %6571 = vmatpush1.bf16.msra.mxu1 %v6570_v42  ;;  %v5235_v39 = vmul.f32 %v5227_v26, %v7329_v54  ;;  %v5236_v50 = vmul.f32 %v5231_v12, %v7332_v55 }
 0x6d1   : > { %v5222_v62 = vpop.permute.xlu1 %5221 }
 0x6d2   : > { %v5228_v23 = vsel %vm1015_vm2, %v5214_v43, %v5222_v62  ;;  %v5232_v25 = vsel %vm1015_vm2, %v5222_v62, %v5214_v43  ;;  %v5216_v53 = vpop.permute.xlu0 %5215 }
 0x6d3   : > { %v5237_v36 = vmul.f32 %v5228_v23, %v7329_v54  ;;  %v5238_v19 = vmul.f32 %v5232_v25, %v7332_v55  ;;  %6274 = vmatmul.mubr.msk.f32.vlgmr.msra.gmra.mrb[0].mxu1 %vm362_vm0, %v6270_v29 }
 0x6d4   : > { %4733 = vmatprep.mubr.f32.mxu1 %v9471_v30 }
 0x6d5   : > { %v6606_v27 = vpack.c.bf16 %v5237_v36, %v5235_v39  ;;  %v5218_v20 = vpop.permute.xlu1 %5217  ;;  %v6604_v21 = vpack.c.bf16 %v5238_v19, %v5236_v50  ;;  %v6309_v19 = vld [vmem:[%s9412_s1 + $0x658] sm:$0xff] }
 0x6d6   : > { %v5224_v2 = vpop.permute.xlu0 %5223 }
 0x6d7   : > { %6605 = vmatprep.subr.bf16.mxu0 %v6604_v21  ;;  %6275 = vmatmul.mubr.msk.f32.gmra.mrb[2].mxu1 %vm362_vm0, %v6271_v44  ;;  %v5229_v32 = vsel %vm1015_vm2, %v5216_v53, %v5224_v2  ;;  %v5233_v9 = vsel %vm1015_vm2, %v5224_v2, %v5216_v53 }
 0x6d8   : > { %6607 = vmatpush1.bf16.msra.mxu0 %v6606_v27  ;;  %4737 = vmatprep.mubr.f32.mxu1 %v9471_v30  ;;  %v5239_v60 = vmul.f32 %v5229_v32, %v7329_v54  ;;  %v5240_v16 = vmul.f32 %v5233_v9, %v7332_v55  ;;  %v6267_v9 = vld [vmem:[%s9412_s1 + $0x5a8] sm:$0xff] }
 0x6d9   : > { %v5226_v63 = vpop.permute.xlu1 %5225 }
 0x6da   : > { %v5230_v46 = vsel %vm1015_vm2, %v5218_v20, %v5226_v63  ;;  %v5234_v31 = vsel %vm1015_vm2, %v5226_v63, %v5218_v20  ;;  %v4578_v15 = vpop.permute.xlu0 %4577 }
 0x6db   : > { %v5241_v5 = vmul.f32 %v5230_v46, %v7329_v54  ;;  %v5242_v14 = vmul.f32 %v5234_v31, %v7332_v55  ;;  %6276 = vmatmul.mubr.msk.f32.gmra.mrb[4].mxu1 %vm362_vm0, %v6272_v57  ;;  %v6306_v54 = vld [vmem:[%s9412_s1 + $0x640] sm:$0xff] }
 0x6dc   : > { %4741 = vmatprep.mubr.f32.mxu1 %v9471_v30 }
 0x6dd   : > { %v6610_v28 = vpack.c.bf16 %v5241_v5, %v5239_v60  ;;  %v4580_v6 = vpop.permute.xlu1 %4579  ;;  %v6608_v33 = vpack.c.bf16 %v5242_v14, %v5240_v16 }
 0x6de   : > { %v4586_v52 = vpop.permute.xlu0 %4585 }
 0x6df   : > { %6609 = vmatprep.subr.bf16.mxu0 %v6608_v33  ;;  %6277 = vmatmul.mubr.msk.f32.gmra.mrb[6].mxu1 %vm362_vm0, %v6273_v56  ;;  %v4593_v4 = vsel %vm278_vm3, %v4578_v15, %v4586_v52  ;;  %v4597_v8 = vsel %vm278_vm3, %v4586_v52, %v4578_v15  ;;  %v6268_v56 = vld [vmem:[%s9412_s1 + $0x5b0] sm:$0xff] }
 0x6e0   : > { %6611 = vmatpush1.bf16.msra.mxu0 %v6610_v28  ;;  %4822 = vmatprep.mubr.f32.mxu1 %v9471_v30  ;;  %v4601_v18 = vmul.f32 %v4597_v8, %v7395_v40  ;;  %v4602_v38 = vmul.f32 %v4593_v4, %v7398_v41  ;;  %v6269_v8 = vld [vmem:[%s9412_s1 + $0x5b8] sm:$0xff] }
 0x6e1   : > { %v4588_v55 = vpop.permute.xlu1 %4587 }
 0x6e2   : > { %v4594_v59 = vsel %vm278_vm3, %v4580_v6, %v4588_v55  ;;  %v4598_v13 = vsel %vm278_vm3, %v4588_v55, %v4580_v6  ;;  %v4582_v43 = vpop.permute.xlu0 %4581 }
 0x6e3   : > { %v4603_v3 = vmul.f32 %v4598_v13, %v7395_v40  ;;  %v4604_v11 = vmul.f32 %v4594_v59, %v7398_v41  ;;  %6310 = vmatmul.mubr.msk.f32.vlgmr.msra.gmra.mrb[0].mxu0 %vm362_vm0, %v6306_v54 }
 0x6e4   : > { %5330 = vmatprep.mubr.f32.mxu0 %v9471_v30 }
 0x6e5   : > { %v6574_v34 = vpack.c.bf16 %v4603_v3, %v4601_v18  ;;  %v4584_v37 = vpop.permute.xlu1 %4583  ;;  %v6572_v61 = vpack.c.bf16 %v4604_v11, %v4602_v38 }
 0x6e6   : > { %v4590_v35 = vpop.permute.xlu0 %4589 }
 0x6e7   : > { %6573 = vmatprep.subr.bf16.mxu1 %v6572_v61  ;;  %6311 = vmatmul.mubr.msk.f32.gmra.mrb[4].mxu0 %vm362_vm0, %v6307_v58  ;;  %v4595_v51 = vsel %vm278_vm3, %v4582_v43, %v4590_v35  ;;  %v4599_v23 = vsel %vm278_vm3, %v4590_v35, %v4582_v43 }
 0x6e8   : > { %6575 = vmatpush1.bf16.msra.mxu1 %v6574_v34  ;;  %5334 = vmatprep.mubr.f32.mxu0 %v9471_v30  ;;  %v4605_v12 = vmul.f32 %v4599_v23, %v7395_v40  ;;  %v4606_v36 = vmul.f32 %v4595_v51, %v7398_v41 }
 0x6e9   : > { %v4592_v42 = vpop.permute.xlu1 %4591 }
 0x6ea   : > { %v4596_v29 = vsel %vm278_vm3, %v4584_v37, %v4592_v42  ;;  %v4600_v62 = vsel %vm278_vm3, %v4592_v42, %v4584_v37  ;;  %v5346_v44 = vpop.permute.xlu0 %5345 }
 0x6eb   : > { %v4607_v25 = vmul.f32 %v4600_v62, %v7395_v40  ;;  %v4608_v26 = vmul.f32 %v4596_v29, %v7398_v41  ;;  %6312 = vmatmul.mubr.msk.f32.gmra.mrb[6].mxu0 %vm362_vm0, %v6308_v45  ;;  %v6266_v40 = vld [vmem:[%s9412_s1 + $0x5a0] sm:$0xff]  ;;  %v6315_v62 = vld [vmem:[%s9412_s1 + $0x668] sm:$0xff] }
 0x6ec   : > { %5338 = vmatprep.mubr.f32.mxu0 %v9471_v30 }
 0x6ed   : > { %v6578_v39 = vpack.c.bf16 %v4607_v25, %v4605_v12  ;;  %v5348_v50 = vpop.permute.xlu1 %5347  ;;  %v6576_v27 = vpack.c.bf16 %v4608_v26, %v4606_v36  ;;  %v6316_v12 = vld [vmem:[%s9412_s1 + $0x670] sm:$0xff] }
 0x6ee   : > { %v5354_v20 = vpop.permute.xlu0 %5353 }
 0x6ef   : > { %6577 = vmatprep.subr.bf16.mxu1 %v6576_v27  ;;  %6313 = vmatmul.mubr.msk.f32.gmra.mrb[8].mxu0 %vm362_vm0, %v6309_v19  ;;  %v5361_v57 = vsel %vm1175_vm4, %v5346_v44, %v5354_v20  ;;  %v5365_v63 = vsel %vm1175_vm4, %v5354_v20, %v5346_v44 }
 0x6f0   : > { %6579 = vmatpush1.bf16.msra.mxu1 %v6578_v39  ;;  %5458 = vmatprep.mubr.f32.mxu0 %v9471_v30  ;;  %v5369_v31 = vmul.f32 %v5361_v57, %v7449_v22  ;;  %v5370_v32 = vmul.f32 %v5365_v63, %v7452_v24 }
 0x6f1   : > { %v5356_v41 = vpop.permute.xlu1 %5355 }
 0x6f2   : > { %v5362_v53 = vsel %vm1175_vm4, %v5348_v50, %v5356_v41  ;;  %v5366_v21 = vsel %vm1175_vm4, %v5356_v41, %v5348_v50  ;;  %v5350_v60 = vpop.permute.xlu0 %5349 }
 0x6f3   : > { %v5371_v2 = vmul.f32 %v5362_v53, %v7449_v22  ;;  %v5372_v46 = vmul.f32 %v5366_v21, %v7452_v24  ;;  %6278 = vmatmul.mubr.msk.f32.vlgmr.msra.gmra.mrb[0].mxu1 %vm362_vm0, %v6266_v40  ;;  %v6317_v21 = vld [vmem:[%s9412_s1 + $0x678] sm:$0xff] }
 0x6f4   : > { %4828 = vmatprep.mubr.f32.mxu1 %v9471_v30 }
 0x6f5   : > { %v6614_v5 = vpack.c.bf16 %v5371_v2, %v5369_v31  ;;  %v5352_v14 = vpop.permute.xlu1 %5351  ;;  %v6612_v16 = vpack.c.bf16 %v5372_v46, %v5370_v32 }
 0x6f6   : > { %v5358_v6 = vpop.permute.xlu0 %5357 }
 0x6f7   : > { %6613 = vmatprep.subr.bf16.mxu0 %v6612_v16  ;;  %6279 = vmatmul.mubr.msk.f32.gmra.mrb[8].mxu1 %vm362_vm0, %v6267_v9  ;;  %v5363_v54 = vsel %vm1175_vm4, %v5350_v60, %v5358_v6  ;;  %v5367_v55 = vsel %vm1175_vm4, %v5358_v6, %v5350_v60  ;;  %v9477_v16 = vld [vmem:[#allocation4_spill] sm:$0xff] }
 0x6f8   : > { %6615 = vmatpush1.bf16.msra.mxu0 %v6614_v5  ;;  %4832 = vmatprep.mubr.f32.mxu1 %v9471_v30  ;;  %v5373_v13 = vmul.f32 %v5363_v54, %v7449_v22  ;;  %v5374_v4 = vmul.f32 %v5367_v55, %v7452_v24 }
 0x6f9   : > { %v5360_v28 = vpop.permute.xlu1 %5359 }
 0x6fa   : > { %v5364_v15 = vsel %vm1175_vm4, %v5352_v14, %v5360_v28  ;;  %v5368_v33 = vsel %vm1175_vm4, %v5360_v28, %v5352_v14  ;;  %v4842_v18 = vpop.permute.xlu0 %4841 }
 0x6fb   : > { %v5375_v52 = vmul.f32 %v5364_v15, %v7449_v22  ;;  %v5376_v59 = vmul.f32 %v5368_v33, %v7452_v24  ;;  %6280 = vmatmul.mubr.msk.f32.gmra.mrb[10].mxu1 %vm362_vm0, %v6268_v56  ;;  %v6314_v22 = vld [vmem:[%s9412_s1 + $0x660] sm:$0xff]  ;;  %v6283_v15 = vld [vmem:[%s9412_s1 + $0x5e8] sm:$0xff] }
 0x6fc   : > { %4836 = vmatprep.mubr.f32.mxu1 %v9471_v30 }
 0x6fd   : > { %v6618_v3 = vpack.c.bf16 %v5375_v52, %v5373_v13  ;;  %v4844_v11 = vpop.permute.xlu1 %4843  ;;  %v6616_v38 = vpack.c.bf16 %v5376_v59, %v5374_v4  ;;  %v6284_v59 = vld [vmem:[%s9412_s1 + $0x5f0] sm:$0xff] }
 0x6fe   : > { %v4850_v58 = vpop.permute.xlu0 %4849 }
 0x6ff   : > { %6617 = vmatprep.subr.bf16.mxu0 %v6616_v38  ;;  %6281 = vmatmul.mubr.msk.f32.gmra.mrb[12].mxu1 %vm362_vm0, %v6269_v8  ;;  %v4857_v43 = vsel %vm581_vm5, %v4842_v18, %v4850_v58  ;;  %v4861_v61 = vsel %vm581_vm5, %v4850_v58, %v4842_v18 }
 0x700   : > { %6619 = vmatpush1.bf16.msra.mxu0 %v6618_v3  ;;  %4954 = vmatprep.mubr.f32.mxu1 %v9471_v30  ;;  %v4865_v35 = vmul.f32 %v4861_v61, %v7503_v0  ;;  %v4866_v29 = vmul.f32 %v4857_v43, %v7506_v1 }
 0x701   : > { %v4852_v24 = vpop.permute.xlu1 %4851 }
 0x702   : > { %v4858_v34 = vsel %vm581_vm5, %v4844_v11, %v4852_v24  ;;  %v4862_v37 = vsel %vm581_vm5, %v4852_v24, %v4844_v11  ;;  %v4846_v25 = vpop.permute.xlu0 %4845 }
 0x703   : > { %v4867_v45 = vmul.f32 %v4862_v37, %v7503_v0  ;;  %v4868_v42 = vmul.f32 %v4858_v34, %v7506_v1  ;;  %6318 = vmatmul.mubr.msk.f32.vlgmr.msra.gmra.mrb[0].mxu0 %vm362_vm0, %v6314_v22  ;;  %v6285_v34 = vld [vmem:[%s9412_s1 + $0x5f8] sm:$0xff] }
 0x704   : > { %5464 = vmatprep.mubr.f32.mxu0 %v9471_v30 }
 0x705   : > { %v6582_v51 = vpack.c.bf16 %v4867_v45, %v4865_v35  ;;  %v4848_v23 = vpop.permute.xlu1 %4847  ;;  %v6580_v26 = vpack.c.bf16 %v4868_v42, %v4866_v29 }
 0x706   : > { %v4854_v19 = vpop.permute.xlu0 %4853 }
 0x707   : > { %6581 = vmatprep.subr.bf16.mxu1 %v6580_v26  ;;  %6319 = vmatmul.mubr.msk.f32.gmra.mrb[10].mxu0 %vm362_vm0, %v6315_v62  ;;  %v4859_v44 = vsel %vm581_vm5, %v4846_v25, %v4854_v19  ;;  %v4863_v27 = vsel %vm581_vm5, %v4854_v19, %v4846_v25  ;;  %v9478_v25 = vld [vmem:[#allocation5_spill] sm:$0xff] }
 0x708   : > { %6583 = vmatpush1.bf16.msra.mxu1 %v6582_v51  ;;  %5468 = vmatprep.mubr.f32.mxu0 %v9471_v30  ;;  %v4869_v20 = vmul.f32 %v4863_v27, %v7503_v0  ;;  %v4870_v53 = vmul.f32 %v4859_v44, %v7506_v1 }
 0x709   : > { %v4856_v36 = vpop.permute.xlu1 %4855 }
 0x70a   : > { %v4860_v39 = vsel %vm581_vm5, %v4848_v23, %v4856_v36  ;;  %v4864_v50 = vsel %vm581_vm5, %v4856_v36, %v4848_v23  ;;  %v5480_v2 = vpop.permute.xlu0 %5479 }
 0x70b   : > { %v4871_v40 = vmul.f32 %v4864_v50, %v7503_v0  ;;  %v4872_v41 = vmul.f32 %v4860_v39, %v7506_v1  ;;  %6320 = vmatmul.mubr.msk.f32.gmra.mrb[12].mxu0 %vm362_vm0, %v6316_v12  ;;  %v6282_v0 = vld [vmem:[%s9412_s1 + $0x5e0] sm:$0xff]  ;;  %v6323_v50 = vld [vmem:[%s9412_s1 + $0x688] sm:$0xff] }
 0x70c   : > { %5472 = vmatprep.mubr.f32.mxu0 %v9471_v30  ;;  %v9479_v12 = vld [vmem:[#allocation6_spill] sm:$0xff] }
 0x70d   : > { %v6586_v57 = vpack.c.bf16 %v4871_v40, %v4869_v20  ;;  %v5482_v63 = vpop.permute.xlu1 %5481  ;;  %v6584_v46 = vpack.c.bf16 %v4872_v41, %v4870_v53  ;;  %v6324_v20 = vld [vmem:[%s9412_s1 + $0x690] sm:$0xff] }
 0x70e   : > { %v5488_v31 = vpop.permute.xlu0 %5487 }
 0x70f   : > { %6585 = vmatprep.subr.bf16.mxu1 %v6584_v46  ;;  %6321 = vmatmul.mubr.msk.f32.gmra.mrb[14].mxu0 %vm362_vm0, %v6317_v21  ;;  %v5495_v5 = vsel %vm1335_vm6, %v5480_v2, %v5488_v31  ;;  %v5499_v14 = vsel %vm1335_vm6, %v5488_v31, %v5480_v2 }
 0x710   : > { %6587 = vmatpush1.bf16.msra.mxu1 %v6586_v57  ;;  %5592 = vmatprep.mubr.f32.mxu0 %v9471_v30  ;;  %v5503_v28 = vmul.f32 %v5495_v5, %v7557_v49  ;;  %v5504_v6 = vmul.f32 %v5499_v14, %v9477_v16 }
 0x711   : > { %v5490_v1 = vpop.permute.xlu1 %5489 }
 0x712   : > { %v5496_v32 = vsel %vm1335_vm6, %v5482_v63, %v5490_v1  ;;  %v5500_v9 = vsel %vm1335_vm6, %v5490_v1, %v5482_v63  ;;  %v5484_v55 = vpop.permute.xlu0 %5483 }
 0x713   : > { %v5505_v60 = vmul.f32 %v5496_v32, %v7557_v49  ;;  %v5506_v56 = vmul.f32 %v5500_v9, %v9477_v16  ;;  %6286 = vmatmul.mubr.msk.f32.vlgmr.msra.gmra.mrb[0].mxu1 %vm362_vm0, %v6282_v0  ;;  %v6325_v9 = vld [vmem:[%s9412_s1 + $0x698] sm:$0xff] }
 0x714   : > { %4960 = vmatprep.mubr.f32.mxu1 %v9471_v30 }
 0x715   : > { %v6622_v33 = vpack.c.bf16 %v5505_v60, %v5503_v28  ;;  %v5486_v54 = vpop.permute.xlu1 %5485  ;;  %v6620_v52 = vpack.c.bf16 %v5506_v56, %v5504_v6  ;;  %v6290_v56 = vld [vmem:[%s9412_s1 + $0x600] sm:$0xff] }
 0x716   : > { %v5492_v4 = vpop.permute.xlu0 %5491 }
 0x717   : > { %6621 = vmatprep.subr.bf16.mxu0 %v6620_v52  ;;  %6287 = vmatmul.mubr.msk.f32.gmra.mrb[14].mxu1 %vm362_vm0, %v6283_v15  ;;  %v5497_v11 = vsel %vm1335_vm6, %v5484_v55, %v5492_v4  ;;  %v5501_v18 = vsel %vm1335_vm6, %v5492_v4, %v5484_v55  ;;  %v9480_v52 = vld [vmem:[#allocation7_spill] sm:$0xff] }
 0x718   : > { %6623 = vmatpush1.bf16.msra.mxu0 %v6622_v33  ;;  %4964 = vmatprep.mubr.f32.mxu1 %v9471_v30  ;;  %v5507_v24 = vmul.f32 %v5497_v11, %v7557_v49  ;;  %v5508_v58 = vmul.f32 %v5501_v18, %v9477_v16 }
 0x719   : > { %v5494_v13 = vpop.permute.xlu1 %5493 }
 0x71a   : > { %v5498_v8 = vsel %vm1335_vm6, %v5486_v54, %v5494_v13  ;;  %v5502_v3 = vsel %vm1335_vm6, %v5494_v13, %v5486_v54  ;;  %v4976_v61 = vpop.permute.xlu0 %4975  ;;  %v9481_v13 = vld [vmem:[#allocation8_spill] sm:$0xff] }
 0x71b   : > { %v5509_v38 = vmul.f32 %v5498_v8, %v7557_v49  ;;  %v5510_v22 = vmul.f32 %v5502_v3, %v9477_v16  ;;  %6288 = vmatmul.mubr.msk.f32.gmra.mrb[16].mxu1 %vm362_vm0, %v6284_v59  ;;  %v6322_v49 = vld [vmem:[%s9412_s1 + $0x680] sm:$0xff]  ;;  %v6291_v3 = vld [vmem:[%s9412_s1 + $0x608] sm:$0xff] }
 0x71c   : > { %4968 = vmatprep.mubr.f32.mxu1 %v9471_v30 }
 0x71d   : > { %v6626_v37 = vpack.c.bf16 %v5509_v38, %v5507_v24  ;;  %v4978_v43 = vpop.permute.xlu1 %4977  ;;  %v6624_v45 = vpack.c.bf16 %v5510_v22, %v5508_v58 }
 0x71e   : > { %v4984_v35 = vpop.permute.xlu0 %4983 }
 0x71f   : > { %6625 = vmatprep.subr.bf16.mxu0 %v6624_v45  ;;  %6289 = vmatmul.mubr.msk.f32.gmra.mrb[18].mxu1 %vm362_vm0, %v6285_v34  ;;  %v4991_v51 = vsel %vm741_vm7, %v4976_v61, %v4984_v35  ;;  %v4995_v23 = vsel %vm741_vm7, %v4984_v35, %v4976_v61 }
 0x720   : > { %6627 = vmatpush1.bf16.msra.mxu0 %v6626_v37  ;;  %5088 = vmatprep.mubr.f32.mxu1 %v9471_v30  ;;  %v4999_v19 = vmul.f32 %v4995_v23, %v9478_v25  ;;  %v5000_v39 = vmul.f32 %v4991_v51, %v9479_v12  ;;  %v6331_v51 = vld [vmem:[%s9412_s1 + $0x6a8] sm:$0xff]  ;;  %v6301_v23 = vld [vmem:[%s9412_s1 + $0x638] sm:$0xff] }
 0x721   : > { %v4986_v42 = vpop.permute.xlu1 %4985 }
 0x722   : > { %v4992_v29 = vsel %vm741_vm7, %v4978_v43, %v4986_v42  ;;  %v4996_v62 = vsel %vm741_vm7, %v4986_v42, %v4978_v43  ;;  %v4980_v40 = vpop.permute.xlu0 %4979  ;;  %v6293_v42 = vld [vmem:[%s9412_s1 + $0x618] sm:$0xff] }
 0x723   : > { %v5001_v26 = vmul.f32 %v4996_v62, %v9478_v25  ;;  %v5002_v36 = vmul.f32 %v4992_v29, %v9479_v12  ;;  %6326 = vmatmul.mubr.msk.f32.vlgmr.msra.gmra.mrb[0].mxu0 %vm362_vm0, %v6322_v49  ;;  %v6300_v62 = vld [vmem:[%s9412_s1 + $0x630] sm:$0xff] }
 0x724   : > { %5598 = vmatprep.mubr.f32.mxu0 %v9471_v30 }
 0x725   : > { %v6590_v44 = vpack.c.bf16 %v5001_v26, %v4999_v19  ;;  %v4982_v27 = vpop.permute.xlu1 %4981  ;;  %v6588_v41 = vpack.c.bf16 %v5002_v36, %v5000_v39  ;;  %v6333_v36 = vld [vmem:[%s9412_s1 + $0x6b8] sm:$0xff] }
 0x726   : > { %v4988_v21 = vpop.permute.xlu0 %4987 }
 0x727   : > { %6589 = vmatprep.subr.bf16.mxu1 %v6588_v41  ;;  %6327 = vmatmul.mubr.msk.f32.gmra.mrb[16].mxu0 %vm362_vm0, %v6323_v50  ;;  %v4993_v2 = vsel %vm741_vm7, %v4980_v40, %v4988_v21  ;;  %v4997_v46 = vsel %vm741_vm7, %v4988_v21, %v4980_v40 }
 0x728   : > { %6591 = vmatpush1.bf16.msra.mxu1 %v6590_v44  ;;  %5602 = vmatprep.mubr.f32.mxu0 %v9471_v30  ;;  %v5003_v31 = vmul.f32 %v4997_v46, %v9478_v25  ;;  %v5004_v32 = vmul.f32 %v4993_v2, %v9479_v12 }
 0x729   : > { %v4990_v53 = vpop.permute.xlu1 %4989 }
 0x72a   : > { %v4994_v57 = vsel %vm741_vm7, %v4982_v27, %v4990_v53  ;;  %v4998_v63 = vsel %vm741_vm7, %v4990_v53, %v4982_v27  ;;  %v5614_v60 = vpop.permute.xlu0 %5613 }
 0x72b   : > { %v5005_v0 = vmul.f32 %v4998_v63, %v9478_v25  ;;  %v5006_v1 = vmul.f32 %v4994_v57, %v9479_v12  ;;  %6328 = vmatmul.mubr.msk.f32.gmra.mrb[18].mxu0 %vm362_vm0, %v6324_v20  ;;  %v6332_v25 = vld [vmem:[%s9412_s1 + $0x6b0] sm:$0xff] }
 0x72c   : > { %5606 = vmatprep.mubr.f32.mxu0 %v9471_v30 }
 0x72d   : > { %v6594_v5 = vpack.c.bf16 %v5005_v0, %v5003_v31  ;;  %v5616_v14 = vpop.permute.xlu1 %5615  ;;  %v6592_v16 = vpack.c.bf16 %v5006_v1, %v5004_v32 }
 0x72e   : > { %v5622_v6 = vpop.permute.xlu0 %5621 }
 0x72f   : > { %6593 = vmatprep.subr.bf16.mxu1 %v6592_v16  ;;  %6329 = vmatmul.mubr.msk.f32.gmra.mrb[20].mxu0 %vm362_vm0, %v6325_v9  ;;  %v5629_v54 = vsel %vm1495_vm8, %v5614_v60, %v5622_v6  ;;  %v5633_v55 = vsel %vm1495_vm8, %v5622_v6, %v5614_v60 }
 0x730   : > { %6595 = vmatpush1.bf16.msra.mxu1 %v6594_v5  ;;  %5726 = vmatprep.mubr.f32.mxu0 %v9471_v30  ;;  %v5637_v8 = vmul.f32 %v5629_v54, %v9480_v52 }
 0x731   : > { %v5624_v28 = vpop.permute.xlu1 %5623  ;;  %6832 = vmatprep.subr.bf16.mxu1 %v8888_v7  ;;  %v5638_v7 = vmul.f32 %v5633_v55, %v9481_v13  ;;  %v5198_v26 = vpop.f32.mrb[2].mxu0 }
 0x732   : > { %v5630_v15 = vsel %vm1495_vm8, %v5616_v14, %v5624_v28  ;;  %v5634_v33 = vsel %vm1495_vm8, %v5624_v28, %v5616_v14  ;;  %v5618_v38 = vpop.permute.xlu0 %5617  ;;  %v5199_v12 = vpop.f32.mrb[3].mxu0 }
 0x733   : > { %v5639_v59 = vmul.f32 %v5630_v15, %v9480_v52  ;;  %v5640_v4 = vmul.f32 %v5634_v33, %v9481_v13  ;;  %6294 = vmatmul.mubr.msk.f32.vlgmr.msra.gmra.mrb[0].mxu1 %vm362_vm0, %v6290_v56 }
 0x734   : > { %6834 = vmatpush1.bf16.msra.mxu1 %v8896_v47  ;;  %5094 = vmatprep.mubr.f32.mxu1 %v9471_v30  ;;  %v6292_v47 = vld [vmem:[%s9412_s1 + $0x610] sm:$0xff] }
 0x735   : > { %v6630_v11 = vpack.c.bf16 %v5639_v59, %v5637_v8  ;;  %v5620_v18 = vpop.permute.xlu1 %5619  ;;  %v6628_v22 = vpack.c.bf16 %v5640_v4, %v5638_v7  ;;  %6833 = vmatprep.subr.bf16.mxu1 %v8902_v48 }
 0x736   : > { %v5626_v58 = vpop.permute.xlu0 %5625 }
 0x737   : > { %6629 = vmatprep.subr.bf16.mxu0 %v6628_v22  ;;  %6295 = vmatmul.mubr.msk.f32.gmra.mrb[20].mxu1 %vm362_vm0, %v6291_v3  ;;  %v5631_v37 = vsel %vm1495_vm8, %v5618_v38, %v5626_v58  ;;  %v5635_v43 = vsel %vm1495_vm8, %v5626_v58, %v5618_v38 }
 0x738   : > { %6631 = vmatpush1.bf16.msra.mxu0 %v6630_v11  ;;  %5098 = vmatprep.mubr.f32.mxu1 %v9471_v30  ;;  %v5641_v49 = vmul.f32 %v5631_v37, %v9480_v52 }
 0x739   : > { %v5628_v24 = vpop.permute.xlu1 %5627  ;;  %6835 = vmatpush1.bf16.msra.mxu1 %v8910_v10  ;;  %v5642_v10 = vmul.f32 %v5635_v43, %v9481_v13 }
 0x73a   : > { %v5632_v34 = vsel %vm1495_vm8, %v5620_v18, %v5628_v24  ;;  %v5636_v48 = vsel %vm1495_vm8, %v5628_v24, %v5620_v18 }
 0x73b   : > { %v5643_v61 = vmul.f32 %v5632_v34, %v9480_v52  ;;  %v5644_v45 = vmul.f32 %v5636_v48, %v9481_v13  ;;  %6296 = vmatmul.mubr.msk.f32.gmra.mrb[22].mxu1 %vm362_vm0, %v6292_v47 }
 0x73c   : > { %5102 = vmatprep.mubr.f32.mxu1 %v9471_v30 }
 0x73d   : > { %v6634_v35 = vpack.c.bf16 %v5643_v61, %v5641_v49  ;;  %v6632_v29 = vpack.c.bf16 %v5644_v45, %v5642_v10 }
 0x73f   : > { %6633 = vmatprep.subr.bf16.mxu0 %v6632_v29  ;;  %6297 = vmatmul.mubr.msk.f32.gmra.mrb[24].mxu1 %vm362_vm0, %v6293_v42 }
 0x740   : > { %6635 = vmatpush1.bf16.msra.mxu0 %v6634_v35  ;;  %5200 = vmatprep.mubr.f32.mxu1 %v9471_v30 }
 0x743   : > { %6334 = vmatmul.mubr.msk.f32.vlgmr.msra.gmra.mrb[0].mxu0 %vm362_vm0, %v6330_v17  ;;  %6304 = vmatmul.mubr.msk.f32.vlgmr.msra.gmra.mrb[26].mxu1 %vm362_vm0, %v6300_v62 }
 0x744   : > { %5732 = vmatprep.mubr.f32.mxu0 %v9471_v30  ;;  %5204 = vmatprep.mubr.f32.mxu1 %v9471_v30 }
 0x747   : > { %6335 = vmatmul.mubr.msk.f32.gmra.mrb[22].mxu0 %vm362_vm0, %v6331_v51  ;;  %6305 = vmatmul.mubr.msk.f32.gmra.mrb[28].mxu1 %vm362_vm0, %v6301_v23  ;;  %v5752_v58 = vpop.permute.xlu0 %5751 }
 0x748   : > { %5736 = vmatprep.mubr.f32.mxu0 %v9471_v30 }
 0x74b   : > { %6336 = vmatmul.mubr.msk.f32.gmra.mrb[24].mxu0 %vm362_vm0, %v6332_v25 }
 0x74c   : > { %5740 = vmatprep.mubr.f32.mxu0 %v9471_v30 }
 0x74f   : > { %6337 = vmatmul.mubr.msk.f32.gmra.mrb[26].mxu0 %vm362_vm0, %v6333_v36 }
 0x7aa   : > { %v4735_v19 = vpop.f32.mrb[2].mxu1 }
 0x7ab   : > { %v4736_v39 = vpop.f32.mrb[3].mxu1 }
 0x7ae   : > { %v4739_v50 = vpop.f32.mrb[4].mxu1 }
 0x7af   : > { %v4740_v44 = vpop.f32.mrb[5].mxu1 }
 0x7b2   : > { %v4743_v27 = vpop.f32.mrb[6].mxu1 }
 0x7b3   : > { %v4744_v40 = vpop.f32.mrb[7].mxu1 }
 0x7ba   : > { %v5332_v41 = vpop.f32.mrb[4].mxu0 }
 0x7bb   : > { %v5333_v20 = vpop.f32.mrb[5].mxu0 }
 0x7be   : > { %v5336_v53 = vpop.f32.mrb[6].mxu0 }
 0x7bf   : > { %v5337_v21 = vpop.f32.mrb[7].mxu0 }
 0x7c2   : > { %v5340_v57 = vpop.f32.mrb[8].mxu0 }
 0x7c3   : > { %v5341_v63 = vpop.f32.mrb[9].mxu0 }
 0x7ca   : > { %v4830_v2 = vpop.f32.mrb[8].mxu1 }
 0x7cb   : > { %v4831_v30 = vpop.f32.mrb[9].mxu1 }
 0x7ce   : > { %v4834_v46 = vpop.f32.mrb[10].mxu1 }
 0x7cf   : > { %v4835_v0 = vpop.f32.mrb[11].mxu1 }
 0x7d2   : > { %v4838_v1 = vpop.f32.mrb[12].mxu1 }
 0x7d3   : > { %v4839_v31 = vpop.f32.mrb[13].mxu1 }
 0x7da   : > { %v5466_v32 = vpop.f32.mrb[10].mxu0 }
 0x7db   : > { %v5467_v9 = vpop.f32.mrb[11].mxu0 }
 0x7de   : > { %v5470_v5 = vpop.f32.mrb[12].mxu0 }
 0x7df   : > { %v5471_v14 = vpop.f32.mrb[13].mxu0 }
 0x7e2   : > { %v5474_v60 = vpop.f32.mrb[14].mxu0 }
 0x7e3   : > { %v5475_v16 = vpop.f32.mrb[15].mxu0 }
 0x7ea   : > { %v4962_v56 = vpop.f32.mrb[14].mxu1 }
 0x7eb   : > { %v4963_v28 = vpop.f32.mrb[15].mxu1 }
 0x7ee   : > { %v4966_v6 = vpop.f32.mrb[16].mxu1 }
 0x7ef   : > { %v4967_v15 = vpop.f32.mrb[17].mxu1 }
 0x7f2   : > { %v4970_v33 = vpop.f32.mrb[18].mxu1 }
 0x7f3   : > { %v4971_v54 = vpop.f32.mrb[19].mxu1 }
 0x7fa   : > { %v5600_v55 = vpop.f32.mrb[16].mxu0 }
 0x7fb   : > { %v5601_v52 = vpop.f32.mrb[17].mxu0 }
 0x7fe   : > { %v5604_v59 = vpop.f32.mrb[18].mxu0 }
 0x7ff   : > { %v5605_v13 = vpop.f32.mrb[19].mxu0 }
 0x802   : > { %v5608_v4 = vpop.f32.mrb[20].mxu0 }
 0x803   : > { %v5609_v8 = vpop.f32.mrb[21].mxu0 }
 0x806   : > { %v5090_v7 = vpop.f32.mrb[0].mxu1 }
 0x807   : > { %v5092_v3 = vpop.f32.mrb[1].mxu1 }
 0x80a   : > { %v5096_v11 = vpop.f32.mrb[20].mxu1 }
 0x80b   : > { %v5097_v18 = vpop.f32.mrb[21].mxu1 }
 0x80e   : > { %v5100_v38 = vpop.f32.mrb[22].mxu1 }
 0x80f   : > { %v5101_v22 = vpop.f32.mrb[23].mxu1 }
 0x812   : > { %v5104_v47 = vpop.f32.mrb[24].mxu1 }
 0x813   : > { %v5105_v24 = vpop.f32.mrb[25].mxu1 }
 0x816   : > { %v5728_v34 = vpop.f32.mrb[0].mxu0  ;;  %v5202_v48 = vpop.f32.mrb[26].mxu1 }
 0x817   : > { %v6836_v37 = vadd.f32 %v5728_v34, %v5090_v7  ;;  %v5730_v43 = vpop.f32.mrb[1].mxu0  ;;  %v5203_v61 = vpop.f32.mrb[27].mxu1 }
 0x818   : > { %v6837_v45 = vadd.f32 %v5730_v43, %v5092_v3 }
 0x819   : > { %v5754_v49 = vadd.f32 %v6836_v37, %v5752_v58 }
 0x81a   : > { %v5755_v10 = vadd.f32 %v6837_v45, %v5752_v58  ;;  %v5734_v42 = vpop.f32.mrb[22].mxu0  ;;  %v5206_v35 = vpop.f32.mrb[28].mxu1 }
 0x81b   : > { %v5735_v29 = vpop.f32.mrb[23].mxu0  ;;  %v5207_v17 = vpop.f32.mrb[29].mxu1 }
 0x81c   : > { %v5758_v62 = vcombine.low %v5754_v49, %v5755_v10 }
 0x81e   : > { %5760 = vst [vmem:[%s7106_s30] sm:$0x77] %v5758_v62  ;;  %v5738_v51 = vpop.f32.mrb[24].mxu0 }
 0x81f   : > { %v5739_v23 = vpop.f32.mrb[25].mxu0 }
 0x822   : > { %v5742_v25 = vpop.f32.mrb[26].mxu0 }
 0x823   : > { %v5743_v26 = vpop.f32.mrb[27].mxu0 }
 0x824 PF: > { %s16_s21 = sadd.s32 1, %s6999_s21  }
 0x825   : > { %p13_p5 = scmp.ge.s32.totalorder %s16_s21, 4  }
 0x827   :  { %15 = sbr.rel (!%p13_p5) target bundleno = 1 (0x1), region = 141 }

</bundles_post_ra>
